<compile_context>
chip_gen: v7x
topology: tpu7x:2x2x1
jax: 0.10.0
libtpu: 0.0.40
codegen_flags: <defaults>
</compile_context>

<pallas_src>
import math
import numpy as np
import jax
import jax.numpy as jnp
from jax.experimental import pallas as pl
from jax.experimental.pallas import tpu as pltpu

# ----------------------------- synthetic config ------------------------------
FEATURE_VECTOR_SIZE = 16
D_IN, D_OUT = 3, 1
HIDDEN = [32, 32]                       # dims=[32,32] for both coarse and fine
NUM_LEVELS, LEVEL_DIM = 4, 2            # grid_feature_dim = 8
BASE_RES, END_RES, LOG2_T = 4, 32, 8    # small hash table (256 entries/level)
DIVIDE_FACTOR = 1.5
GRID_FEAT_DIM = NUM_LEVELS * LEVEL_DIM
TABLE_SIZE = 2 ** LOG2_T
PER_LEVEL_SCALE = 2.0 ** (math.log2(END_RES / BASE_RES) / (NUM_LEVELS - 1))
BIAS = 1.0

# dims = [d_in] + hidden + [d_out + feature_vector_size]; dims[0] += grid feat
COARSE_DIMS = [D_IN + GRID_FEAT_DIM] + HIDDEN + [D_OUT + FEATURE_VECTOR_SIZE]          # [11,32,32,17]
# fine: concat_coarse_feature=True -> dims[0] += feature_vector_size
FINE_DIMS = [D_IN + GRID_FEAT_DIM + FEATURE_VECTOR_SIZE] + HIDDEN + [D_OUT + FEATURE_VECTOR_SIZE]  # [27,32,32,17]

PRIMES = np.array([1, 2654435761, 805459861], dtype=np.uint32)

D_FULL = D_OUT + FEATURE_VECTOR_SIZE      # 17
W_PAD = 32                                # padded layer width (max hidden/out dim)

# channel-major packed input rows: [x(3) | feat_c(8) | feat_f(8) | ones | zeros]
IN_ROWS = 32
ONES_ROW = D_IN + 2 * GRID_FEAT_DIM       # 19 -> bias column inside layer-0 weights
OUT_ROWS = 2 * W_PAD                      # [coarse out (32 rows) | fine out (32 rows)]

# The FW0B zero-column trick and the 32-wide padding rely on these:
assert D_OUT == 1 and D_FULL <= W_PAD and max(HIDDEN) <= W_PAD
assert ONES_ROW < IN_ROWS and COARSE_DIMS[0] <= W_PAD

# ---- bf16 weight-slab row offsets (all multiples of 16 -> clean bf16 tiles) --
_W0 = 0       # (64, 32): rows 0:32 coarse layer-0, rows 32:64 fine layer-0 (x + fine feat)
_CW1 = 64     # (32, 32)
_CW2 = 96     # (32, 32), rows 0:17 real, rest zero
_FW0B = 128   # (32, 32): fine layer-0 part applied to the padded coarse output
_FW1 = 160
_FW2 = 192
_B = 224      # (32, 32): bias columns 0=cb1, 1=cb2, 2=fb1, 3=fb2 (rest zero)
W_SLAB_ROWS = 256


# ----------------------------- parameter init --------------------------------
def init_mlp_params(key, dims, bias_val=BIAS):
    """Geometric init (multires=0, skip_in=(), inside_outside=False).
    Returns weights as (in, out) and biases as (1, out)."""
    Ws, bs = [], []
    nl = len(dims)
    for l in range(nl - 1):
        out_dim = dims[l + 1]
        key, kw = jax.random.split(key)
        if l == nl - 2:
            W = (np.sqrt(np.pi) / np.sqrt(dims[l])
                 + 1e-4 * jax.random.normal(kw, (out_dim, dims[l]), dtype=jnp.float32))
            b = jnp.full((out_dim,), -bias_val, dtype=jnp.float32)
        else:
            W = jax.random.normal(kw, (out_dim, dims[l]), dtype=jnp.float32) * (
                np.sqrt(2.0) / np.sqrt(out_dim))
            b = jnp.zeros((out_dim,), dtype=jnp.float32)
        Ws.append(jnp.asarray(W).T.astype(jnp.float32))      # (in, out)
        bs.append(b.reshape(1, -1).astype(jnp.float32))      # (1, out)
    return Ws, bs


def init_hash_table(key):
    # HashEncoder embeddings ~ U(-1e-4, 1e-4)
    return jax.random.uniform(key, (NUM_LEVELS, TABLE_SIZE, LEVEL_DIM),
                              minval=-1e-4, maxval=1e-4, dtype=jnp.float32)


# ----------------------------- hash-grid encode -------------------------------
# TODO(synk): the multiresolution hash-grid gather (data-dependent table lookup)
# has no clean Pallas mapping; it is done in plain JAX.  Per-level table offsets
# are simplified to one full table per level (lookup semantics preserved).
def hash_encode(x, table):
    """x: (N,3) already divided by divide_factor; torch-ngp style trilinear
    multiresolution hash encoding, inputs mapped from [-1,1] to [0,1]."""
    inputs = (x + 1.0) * 0.5
    n = x.shape[0]
    outs = []
    for lvl in range(NUM_LEVELS):
        scale = BASE_RES * (PER_LEVEL_SCALE ** lvl) - 1.0
        resolution = int(math.ceil(scale)) + 1
        pos = inputs * scale + 0.5
        pos_grid = jnp.floor(pos)
        frac = pos - pos_grid
        pg = pos_grid.astype(jnp.uint32)
        acc = jnp.zeros((n, LEVEL_DIM), dtype=jnp.float32)
        for corner in range(8):
            bits = [(corner >> d) & 1 for d in range(3)]
            cp = pg + jnp.asarray(bits, dtype=jnp.uint32)
            if resolution ** 3 <= TABLE_SIZE:
                idx = (cp[:, 0]
                       + cp[:, 1] * np.uint32(resolution)
                       + cp[:, 2] * np.uint32(resolution * resolution))
            else:
                idx = ((cp[:, 0] * jnp.uint32(PRIMES[0]))
                       ^ (cp[:, 1] * jnp.uint32(PRIMES[1]))
                       ^ (cp[:, 2] * jnp.uint32(PRIMES[2]))) & jnp.uint32(TABLE_SIZE - 1)
            idx = idx.astype(jnp.int32)
            w = jnp.ones((n,), dtype=jnp.float32)
            for d in range(3):
                w = w * (frac[:, d] if bits[d] else (1.0 - frac[:, d]))
            acc = acc + w[:, None] * jnp.take(table[lvl], idx, axis=0)
        outs.append(acc)
    return jnp.concatenate(outs, axis=-1)                    # (N, GRID_FEAT_DIM)


# ----------------------------- weight packing ---------------------------------
def pack_params(cW, cB, fW, fB):
    """Pack coarse+fine weights (out, in orientation) and biases into one
    (256, 32) bf16 slab.  Unused entries are zero so padded matmuls are exact.
    Under geometric init all biases are 0 or +/-BIAS, hence bf16-exact."""
    slab = jnp.zeros((W_SLAB_ROWS, W_PAD), jnp.float32)

    # fused layer-0 block, applied to the packed (32, tn) input
    cW0t = cW[0].T                                                   # (32, 11)
    slab = slab.at[_W0:_W0 + W_PAD, 0:COARSE_DIMS[0]].set(cW0t)
    slab = slab.at[_W0:_W0 + W_PAD, ONES_ROW].set(cB[0][0])          # fold cb0

    fW0t = fW[0].T                                                   # (32, 27)
    slab = slab.at[_W0 + W_PAD:_W0 + 2 * W_PAD, 0:D_IN].set(fW0t[:, :D_IN])
    slab = slab.at[_W0 + W_PAD:_W0 + 2 * W_PAD,
                   D_IN + GRID_FEAT_DIM:D_IN + 2 * GRID_FEAT_DIM].set(
                       fW0t[:, D_IN:D_IN + GRID_FEAT_DIM])
    slab = slab.at[_W0 + W_PAD:_W0 + 2 * W_PAD, ONES_ROW].set(fB[0][0])  # fold fb0

    # coarse layers 1,2
    slab = slab.at[_CW1:_CW1 + HIDDEN[1], 0:HIDDEN[0]].set(cW[1].T)
    slab = slab.at[_CW2:_CW2 + D_FULL, 0:HIDDEN[1]].set(cW[2].T)

    # fine layer-0 part applied to the padded (32-row) coarse output; column 0
    # (coarse sdf channel) stays zero so only c_out rows 1..16 contribute,
    # matching the reference's concat of c_out[:, 1:].
    slab = slab.at[_FW0B:_FW0B + W_PAD, 1:1 + FEATURE_VECTOR_SIZE].set(
        fW0t[:, D_IN + GRID_FEAT_DIM:])

    # fine layers 1,2
    slab = slab.at[_FW1:_FW1 + HIDDEN[1], 0:HIDDEN[0]].set(fW[1].T)
    slab = slab.at[_FW2:_FW2 + D_FULL, 0:HIDDEN[1]].set(fW[2].T)

    # bias columns (layers 1,2); padded rows stay zero so padded output rows are 0
    slab = slab.at[_B:_B + HIDDEN[1], 0].set(cB[1][0])
    slab = slab.at[_B:_B + D_FULL, 1].set(cB[2][0])
    slab = slab.at[_B:_B + HIDDEN[1], 2].set(fB[1][0])
    slab = slab.at[_B:_B + D_FULL, 3].set(fB[2][0])
    return slab.astype(jnp.bfloat16)


# ----------------------------- Pallas kernel ----------------------------------
def _softplus100(v):
    # nn.Softplus(beta=100): (1/100) * log1p(exp(100 x)), linear above thresh 20
    bz = 100.0 * v
    return jnp.where(bz > 20.0, v,
                     jnp.log1p(jnp.exp(jnp.minimum(bz, 20.0))) * 0.01)


def _combine_mlp_kernel(x_ref, w_ref, out_ref):
    f32, bf16 = jnp.float32, jnp.bfloat16
    xin = x_ref[...]                                        # (32, tn) bf16

    def mm(off, rows, act):                                 # W(rows,32) @ act(32,tn)
        return jnp.dot(w_ref[off:off + rows, :], act, preferred_element_type=f32)

    b_all = w_ref[_B:_B + W_PAD, :].astype(f32)             # (32, 32) bias columns

    def bias(col):                                          # (32, 1), lane-broadcast
        return b_all[:, col:col + 1]

    # fused layer 0: coarse l0 + fine l0 (x & fine grid feat) in one MXU pass;
    # layer-0 biases folded through the constant ones row of xin
    h0 = mm(_W0, 2 * W_PAD, xin)                            # (64, tn) f32
    hc = _softplus100(h0[0:W_PAD, :])                       # coarse hidden 0
    hf_part = h0[W_PAD:2 * W_PAD, :]                        # fine l0 partial pre-act

    # coarse layers 1,2 (rows >= 17 of c_out are exactly zero by construction)
    hc = _softplus100(mm(_CW1, W_PAD, hc.astype(bf16)) + bias(0))
    c_out = mm(_CW2, W_PAD, hc.astype(bf16)) + bias(1)      # (32, tn)

    # fine layer 0 completes with the coarse-feature contribution (via the
    # padded c_out; _FW0B column 0 is zero), then fine layers 1,2
    hf = _softplus100(hf_part + mm(_FW0B, W_PAD, c_out.astype(bf16)))
    hf = _softplus100(mm(_FW1, W_PAD, hf.astype(bf16)) + bias(2))
    f_raw = mm(_FW2, W_PAD, hf.astype(bf16)) + bias(3)      # (32, tn)

    # lane-dense, sublane-aligned stores; fine sdf clamp (clamp=True, name='fine')
    # only touches the single sdf sublane row
    out_ref[0:W_PAD, :] = c_out
    out_ref[W_PAD:2 * W_PAD, :] = f_raw
    out_ref[W_PAD:W_PAD + 1, :] = jnp.tanh(f_raw[0:1, :]) * 0.05


def combine_forward(x, params, *, tn=4096):
    """Runs the fused coarse+fine MLP Pallas kernel (channel-major).
    Returns (combined_sdf (N,1), coarse_out (N,17), fine_out (N,17))."""
    (coarse_tab, fine_tab, cW, cB, fW, fB) = params
    n = x.shape[0]

    # hash-grid encodings (data-dependent gather, stays in plain JAX)
    x_scaled = x / DIVIDE_FACTOR
    feat_c = hash_encode(x_scaled, coarse_tab)
    feat_f = hash_encode(x_scaled, fine_tab)

    # channel-major packed input: rows = [x | coarse feat | fine feat | 1 | 0s]
    xin = jnp.concatenate(
        [x.T, feat_c.T, feat_f.T,
         jnp.ones((1, n), jnp.float32),
         jnp.zeros((IN_ROWS - ONES_ROW - 1, n), jnp.float32)],
        axis=0).astype(jnp.bfloat16)                         # (32, N) bf16

    w_slab = pack_params(cW, cB, fW, fB)                     # (256, 32) bf16

    # Lane tile: multiple of 128, big enough to amortize per-step pipeline
    # overhead, but at least 2 grid steps whenever possible so both v7x
    # TensorCores get work via the parallel grid axis.
    half = ((n + 1) // 2 + 127) // 128 * 128
    tn_eff = max(128, min(tn, half))
    n_pad = pl.cdiv(n, tn_eff) * tn_eff
    if n_pad != n:
        xin = jnp.pad(xin, ((0, 0), (0, n_pad - n)))

    grid = (n_pad // tn_eff,)

    macs_per_point = 7 * W_PAD * W_PAD          # fused 64x32 layer-0 + 5 x 32x32
    cost = pl.CostEstimate(
        flops=2 * macs_per_point * n_pad,
        transcendentals=(4 * W_PAD * 2 + 1) * n_pad,  # 4 softplus (exp+log1p) + tanh
        bytes_accessed=(2 * IN_ROWS + 4 * OUT_ROWS) * n_pad + 2 * int(w_slab.size))

    packed = pl.pallas_call(
        _combine_mlp_kernel,
        grid=grid,
        in_specs=[pl.BlockSpec((IN_ROWS, tn_eff), lambda i: (0, i)),
                  pl.BlockSpec((W_SLAB_ROWS, W_PAD), lambda i: (0, 0))],
        out_specs=pl.BlockSpec((OUT_ROWS, tn_eff), lambda i: (0, i)),
        out_shape=jax.ShapeDtypeStruct((OUT_ROWS, n_pad), jnp.float32),
        compiler_params=pltpu.CompilerParams(
            dimension_semantics=("parallel",),
            vmem_limit_bytes=32 * 1024 * 1024),
        cost_estimate=cost,
    )(xin, w_slab)

    c_out = packed[0:D_FULL, :n].T                           # (N, 17)
    f_out = packed[W_PAD:W_PAD + D_FULL, :n].T               # (N, 17), sdf row clamped
    # ImplicitNetworkGrid_COMBINE.get_sdf_vals(stage='fine'): coarse + fine sdf
    sdf = c_out[:, :1] + f_out[:, :1]
    return sdf, c_out, f_out


# ----------------------------- pure-JAX references ----------------------------
def _mlp_ref(h, Ws, bs):
    for i, (W, b) in enumerate(zip(Ws, bs)):
        h = h @ W + b
        if i < len(Ws) - 1:
            h = _softplus100(h)
    return h


def _mlp_ref_bf16(h, Ws, bs):
    # Matches the kernel precision: bf16 matmul operands, f32 accumulation,
    # bf16-rounded biases (they live in the bf16 weight slab).
    bf16, f32 = jnp.bfloat16, jnp.float32
    for i, (W, b) in enumerate(zip(Ws, bs)):
        h = jnp.dot(h.astype(bf16), W.astype(bf16), preferred_element_type=f32)
        h = h + b.astype(bf16).astype(f32)
        if i < len(Ws) - 1:
            h = _softplus100(h)
    return h


def combine_reference(x, params, mlp_fn=_mlp_ref):
    (coarse_tab, fine_tab, cW, cB, fW, fB) = params
    x_scaled = x / DIVIDE_FACTOR
    xc = jnp.concatenate([x, hash_encode(x_scaled, coarse_tab)], axis=-1)
    c_out = mlp_fn(xc, cW, cB)
    xf = jnp.concatenate([x, hash_encode(x_scaled, fine_tab), c_out[:, 1:]], axis=-1)
    f_raw = mlp_fn(xf, fW, fB)
    f_out = jnp.concatenate([jnp.tanh(f_raw[:, :1]) * 0.05, f_raw[:, 1:]], axis=-1)
    sdf = c_out[:, :1] + f_out[:, :1]
    return sdf, c_out, f_out


# TODO(synk): get_outputs / gradient require autograd of the sdf w.r.t. x
# (torch.autograd.grad); not reimplemented through the Pallas kernel here.

# ----------------------------------- main -------------------------------------
if __name__ == "__main__":
    key = jax.random.PRNGKey(0)
    k_ct, k_ft, k_cm, k_fm, k_x = jax.random.split(key, 5)

    coarse_tab = init_hash_table(k_ct)
    fine_tab = init_hash_table(k_ft)
    cW, cB = init_mlp_params(k_cm, COARSE_DIMS)
    fW, fB = init_mlp_params(k_fm, FINE_DIMS)
    params = (coarse_tab, fine_tab, cW, cB, fW, fB)

    N = 2048
    x = jax.random.uniform(k_x, (N, D_IN), minval=-1.0, maxval=1.0, dtype=jnp.float32)

    sdf, c_out, f_out = jax.block_until_ready(combine_forward(x, params))

    # precision-matched reference (bf16 matmul operands, f32 accumulation)
    sdf_q, c_q, f_q = combine_reference(x, params, _mlp_ref_bf16)
    for got, ref in ((sdf, sdf_q), (c_out, c_q), (f_out, f_q)):
        assert np.allclose(np.asarray(got), np.asarray(ref), atol=5e-3, rtol=5e-3), \
            "Pallas kernel mismatch vs bf16-matched reference"

    # sanity check vs the full-f32 reference (bf16 MXU operands trade a little
    # precision; outputs must stay close to the original module semantics)
    sdf_f, c_f, f_f = combine_reference(x, params, _mlp_ref)
    for got, ref in ((sdf, sdf_f), (c_out, c_f), (f_out, f_f)):
        assert np.allclose(np.asarray(got), np.asarray(ref), atol=5e-2, rtol=5e-2), \
            "Pallas kernel drifted too far from the f32 reference"

    print("KERNEL_OK")
</pallas_src>

<mosaic_0001>
module attributes {stable_mosaic.version = 11 : i64} {
  func.func @_combine_mlp_kernel(%arg0: i32, %arg1: memref<32x1024xbf16, #tpu.memory_space<vmem>>, %arg2: memref<256x32xbf16, #tpu.memory_space<vmem>>, %arg3: memref<64x1024xf32, #tpu.memory_space<vmem>>) attributes {dimension_semantics = [#tpu.dimension_semantics<parallel>], iteration_bounds = array<i64: 2>, scalar_prefetch = 0 : i64, scratch_operands = 0 : i64, tpu.core_type = #tpu.core_type<tc>, window_params = [{transform_indices = @transform_0, window_bounds = array<i64: 32, 1024>}, {pipeline_mode = #tpu.pipeline_mode<synchronous>, transform_indices = @transform_1, window_bounds = array<i64: 256, 32>}, {transform_indices = @transform_2, window_bounds = array<i64: 64, 1024>}]} {
    %c0 = arith.constant 0 : index
    %c0_0 = arith.constant 0 : index
    %0 = vector.load %arg1[%c0, %c0_0] : memref<32x1024xbf16, #tpu.memory_space<vmem>>, vector<32x1024xbf16>
    %c224 = arith.constant 224 : index
    %c0_1 = arith.constant 0 : index
    %1 = vector.load %arg2[%c224, %c0_1] : memref<256x32xbf16, #tpu.memory_space<vmem>>, vector<32x32xbf16>
    %2 = arith.extf %1 : vector<32x32xbf16> to vector<32x32xf32>
    %c0_2 = arith.constant 0 : index
    %c0_3 = arith.constant 0 : index
    %3 = vector.load %arg2[%c0_2, %c0_3] : memref<256x32xbf16, #tpu.memory_space<vmem>>, vector<64x32xbf16>
    %cst = arith.constant dense<0.000000e+00> : vector<64x1024xf32>
    %4 = tpu.matmul %3, %0, %cst {dimension_numbers = #tpu.dot_dimension_numbers<[1], [0], [0], [1], [0, 0, 1, 1], [], []>} : vector<64x32xbf16>, vector<32x1024xbf16>, vector<64x1024xf32> -> vector<64x1024xf32>
    %5 = vector.extract_strided_slice %4 {offsets = [0, 0], sizes = [32, 1024], strides = [1, 1]} : vector<64x1024xf32> to vector<32x1024xf32>
    %cst_4 = arith.constant 1.000000e+02 : f32
    %6 = vector.broadcast %cst_4 : f32 to vector<32x1024xf32>
    %7 = arith.mulf %6, %5 : vector<32x1024xf32>
    %cst_5 = arith.constant 2.000000e+01 : f32
    %8 = vector.broadcast %cst_5 : f32 to vector<32x1024xf32>
    %9 = arith.cmpf ogt, %7, %8 : vector<32x1024xf32>
    %cst_6 = arith.constant 2.000000e+01 : f32
    %10 = vector.broadcast %cst_6 : f32 to vector<32x1024xf32>
    %11 = arith.minimumf %7, %10 : vector<32x1024xf32>
    %12 = math.exp %11 : vector<32x1024xf32>
    %13 = math.log1p %12 : vector<32x1024xf32>
    %cst_7 = arith.constant 0.00999999977 : f32
    %14 = vector.broadcast %cst_7 : f32 to vector<32x1024xf32>
    %15 = arith.mulf %13, %14 : vector<32x1024xf32>
    %16 = arith.select %9, %5, %15 : vector<32x1024xi1>, vector<32x1024xf32>
    %17 = vector.extract_strided_slice %4 {offsets = [32, 0], sizes = [32, 1024], strides = [1, 1]} : vector<64x1024xf32> to vector<32x1024xf32>
    %18 = arith.truncf %16 : vector<32x1024xf32> to vector<32x1024xbf16>
    %c64 = arith.constant 64 : index
    %c0_8 = arith.constant 0 : index
    %19 = vector.load %arg2[%c64, %c0_8] : memref<256x32xbf16, #tpu.memory_space<vmem>>, vector<32x32xbf16>
    %cst_9 = arith.constant dense<0.000000e+00> : vector<32x1024xf32>
    %20 = tpu.matmul %19, %18, %cst_9 {dimension_numbers = #tpu.dot_dimension_numbers<[1], [0], [0], [1], [0, 0, 1, 1], [], []>} : vector<32x32xbf16>, vector<32x1024xbf16>, vector<32x1024xf32> -> vector<32x1024xf32>
    %21 = vector.extract_strided_slice %2 {offsets = [0, 0], sizes = [32, 1], strides = [1, 1]} : vector<32x32xf32> to vector<32x1xf32>
    %22 = vector.broadcast %21 : vector<32x1xf32> to vector<32x1024xf32>
    %23 = arith.addf %20, %22 : vector<32x1024xf32>
    %cst_10 = arith.constant 1.000000e+02 : f32
    %24 = vector.broadcast %cst_10 : f32 to vector<32x1024xf32>
    %25 = arith.mulf %24, %23 : vector<32x1024xf32>
    %cst_11 = arith.constant 2.000000e+01 : f32
    %26 = vector.broadcast %cst_11 : f32 to vector<32x1024xf32>
    %27 = arith.cmpf ogt, %25, %26 : vector<32x1024xf32>
    %cst_12 = arith.constant 2.000000e+01 : f32
    %28 = vector.broadcast %cst_12 : f32 to vector<32x1024xf32>
    %29 = arith.minimumf %25, %28 : vector<32x1024xf32>
    %30 = math.exp %29 : vector<32x1024xf32>
    %31 = math.log1p %30 : vector<32x1024xf32>
    %cst_13 = arith.constant 0.00999999977 : f32
    %32 = vector.broadcast %cst_13 : f32 to vector<32x1024xf32>
    %33 = arith.mulf %31, %32 : vector<32x1024xf32>
    %34 = arith.select %27, %23, %33 : vector<32x1024xi1>, vector<32x1024xf32>
    %35 = arith.truncf %34 : vector<32x1024xf32> to vector<32x1024xbf16>
    %c96 = arith.constant 96 : index
    %c0_14 = arith.constant 0 : index
    %36 = vector.load %arg2[%c96, %c0_14] : memref<256x32xbf16, #tpu.memory_space<vmem>>, vector<32x32xbf16>
    %cst_15 = arith.constant dense<0.000000e+00> : vector<32x1024xf32>
    %37 = tpu.matmul %36, %35, %cst_15 {dimension_numbers = #tpu.dot_dimension_numbers<[1], [0], [0], [1], [0, 0, 1, 1], [], []>} : vector<32x32xbf16>, vector<32x1024xbf16>, vector<32x1024xf32> -> vector<32x1024xf32>
    %38 = vector.extract_strided_slice %2 {offsets = [0, 1], sizes = [32, 1], strides = [1, 1]} : vector<32x32xf32> to vector<32x1xf32>
    %39 = vector.broadcast %38 : vector<32x1xf32> to vector<32x1024xf32>
    %40 = arith.addf %37, %39 : vector<32x1024xf32>
    %41 = arith.truncf %40 : vector<32x1024xf32> to vector<32x1024xbf16>
    %c128 = arith.constant 128 : index
    %c0_16 = arith.constant 0 : index
    %42 = vector.load %arg2[%c128, %c0_16] : memref<256x32xbf16, #tpu.memory_space<vmem>>, vector<32x32xbf16>
    %cst_17 = arith.constant dense<0.000000e+00> : vector<32x1024xf32>
    %43 = tpu.matmul %42, %41, %cst_17 {dimension_numbers = #tpu.dot_dimension_numbers<[1], [0], [0], [1], [0, 0, 1, 1], [], []>} : vector<32x32xbf16>, vector<32x1024xbf16>, vector<32x1024xf32> -> vector<32x1024xf32>
    %44 = arith.addf %17, %43 : vector<32x1024xf32>
    %cst_18 = arith.constant 1.000000e+02 : f32
    %45 = vector.broadcast %cst_18 : f32 to vector<32x1024xf32>
    %46 = arith.mulf %45, %44 : vector<32x1024xf32>
    %cst_19 = arith.constant 2.000000e+01 : f32
    %47 = vector.broadcast %cst_19 : f32 to vector<32x1024xf32>
    %48 = arith.cmpf ogt, %46, %47 : vector<32x1024xf32>
    %cst_20 = arith.constant 2.000000e+01 : f32
    %49 = vector.broadcast %cst_20 : f32 to vector<32x1024xf32>
    %50 = arith.minimumf %46, %49 : vector<32x1024xf32>
    %51 = math.exp %50 : vector<32x1024xf32>
    %52 = math.log1p %51 : vector<32x1024xf32>
    %cst_21 = arith.constant 0.00999999977 : f32
    %53 = vector.broadcast %cst_21 : f32 to vector<32x1024xf32>
    %54 = arith.mulf %52, %53 : vector<32x1024xf32>
    %55 = arith.select %48, %44, %54 : vector<32x1024xi1>, vector<32x1024xf32>
    %56 = arith.truncf %55 : vector<32x1024xf32> to vector<32x1024xbf16>
    %c160 = arith.constant 160 : index
    %c0_22 = arith.constant 0 : index
    %57 = vector.load %arg2[%c160, %c0_22] : memref<256x32xbf16, #tpu.memory_space<vmem>>, vector<32x32xbf16>
    %cst_23 = arith.constant dense<0.000000e+00> : vector<32x1024xf32>
    %58 = tpu.matmul %57, %56, %cst_23 {dimension_numbers = #tpu.dot_dimension_numbers<[1], [0], [0], [1], [0, 0, 1, 1], [], []>} : vector<32x32xbf16>, vector<32x1024xbf16>, vector<32x1024xf32> -> vector<32x1024xf32>
    %59 = vector.extract_strided_slice %2 {offsets = [0, 2], sizes = [32, 1], strides = [1, 1]} : vector<32x32xf32> to vector<32x1xf32>
    %60 = vector.broadcast %59 : vector<32x1xf32> to vector<32x1024xf32>
    %61 = arith.addf %58, %60 : vector<32x1024xf32>
    %cst_24 = arith.constant 1.000000e+02 : f32
    %62 = vector.broadcast %cst_24 : f32 to vector<32x1024xf32>
    %63 = arith.mulf %62, %61 : vector<32x1024xf32>
    %cst_25 = arith.constant 2.000000e+01 : f32
    %64 = vector.broadcast %cst_25 : f32 to vector<32x1024xf32>
    %65 = arith.cmpf ogt, %63, %64 : vector<32x1024xf32>
    %cst_26 = arith.constant 2.000000e+01 : f32
    %66 = vector.broadcast %cst_26 : f32 to vector<32x1024xf32>
    %67 = arith.minimumf %63, %66 : vector<32x1024xf32>
    %68 = math.exp %67 : vector<32x1024xf32>
    %69 = math.log1p %68 : vector<32x1024xf32>
    %cst_27 = arith.constant 0.00999999977 : f32
    %70 = vector.broadcast %cst_27 : f32 to vector<32x1024xf32>
    %71 = arith.mulf %69, %70 : vector<32x1024xf32>
    %72 = arith.select %65, %61, %71 : vector<32x1024xi1>, vector<32x1024xf32>
    %73 = arith.truncf %72 : vector<32x1024xf32> to vector<32x1024xbf16>
    %c192 = arith.constant 192 : index
    %c0_28 = arith.constant 0 : index
    %74 = vector.load %arg2[%c192, %c0_28] : memref<256x32xbf16, #tpu.memory_space<vmem>>, vector<32x32xbf16>
    %cst_29 = arith.constant dense<0.000000e+00> : vector<32x1024xf32>
    %75 = tpu.matmul %74, %73, %cst_29 {dimension_numbers = #tpu.dot_dimension_numbers<[1], [0], [0], [1], [0, 0, 1, 1], [], []>} : vector<32x32xbf16>, vector<32x1024xbf16>, vector<32x1024xf32> -> vector<32x1024xf32>
    %76 = vector.extract_strided_slice %2 {offsets = [0, 3], sizes = [32, 1], strides = [1, 1]} : vector<32x32xf32> to vector<32x1xf32>
    %77 = vector.broadcast %76 : vector<32x1xf32> to vector<32x1024xf32>
    %78 = arith.addf %75, %77 : vector<32x1024xf32>
    %c0_30 = arith.constant 0 : index
    %c0_31 = arith.constant 0 : index
    %79 = vector.load %arg3[%c0_30, %c0_31] : memref<64x1024xf32, #tpu.memory_space<vmem>>, vector<32x1024xf32>
    tpu.vector_store %arg3[%c0_30, %c0_31], %40 {strides = array<i32>} : memref<64x1024xf32, #tpu.memory_space<vmem>>, vector<32x1024xf32>,
    %c32 = arith.constant 32 : index
    %c0_32 = arith.constant 0 : index
    %80 = vector.load %arg3[%c32, %c0_32] : memref<64x1024xf32, #tpu.memory_space<vmem>>, vector<32x1024xf32>
    tpu.vector_store %arg3[%c32, %c0_32], %78 {strides = array<i32>} : memref<64x1024xf32, #tpu.memory_space<vmem>>, vector<32x1024xf32>,
    %81 = vector.extract_strided_slice %78 {offsets = [0, 0], sizes = [1, 1024], strides = [1, 1]} : vector<32x1024xf32> to vector<1x1024xf32>
    %82 = math.tanh %81 : vector<1x1024xf32>
    %cst_33 = arith.constant 5.000000e-02 : f32
    %83 = vector.broadcast %cst_33 : f32 to vector<1x1024xf32>
    %84 = arith.mulf %82, %83 : vector<1x1024xf32>
    %c32_34 = arith.constant 32 : index
    %c0_35 = arith.constant 0 : index
    %85 = vector.load %arg3[%c32_34, %c0_35] : memref<64x1024xf32, #tpu.memory_space<vmem>>, vector<1x1024xf32>
    tpu.vector_store %arg3[%c32_34, %c0_35], %84 {strides = array<i32>} : memref<64x1024xf32, #tpu.memory_space<vmem>>, vector<1x1024xf32>,
    return
  }
  func.func @transform_0(%arg0: i32) -> (i32, i32) {
    %c0_i32 = arith.constant 0 : i32
    %c0_i32_0 = arith.constant 0 : i32
    return %c0_i32, %arg0 : i32, i32
  }
  func.func @transform_1(%arg0: i32) -> (i32, i32) {
    %c0_i32 = arith.constant 0 : i32
    %c0_i32_0 = arith.constant 0 : i32
    %c0_i32_1 = arith.constant 0 : i32
    return %c0_i32, %c0_i32_0 : i32, i32
  }
  func.func @transform_2(%arg0: i32) -> (i32, i32) {
    %c0_i32 = arith.constant 0 : i32
    %c0_i32_0 = arith.constant 0 : i32
    return %c0_i32, %arg0 : i32, i32
  }
}

</mosaic_0001>

<bundles_post_ra>
// kernel: tpu_custom_call.1
= control target key start
LH: loop header
LB: loop body
LE: loop exit
PB: predicated region body
PF: predicated region fallthrough
CT: control target
= control target key end

     0   :  { %7 = vsyncpa [#allocation3], 0  ;;  %s8472_s0 = inlined_call_operand.hbm [shape: bf16[32,2048], index: 0, kind: input, shape index: {}]   ;;  %s8473_s1 = inlined_call_operand.vmem [shape: bf16[256,32], index: 1, kind: input, shape index: {}]   ;;  %s8474_s2 = inlined_call_operand.hbm [shape: f32[64,2048], index: 2, kind: output, shape index: {}]  }
   0x1   :  { %9 = vsyncpa [#allocation3 + $0x1], 0 }
   0x2   :  { %10 = vsyncpa [#allocation4], 0 }
   0x3   :  { %12 = vsyncpa [#allocation4 + $0x1], 0  ;;  %s5130_s9 = smov 0   ;;  %s5132_s10 = smov 0  }
   0x4   :  { %s5134_s11 = smov 0   ;;  %s5136_s12 = smov 0  }
   0x5 LB: > { %s5151_s13 = sadd.s32 4294967295, %s5100_s12   ;;  %s4218_s14 = sadd.s32 4294967294, %s5100_s12   ;;  %s5100_s12 = sphi %s5136_s12, %s8841_s12   ;;  %s5096_s11 = sphi %s5134_s11, %s8840_s11   ;;  %s5092_s10 = sphi %s5132_s10, %s8839_s10   ;;  %s5088_s9 = sphi %s5130_s9, %s8838_s9  }
   0x6   : > { %s5155_s15 = sadd.s32 1, %s5100_s12   ;;  %s25_s16 = sadd.s32 1, %s5096_s11 }
   0x7   : > { %s22_s17 = ssub.s32 %s5100_s12, %s5155_s15  ;;  %p32_p0 = scmp.ne.s32.totalorder %s5096_s11, %s5092_s10 }
   0x8   : > { %p23_p1 = scmp.eq.s32.totalorder %s22_s17, 0  ;;  %p33_p2 = scmp.eq.s32.totalorder %s5100_s12, 0 }
   0x9   : > { %p38_p3 = scmp.ne.s32.totalorder %s5092_s10, %s5088_s9  ;;  %p39_p4 = scmp.eq.s32.totalorder %s5151_s13, 0 }
   0xa   : > { %s5167_s18 = scalar_select %p23_p1, %s5096_s11, %s25_s16  }
   0xb   : > { %p5169_p5 = por %p33_p2, %p32_p0  ;;  %p5173_p6 = por %p39_p4, %p38_p3 }
   0xc   : > { %p83_p7 = scmp.eq.s32.totalorder %s5151_s13, 1  ;;  %p89_p8 = scmp.eq.s32.totalorder %s4218_s14, 1 }
   0xd   : > { %p4376_p10 = scmp.lt.s32.totalorder %s5100_s12, 2  ;;  %s112_s23 = sand.u32 1, %s5096_s11  }
   0xe   : > { %p5180_p11 = por %p83_p7, %p32_p0  ;;  %p5184_p12 = por %p89_p8, %p38_p3 }
   0xf   : > { %s4320_s24 = sshll.u32 %s5100_s12, 9  ;;  %s4221_s25 = sshll.u32 %s112_s23, 7 }
  0x10   : > { %s8539_s21 = scalar_select %p5180_p11, 1, 0 }
  0x11   : > { %s8540_s22 = scalar_select %p5184_p12, 1, 0 }
  0x12   : > { %s5193_s28 = scalar_lea.hbm %s8472_s0, %s4320_s24  ;;  %s116_s29 = scalar_lea.vmem [#allocation2], %s4221_s25 }
  0x13   : > { %s123_s30 = sshll.u32 %s116_s29, 4  ;;  %p5197_p13 = pnand %p4376_p10, %p5169_p5  ;;  %s5201_s30 = int_to_ptr.vmem [resolvable:$true] %s123_s30 }
  0x14   : > { %s5204_s4 = scalar_lea.sflag [#allocation3], %s112_s23  ;;  %s5004_s5 = scalar_lea.hbm %s5193_s28, 2048 }
  0x15   : > { %p5005_p1 = scmp.ne.s32.totalorder %s5193_s28, %s5004_s5  ;;  %p5006_p2 = pneg %p5197_p13 }
  0x16   : > { %s5009_s8 = scalar_lea.hbm %s8472_s0, 4096  ;;  %p5010_p5 = scmp.lt.u32.totalorder %s5193_s28, %s8472_s0 }
  0x17   : > { %p5007_p3 = pnand %p5006_p2, %p5005_p1  ;;  %p5011_p7 = scmp.lt.u32.totalorder %s5009_s8, %s5004_s5 }
  0x18   : > { %p5013_p10 = scmp.lt.u32.totalorder %s5004_s5, %s5193_s28 }
  0x19   : > { %p5008_p4 = pneg %p5007_p3  ;;  %p5012_p8 = por %p5011_p7, %p5010_p5 }
  0x1b   : > { %p5014_p9 = por %p5013_p10, %p5012_p8 }
  0x1d   : > { %p5015_p0 = pnand %p5014_p9, %p5008_p4 }
  0x1f   : > { %5018 = shalt.err (!%p5015_p0)
}
  0x20   : > { %s5019_s17 = scalar_lea.vmem %s5201_s30, 2048  ;;  %s5102_s19 = smov [#allocation2]  }
  0x21   : > { %p5020_p1 = scmp.ne.s32.totalorder %s5201_s30, %s5019_s17  ;;  %s5024_s23 = sshll.u32 %s5102_s19, 4  ;;  %s5025_s23 = int_to_ptr.vmem [resolvable:$false] %s5024_s23 }
  0x22   : > { %s5026_s24 = scalar_lea.vmem %s5025_s23, 4096  ;;  %p5027_p11 = scmp.lt.s32.totalorder %s5201_s30, %s5025_s23 }
  0x23   : > { %p5022_p3 = pnand %p5020_p1, %p5006_p2  ;;  %p5028_p5 = scmp.lt.s32.totalorder %s5026_s24, %s5019_s17 }
  0x25   : > { %p5023_p12 = pneg %p5022_p3  ;;  %p5029_p7 = por %p5028_p5, %p5027_p11 }
  0x27   : > { %p5030_p8 = pnand %p5029_p7, %p5023_p12 }
  0x29   : > { %5033 = shalt.err (!%p5030_p8)
}
  0x2a   : > { %s5103_s25 = smov 1024   ;;  %s5104_s26 = smov 512  }
  0x2b   : > { %s5105_s27 = smov 32   ;;  %p131_p9 = scmp.lt.s32.totalorder %s5100_s12, 3 }
  0x2c   : > { %4371 = dma.hbm_to_vmem [thread:$0]  (!%p5197_p13), %s5193_s28, 2048, %s5201_s30, %s5204_s4, %s5103_s25, %s5104_s26, %s5105_s27  }
  0x2d   : > { %p8542_p0 = scmp.ge.s32.totalorder %s5100_s12, 1 }
  0x2f   : > { %p132_p2 = pnand %p8542_p0, %p131_p9 }
  0x31   : > { %135 = sbr.rel (%p132_p2) target bundleno = 1845 (0x735), region = 28 }
  0x38   : > { %s5236_s29 = sand.u32 1, %s5092_s10  }
  0x39   : > { %s4225_s5 = sshll.u32 %s5236_s29, 7  ;;  %s138_s6 = scalar_lea.sflag [#allocation3], %s5236_s29 }
  0x3a   : > { %s5240_s7 = scalar_lea.vmem [#allocation2], %s4225_s5 }
  0x3b   : > { %5079 = dma.done.wait (%p5173_p6), %s138_s6, 2048  }
  0x3c   : > { %5081 = vsyncadd (%p5173_p6), %s138_s6, 4294965248  ;;  %v8476_v0 = vmov 0   ;;  %v165_v1 = vld [vmem:[%s5240_s7] sm:$0xff]  ;;  %v166_v3 = vld [vmem:[%s5240_s7 + $0x8] sm:$0xff]  ;;  %vm297_vm0 = vcmask 261120   ;;  %s4226_s30 = sshll.u32 %s5236_s29, 9 }
  0x3d   : > { %342 = vmatprep.mubr.bf16.mxu0 %v8476_v0  ;;  %415 = vmatprep.mubr.bf16.mxu1 %v8476_v0  ;;  %v169_v2 = vld [vmem:[%s5240_s7 + $0x20] sm:$0xff]  ;;  %v170_v5 = vld [vmem:[%s5240_s7 + $0x28] sm:$0xff]  ;;  %v167_v15 = vld [vmem:[%s5240_s7 + $0x10] sm:$0xff]  ;;  %s6813_s3 = scalar_lea.vmem [#allocation5], %s4226_s30  ;;  %s4321_s6 = sshll.u32 %s5151_s13, 10 }
  0x3e   : > { %4421 = vset.pattern.permute.xlu0 %v8476_v0  ;;  %v4232_v4 = vcombine.high %v165_v1, %v169_v2  ;;  %v4231_v6 = vcombine.low %v165_v1, %v169_v2  ;;  %v173_v7 = vld [vmem:[%s5240_s7 + $0x40] sm:$0xff]  ;;  %v4234_v9 = vcombine.high %v166_v3, %v170_v5  ;;  %v4233_v10 = vcombine.low %v166_v3, %v170_v5  ;;  %v174_v12 = vld [vmem:[%s5240_s7 + $0x48] sm:$0xff]  ;;  %v171_v17 = vld [vmem:[%s5240_s7 + $0x30] sm:$0xff]  ;;  %s8424_s30 = scalar_lea.hbm %s8474_s2, %s4321_s6  ;;  %s4132_s13 = scalar_lea.sflag [#allocation4], %s5236_s29 }
  0x3f   : > { %v177_v8 = vld [vmem:[%s5240_s7 + $0x60] sm:$0xff]  ;;  %v178_v13 = vld [vmem:[%s5240_s7 + $0x68] sm:$0xff]  ;;  %v168_v18 = vld [vmem:[%s5240_s7 + $0x18] sm:$0xff]  ;;  %v4236_v21 = vcombine.high %v167_v15, %v171_v17  ;;  %v4235_v27 = vcombine.low %v167_v15, %v171_v17  ;;  %p8835_p11 = scmp.ne.s32.totalorder %s8539_s21, 0  ;;  %s5111_s8 = smov [#allocation5]  }
  0x40   : > { %v4240_v11 = vcombine.high %v173_v7, %v177_v8  ;;  %310 = vmatprep.subr.bf16.mxu0 %v4232_v4  ;;  %v4242_v14 = vcombine.high %v174_v12, %v178_v13  ;;  %383 = vmatprep.subr.bf16.mxu1 %v4234_v9  ;;  %v4239_v16 = vcombine.low %v173_v7, %v177_v8  ;;  %v172_v19 = vld [vmem:[%s5240_s7 + $0x38] sm:$0xff]  ;;  %v4462_v22 = vld [vmem:[%s8473_s1] sm:$0xff]   ;;  %v175_v24 = vld [vmem:[%s5240_s7 + $0x50] sm:$0xff]  ;;  %s5038_s14 = sshll.u32 %s5111_s8, 4  ;;  %s5039_s14 = int_to_ptr.vmem [resolvable:$false] %s5038_s14 }
  0x41   : > { %311 = vmatpush1.bf16.msra.mxu0 %v4231_v6  ;;  %384 = vmatpush1.bf16.msra.mxu1 %v4233_v10  ;;  %v4241_v20 = vcombine.low %v174_v12, %v178_v13  ;;  %v4238_v23 = vcombine.high %v168_v18, %v172_v19  ;;  %v179_v25 = vld [vmem:[%s5240_s7 + $0x70] sm:$0xff]  ;;  %v176_v26 = vld [vmem:[%s5240_s7 + $0x58] sm:$0xff]  ;;  %v4237_v29 = vcombine.low %v168_v18, %v172_v19  ;;  %v4463_v33 = vld [vmem:[%s8473_s1 + $0x8] sm:$0xff]   ;;  %s5040_s16 = scalar_lea.vmem %s5039_s14, 16384 }
  0x42   : > { %312 = vmatprep.subr.bf16.mxu0 %v4240_v11  ;;  %385 = vmatprep.subr.bf16.mxu1 %v4242_v14  ;;  %v180_v28 = vld [vmem:[%s5240_s7 + $0x78] sm:$0xff]  ;;  %v4244_v30 = vcombine.high %v175_v24, %v179_v25  ;;  %v4243_v32 = vcombine.low %v175_v24, %v179_v25  ;;  %v4464_v35 = vld [vmem:[%s8473_s1 + $0x10] sm:$0xff]   ;;  %s4145_s7 = sshll.u32 %s6813_s3, 4  ;;  %s8426_s7 = int_to_ptr.vmem [resolvable:$true] %s4145_s7 }
  0x43   : > { %v4246_v31 = vcombine.high %v176_v26, %v180_v28  ;;  %v4245_v34 = vcombine.low %v176_v26, %v180_v28  ;;  %v4465_v36 = vld [vmem:[%s8473_s1 + $0x18] sm:$0xff]   ;;  %s5034_s4 = scalar_lea.vmem %s8426_s7, 8192  ;;  %p5041_p4 = scmp.lt.s32.totalorder %s8426_s7, %s5039_s14 }
  0x44   : > { %p5035_p6 = scmp.ne.s32.totalorder %s8426_s7, %s5034_s4  ;;  %p5042_p10 = scmp.lt.s32.totalorder %s5040_s16, %s5034_s4 }
  0x45   : > { %313 = vmatpush1.bf16.msra.mxu0 %v4239_v16  ;;  %386 = vmatpush1.bf16.msra.mxu1 %v4241_v20 }
  0x46   : > { %456 = vmatprep.subr.bf16.mxu0 %v4236_v21  ;;  %529 = vmatprep.subr.bf16.mxu1 %v4238_v23  ;;  %p5036_p12 = pnand %p5035_p6, %p8835_p11  ;;  %p5043_p1 = por %p5042_p10, %p5041_p4 }
  0x48   : > { %4247 = vmatmul.mubr.msk.bf16.vlgmr.msra.gmra.mrb[0].mxu0 %vm297_vm0, %v4462_v22  ;;  %4251 = vmatmul.mubr.msk.bf16.vlgmr.msra.gmra.mrb[0].mxu1 %vm297_vm0, %v4462_v22  ;;  %p5037_p13 = pneg %p5036_p12 }
  0x49   : > { %457 = vmatpush1.bf16.msra.mxu0 %v4235_v27  ;;  %530 = vmatpush1.bf16.msra.mxu1 %v4237_v29 }
  0x4a   : > { %352 = vmatprep.mubr.bf16.mxu0 %v8476_v0  ;;  %425 = vmatprep.mubr.bf16.mxu1 %v8476_v0  ;;  %p5044_p3 = pnand %p5043_p1, %p5037_p13 }
  0x4b   : > { %458 = vmatprep.subr.bf16.mxu0 %v4244_v30  ;;  %531 = vmatprep.subr.bf16.mxu1 %v4246_v31 }
  0x4d   : > { %459 = vmatpush1.bf16.msra.mxu0 %v4243_v32  ;;  %532 = vmatpush1.bf16.msra.mxu1 %v4245_v34 }
  0x50   : > { %4248 = vmatmul.mubr.msk.bf16.gmra.mrb[4].mxu0 %vm297_vm0, %v4463_v33  ;;  %4252 = vmatmul.mubr.msk.bf16.gmra.mrb[4].mxu1 %vm297_vm0, %v4463_v33 }
  0x51   : > { %362 = vmatprep.mubr.bf16.mxu0 %v8476_v0  ;;  %435 = vmatprep.mubr.bf16.mxu1 %v8476_v0 }
  0x58   : > { %4249 = vmatmul.mubr.msk.bf16.gmra.mrb[8].mxu0 %vm297_vm0, %v4464_v35  ;;  %4253 = vmatmul.mubr.msk.bf16.gmra.mrb[8].mxu1 %vm297_vm0, %v4464_v35 }
  0x59   : > { %372 = vmatprep.mubr.bf16.mxu0 %v8476_v0  ;;  %445 = vmatprep.mubr.bf16.mxu1 %v8476_v0 }
  0x60   : > { %4250 = vmatmul.mubr.msk.bf16.gmra.mrb[12].mxu0 %vm297_vm0, %v4465_v36  ;;  %4254 = vmatmul.mubr.msk.bf16.gmra.mrb[12].mxu1 %vm297_vm0, %v4465_v36 }
  0x61   : > { %488 = vmatprep.mubr.bf16.mxu0 %v8476_v0  ;;  %561 = vmatprep.mubr.bf16.mxu1 %v8476_v0 }
  0x68   : > { %4255 = vmatmul.mubr.msk.bf16.vlgmr.msra.gmra.mrb[16].mxu0 %vm297_vm0, %v4462_v22  ;;  %4259 = vmatmul.mubr.msk.bf16.vlgmr.msra.gmra.mrb[16].mxu1 %vm297_vm0, %v4462_v22 }
  0x69   : > { %498 = vmatprep.mubr.bf16.mxu0 %v8476_v0  ;;  %571 = vmatprep.mubr.bf16.mxu1 %v8476_v0 }
  0x70   : > { %4256 = vmatmul.mubr.msk.bf16.gmra.mrb[20].mxu0 %vm297_vm0, %v4463_v33  ;;  %4260 = vmatmul.mubr.msk.bf16.gmra.mrb[20].mxu1 %vm297_vm0, %v4463_v33 }
  0x71   : > { %508 = vmatprep.mubr.bf16.mxu0 %v8476_v0  ;;  %581 = vmatprep.mubr.bf16.mxu1 %v8476_v0 }
  0x78   : > { %4257 = vmatmul.mubr.msk.bf16.gmra.mrb[24].mxu0 %vm297_vm0, %v4464_v35  ;;  %4261 = vmatmul.mubr.msk.bf16.gmra.mrb[24].mxu1 %vm297_vm0, %v4464_v35 }
  0x79   : > { %518 = vmatprep.mubr.bf16.mxu0 %v8476_v0  ;;  %591 = vmatprep.mubr.bf16.mxu1 %v8476_v0 }
  0x80   : > { %4258 = vmatmul.mubr.msk.bf16.gmra.mrb[28].mxu0 %vm297_vm0, %v4465_v36  ;;  %4262 = vmatmul.mubr.msk.bf16.gmra.mrb[28].mxu1 %vm297_vm0, %v4465_v36 }
  0x81   : > { %1202 = vmatprep.mubr.bf16.mxu0 %v8476_v0  ;;  %1255 = vmatprep.mubr.bf16.mxu1 %v8476_v0 }
 0x11b   : > { %v5309_v37 = vpop.f32.mrb[0].mxu0  ;;  %v5314_v39 = vpop.f32.mrb[0].mxu1 }
 0x11c   : > { %v5312_v38 = vmul.f32 100.0, %v5309_v37  ;;  %v5316_v40 = vpop.f32.mrb[1].mxu0  ;;  %v5319_v41 = vmul.f32 100.0, %v5314_v39  ;;  %v5324_v43 = vpop.f32.mrb[1].mxu1 }
 0x11d   : > { %v5322_v42 = vmul.f32 100.0, %v5316_v40  ;;  %v5326_v44 = vpop.f32.mrb[2].mxu0  ;;  %v5330_v46 = vmul.f32 100.0, %v5324_v43  ;;  %v5335_v48 = vpop.f32.mrb[2].mxu1 }
 0x11e   : > { %v666_v45 = vmin.f32 %v5312_v38, 20.0  ;;  %v5333_v47 = vmul.f32 100.0, %v5326_v44  ;;  %v5337_v49 = vpop.f32.mrb[3].mxu0  ;;  %v668_v50 = vmin.f32 %v5319_v41, 20.0  ;;  %v5341_v52 = vpop.f32.mrb[3].mxu1  ;;  %v5346_v58 = vmul.f32 100.0, %v5335_v48 }
 0x11f   : > { %v667_v51 = vmin.f32 %v5322_v42, 20.0  ;;  %v669_v54 = vmin.f32 %v5330_v46, 20.0  ;;  %v5349_v60 = vmul.f32 100.0, %v5337_v49  ;;  %v5352_v61 = vmul.f32 100.0, %v5341_v52 }
 0x120   : > { %v698_v53 = vmul.f32 1.442695, %v666_v45  ;;  %v702_v55 = vmul.f32 1.442695, %v668_v50  ;;  %v674_v57 = vmin.f32 %v5333_v47, 20.0  ;;  %v676_v63 = vmin.f32 %v5346_v58, 20.0 }
 0x121   : > { %v700_v56 = vmul.f32 1.442695, %v667_v51  ;;  %v704_v59 = vmul.f32 1.442695, %v669_v54  ;;  %v675_v2 = vmin.f32 %v5349_v60, 20.0  ;;  %v677_v6 = vmin.f32 %v5352_v61, 20.0 }
 0x122   : > { %4476 = vpow2.f32 %v698_v53  ;;  %v714_v62 = vmul.f32 1.442695, %v674_v57  ;;  %v718_v5 = vmul.f32 1.442695, %v676_v63  ;;  %vm634_vm5 = vcmp.gt.f32.partialorder %v5312_v38, 20.0 }
 0x123   : > { %4478 = vpow2.f32 %v702_v55  ;;  %v5355_v1 = vpop.f32.mrb[4].mxu0  ;;  %v5358_v3 = vpop.f32.mrb[4].mxu1  ;;  %v716_v10 = vmul.f32 1.442695, %v675_v2  ;;  %v720_v14 = vmul.f32 1.442695, %v677_v6 }
 0x124   : > { %8543 = vst [vmem:[#allocation8_spill] sm:$0xff] %v5355_v1  ;;  %4480 = vpow2.f32 %v700_v56  ;;  %8544 = vst [vmem:[#allocation9_spill] sm:$0xff] %v5358_v3  ;;  %v5360_v4 = vpop.f32.mrb[5].mxu0  ;;  %v5364_v7 = vmul.f32 100.0, %v5355_v1  ;;  %v5366_v8 = vpop.f32.mrb[5].mxu1  ;;  %v5371_v11 = vmul.f32 100.0, %v5358_v3 }
 0x125   : > { %8545 = vst [vmem:[#allocation10_spill] sm:$0xff] %v5360_v4  ;;  %4482 = vpow2.f32 %v704_v59  ;;  %8546 = vst [vmem:[#allocation11_spill] sm:$0xff] %v5366_v8  ;;  %v5368_v9 = vpop.f32.mrb[6].mxu0  ;;  %v5373_v12 = vpop.f32.mrb[6].mxu1  ;;  %v5381_v17 = vmul.f32 100.0, %v5360_v4  ;;  %v5388_v22 = vmul.f32 100.0, %v5366_v8 }
 0x126   : > { %8547 = vst [vmem:[#allocation12_spill] sm:$0xff] %v5368_v9  ;;  %4484 = vpow2.f32 %v714_v62  ;;  %8548 = vst [vmem:[#allocation13_spill] sm:$0xff] %v5373_v12  ;;  %v5375_v13 = vpop.f32.mrb[7].mxu0  ;;  %v682_v15 = vmin.f32 %v5364_v7, 20.0  ;;  %v5378_v16 = vpop.f32.mrb[7].mxu1  ;;  %v684_v19 = vmin.f32 %v5371_v11, 20.0 }
 0x127   : > { %8549 = vst [vmem:[#allocation14_spill] sm:$0xff] %v5375_v13  ;;  %4486 = vpow2.f32 %v718_v5  ;;  %8550 = vst [vmem:[#allocation15_spill] sm:$0xff] %v5381_v17  ;;  %v683_v21 = vmin.f32 %v5381_v17, 20.0  ;;  %v685_v32 = vmin.f32 %v5388_v22, 20.0  ;;  %v5403_v33 = vmul.f32 100.0, %v5368_v9 }
 0x128   : > { %4488 = vpow2.f32 %v716_v10  ;;  %v730_v18 = vmul.f32 1.442695, %v682_v15  ;;  %8551 = vst [vmem:[#allocation16_spill] sm:$0xff] %v5388_v22  ;;  %v734_v27 = vmul.f32 1.442695, %v684_v19  ;;  %v5407_v35 = vmul.f32 100.0, %v5373_v12 }
 0x129   : > { %4490 = vpow2.f32 %v720_v14  ;;  %v732_v31 = vmul.f32 1.442695, %v683_v21  ;;  %v5414_v51 = vmul.f32 100.0, %v5375_v13  ;;  %v5422_v59 = vmul.f32 1.442695, %v685_v32 }
 0x12a   : > { %4492 = vpow2.f32 %v730_v18  ;;  %vm642_vm6 = vcmp.gt.f32.partialorder %v5333_v47, 20.0  ;;  %vm636_vm8 = vcmp.gt.f32.partialorder %v5319_v41, 20.0  ;;  %vm644_vm9 = vcmp.gt.f32.partialorder %v5346_v58, 20.0 }
 0x12b   : > { %vm635_vm10 = vcmp.gt.f32.partialorder %v5322_v42, 20.0  ;;  %vm643_vm12 = vcmp.gt.f32.partialorder %v5349_v60, 20.0  ;;  %vm637_vm14 = vcmp.gt.f32.partialorder %v5330_v46, 20.0 }
 0x12c   : > { %v5384_v20 = vpop.eup %4476 }
 0x12d   : > { %v5390_v23 = vpop.eup %4478  ;;  %v762_v24 = vadd.f32 1.0, %v5384_v20  ;;  %v765_v45 = vmul.f32 -0.5, %v5384_v20  ;;  %v768_v50 = vand.u32 2147483647, %v5384_v20 }
 0x12e   : > { %v5393_v25 = vpop.eup %4480  ;;  %v780_v26 = vadd.f32 1.0, %v5390_v23  ;;  %v783_v54 = vmul.f32 -0.5, %v5390_v23  ;;  %v786_v55 = vand.u32 2147483647, %v5390_v23 }
 0x12f   : > { %v5396_v28 = vpop.eup %4482  ;;  %4494 = vlog2.f32 %v762_v24  ;;  %v771_v29 = vadd.f32 1.0, %v5393_v25  ;;  %v774_v57 = vmul.f32 -0.5, %v5393_v25  ;;  %v777_v2 = vand.u32 2147483647, %v5393_v25 }
 0x130   : > { %v5399_v30 = vpop.eup %4484  ;;  %4496 = vlog2.f32 %v780_v26  ;;  %v789_v34 = vadd.f32 1.0, %v5396_v28  ;;  %v792_v5 = vmul.f32 -0.5, %v5396_v28  ;;  %v766_v10 = vadd.f32 1.0, %v765_v45 }
 0x131   : > { %4498 = vlog2.f32 %v771_v29  ;;  %v5409_v36 = vpop.eup %4486  ;;  %v834_v56 = vadd.f32 1.0, %v5399_v30  ;;  %vm5430_vm1 = vcmp.lt.f32.partialorder %v768_v50, 0.0004427343  ;;  %v795_v15 = vand.u32 2147483647, %v5396_v28 }
 0x132   : > { %4500 = vpow2.f32 %v734_v27  ;;  %v5416_v53 = vpop.eup %4488  ;;  %v852_v6 = vadd.f32 1.0, %v5409_v36  ;;  %v784_v19 = vadd.f32 1.0, %v783_v54  ;;  %vm5436_vm2 = vcmp.lt.f32.partialorder %v786_v55, 0.0004427343 }
 0x133   : > { %4502 = vlog2.f32 %v789_v34  ;;  %v5425_v63 = vpop.eup %4490  ;;  %v843_v18 = vadd.f32 1.0, %v5416_v53  ;;  %v837_v24 = vmul.f32 -0.5, %v5399_v30  ;;  %v840_v27 = vand.u32 2147483647, %v5399_v30 }
 0x134   : > { %4504 = vpow2.f32 %v732_v31  ;;  %v5441_v26 = vpop.eup %4492  ;;  %v855_v29 = vmul.f32 -0.5, %v5409_v36  ;;  %v861_v31 = vadd.f32 1.0, %v5425_v63  ;;  %v775_v34 = vadd.f32 1.0, %v774_v57 }
 0x135   : > { %4506 = vlog2.f32 %v834_v56  ;;  %vm5446_vm3 = vcmp.lt.f32.partialorder %v777_v2, 0.0004427343  ;;  %v793_v50 = vadd.f32 1.0, %v792_v5  ;;  %v846_v54 = vmul.f32 -0.5, %v5416_v53 }
 0x136   : > { %4508 = vlog2.f32 %v852_v6  ;;  %vm5451_vm4 = vcmp.lt.f32.partialorder %v795_v15, 0.0004427343  ;;  %v858_v0 = vand.u32 2147483647, %v5409_v36  ;;  %v767_v57 = vmul.f32 %v5384_v20, %v766_v10 }
 0x137   : > { %4510 = vlog2.f32 %v843_v18  ;;  %v849_v62 = vand.u32 2147483647, %v5416_v53  ;;  %v864_v5 = vmul.f32 -0.5, %v5425_v63  ;;  %v838_v15 = vadd.f32 1.0, %v837_v24 }
 0x138   : > { %4512 = vlog2.f32 %v861_v31  ;;  %vm5465_vm7 = vcmp.lt.f32.partialorder %v840_v27, 0.0004427343  ;;  %v856_v31 = vadd.f32 1.0, %v855_v29  ;;  %v785_v12 = vmul.f32 %v5390_v23, %v784_v19 }
 0x139   : > { %v4495_v32 = vpop.eup %4494  ;;  %v847_v22 = vadd.f32 1.0, %v846_v54  ;;  %v776_v29 = vmul.f32 %v5393_v25, %v775_v34  ;;  %v794_v1 = vmul.f32 %v5396_v28, %v793_v50  ;;  %v867_v14 = vand.u32 2147483647, %v5425_v63 }
 0x13a   : > { %v4497_v55 = vpop.eup %4496  ;;  %v764_v56 = vmul.f32 0.6931472, %v4495_v32  ;;  %vm5492_vm11 = vcmp.lt.f32.partialorder %v858_v0, 0.0004427343  ;;  %vm5497_vm13 = vcmp.lt.f32.partialorder %v849_v62, 0.0004427343  ;;  %v857_v0 = vmul.f32 %v5409_v36, %v856_v31 }
 0x13b   : > { %v4499_v18 = vpop.eup %4498  ;;  %v782_v2 = vmul.f32 0.6931472, %v4497_v55  ;;  %v5460_v8 = vpop.f32.mrb[16].mxu0  ;;  %v865_v28 = vadd.f32 1.0, %v864_v5  ;;  %v848_v5 = vmul.f32 %v5416_v53, %v847_v22  ;;  %vm5516_vm15 = vcmp.lt.f32.partialorder %v867_v14, 0.0004427343 }
 0x13c   : > { %v5462_v32 = vpop.eup %4500  ;;  %v5469_v4 = vpop.f32.mrb[16].mxu1  ;;  %v770_v55 = vsel %vm5430_vm1, %v767_v57, %v764_v56  ;;  %v773_v9 = vmul.f32 0.6931472, %v4499_v18  ;;  %vm645_vm1 = vcmp.gt.f32.partialorder %v5352_v61, 20.0  ;;  %v912_v36 = vand.u32 2147483647, %v5441_v26 }
 0x13d   : > { %v5471_v20 = vpop.f32.mrb[17].mxu0  ;;  %v4503_v10 = vpop.eup %4502  ;;  %v788_v54 = vsel %vm5436_vm2, %v785_v12, %v782_v2  ;;  %v1050_v50 = vmul.f32 0.01, %v770_v55  ;;  %v839_v12 = vmul.f32 %v5399_v30, %v838_v15 }
 0x13e   : > { %v5476_v17 = vpop.f32.mrb[17].mxu1  ;;  %v5478_v24 = vpop.f32.mrb[18].mxu0  ;;  %v791_v3 = vmul.f32 0.6931472, %v4503_v10  ;;  %v779_v62 = vsel %vm5446_vm3, %v776_v29, %v773_v9  ;;  %v906_v10 = vadd.f32 1.0, %v5441_v26  ;;  %v866_v9 = vmul.f32 %v5425_v63, %v865_v28 }
 0x13f   : > { %v5480_v27 = vpop.eup %4504  ;;  %v5487_v23 = vpop.f32.mrb[18].mxu1  ;;  %v1082_v53 = vsel %vm634_vm5, %v5309_v37, %v1050_v50  ;;  %v1051_v13 = vmul.f32 0.01, %v779_v62  ;;  %vm5592_vm2 = vcmp.lt.f32.partialorder %v912_v36, 0.0004427343  ;;  %vm650_vm5 = vcmp.gt.f32.partialorder %v5364_v7, 20.0 }
 0x140   : > { %v4507_v19 = vpop.eup %4506  ;;  %v5501_v34 = vpop.f32.mrb[19].mxu0  ;;  %v797_v2 = vsel %vm5451_vm4, %v794_v1, %v791_v3  ;;  %v924_v1 = vadd.f32 1.0, %v5462_v32  ;;  %4514 = vlog2.f32 %v906_v10  ;;  %v692_v10 = vmin.f32 %v5407_v35, 20.0  ;;  %v8576_v7 = vld [vmem:[#allocation8_spill] sm:$0xff] }
 0x141   : > { %8566 = vst [vmem:[#allocation17_spill] sm:$0xff] %v5501_v34  ;;  %v836_v21 = vmul.f32 0.6931472, %v4507_v19  ;;  %v5506_v18 = vpop.f32.mrb[19].mxu1  ;;  %v4509_v57 = vpop.eup %4508  ;;  %v1052_v34 = vmul.f32 0.01, %v788_v54 }
 0x142   : > { %v4511_v55 = vpop.eup %4510  ;;  %v854_v15 = vmul.f32 0.6931472, %v4509_v57  ;;  %v1053_v6 = vmul.f32 0.01, %v797_v2  ;;  %4516 = vlog2.f32 %v924_v1  ;;  %v1083_v2 = vsel %vm635_vm10, %v5316_v40, %v1051_v13 }
 0x143   : > { %v842_v30 = vsel %vm5465_vm7, %v839_v12, %v836_v21  ;;  %v845_v45 = vmul.f32 0.6931472, %v4511_v55  ;;  %v5522_v3 = vpop.f32.mrb[20].mxu0  ;;  %v4513_v22 = vpop.eup %4512  ;;  %v915_v12 = vadd.f32 1.0, %v5480_v27  ;;  %4518 = vpow2.f32 %v5422_v59 }
 0x144   : > { %v1058_v31 = vmul.f32 0.01, %v842_v30  ;;  %v860_v29 = vsel %vm5492_vm11, %v857_v0, %v854_v15  ;;  %v5529_v14 = vpop.f32.mrb[20].mxu1  ;;  %v5531_v19 = vpop.f32.mrb[21].mxu0  ;;  %v863_v21 = vmul.f32 0.6931472, %v4513_v22 }
 0x145   : > { %v1060_v54 = vmul.f32 0.01, %v860_v29  ;;  %v851_v28 = vsel %vm5497_vm13, %v848_v5, %v845_v45  ;;  %v5538_v38 = vpop.f32.mrb[21].mxu1  ;;  %v5540_v37 = vpop.f32.mrb[22].mxu0  ;;  %4520 = vlog2.f32 %v915_v12  ;;  %v8569_v40 = vmin.f32 %v5403_v33, 20.0 }
 0x146   : > { %v1090_v63 = vsel %vm642_vm6, %v5326_v44, %v1058_v31  ;;  %v1059_v56 = vmul.f32 0.01, %v851_v28  ;;  %v5543_v0 = vpop.f32.mrb[22].mxu1  ;;  %v5545_v57 = vpop.f32.mrb[23].mxu0  ;;  %v1084_v44 = vsel %vm636_vm8, %v5314_v39, %v1052_v34  ;;  %v869_v25 = vsel %vm5516_vm15, %v866_v9, %v863_v21 }
 0x147   : > { %v1114_v50 = vpack.c.bf16 %v1090_v63, %v1082_v53  ;;  %v1092_v47 = vsel %vm644_vm9, %v5335_v48, %v1060_v54  ;;  %v5555_v62 = vpop.f32.mrb[23].mxu1  ;;  %v1061_v39 = vmul.f32 0.01, %v869_v25  ;;  %v1085_v48 = vsel %vm637_vm14, %v5324_v43, %v1053_v6 }
 0x148   : > { %v1116_v5 = vpack.c.bf16 %v1092_v47, %v1084_v44  ;;  %v1091_v41 = vsel %vm643_vm12, %v5337_v49, %v1059_v56  ;;  %v746_v42 = vmul.f32 1.442695, %v8569_v40  ;;  %v691_v49 = vmin.f32 %v5414_v51, 20.0 }
 0x149   : > { %v1115_v58 = vpack.c.bf16 %v1091_v41, %v1083_v2  ;;  %v1093_v34 = vsel %vm645_vm1, %v5341_v52, %v1061_v39  ;;  %v5574_v55 = vmul.f32 100.0, %v5378_v16  ;;  %v909_v43 = vmul.f32 -0.5, %v5441_v26 }
 0x14a   : > { %v1117_v60 = vpack.c.bf16 %v1093_v34, %v1085_v48  ;;  %4522 = vpow2.f32 %v746_v42  ;;  %v750_v46 = vmul.f32 1.442695, %v692_v10  ;;  %v748_v61 = vmul.f32 1.442695, %v691_v49  ;;  %v4515_v45 = vpop.eup %4514 }
 0x14b   : > { %1170 = vmatprep.subr.bf16.mxu0 %v1115_v58  ;;  %v693_v52 = vmin.f32 %v5574_v55, 20.0  ;;  %v5579_v59 = vmul.f32 100.0, %v5460_v8  ;;  %v927_v30 = vmul.f32 -0.5, %v5462_v32  ;;  %v5583_v15 = vmul.f32 100.0, %v5469_v4 }
 0x14c   : > { %1171 = vmatpush1.bf16.msra.mxu0 %v1114_v50  ;;  %1223 = vmatprep.subr.bf16.mxu1 %v1117_v60  ;;  %4524 = vpow2.f32 %v750_v46  ;;  %v910_v9 = vadd.f32 1.0, %v909_v43  ;;  %v4517_v53 = vpop.eup %4516  ;;  %v930_v13 = vand.u32 2147483647, %v5462_v32  ;;  %v918_v6 = vmul.f32 -0.5, %v5480_v27 }
 0x14d   : > { %1224 = vmatpush1.bf16.msra.mxu1 %v1116_v5  ;;  %4526 = vpow2.f32 %v748_v61  ;;  %v752_v31 = vmul.f32 1.442695, %v693_v52  ;;  %v670_v1 = vmin.f32 %v5579_v59, 20.0  ;;  %v672_v22 = vmin.f32 %v5583_v15, 20.0  ;;  %v5590_v54 = vpop.eup %4518 }
 0x14e   : > { %v928_v29 = vadd.f32 1.0, %v927_v30  ;;  %v908_v28 = vmul.f32 0.6931472, %v4515_v45  ;;  %v911_v12 = vmul.f32 %v5441_v26, %v910_v9  ;;  %v926_v44 = vmul.f32 0.6931472, %v4517_v53 }
 0x14f   : > { %4528 = vpow2.f32 %v752_v31  ;;  %v706_v63 = vmul.f32 1.442695, %v670_v1  ;;  %v710_v50 = vmul.f32 1.442695, %v672_v22  ;;  %v4521_v56 = vpop.eup %4520  ;;  %v933_v47 = vadd.f32 1.0, %v5590_v54 }
 0x150   : > { %v5599_v25 = vmul.f32 100.0, %v5478_v24  ;;  %vm5601_vm3 = vcmp.lt.f32.partialorder %v930_v13, 0.0004427343  ;;  %v919_v5 = vadd.f32 1.0, %v918_v6  ;;  %v5606_v41 = vmul.f32 100.0, %v5471_v20 }
 0x151   : > { %4530 = vpow2.f32 %v706_v63  ;;  %v929_v48 = vmul.f32 %v5462_v32, %v928_v29  ;;  %v921_v26 = vand.u32 2147483647, %v5480_v27  ;;  %v5613_v58 = vmul.f32 100.0, %v5476_v17 }
 0x152   : > { %4532 = vlog2.f32 %v933_v47  ;;  %v914_v34 = vsel %vm5592_vm2, %v911_v12, %v908_v28  ;;  %v917_v40 = vmul.f32 0.6931472, %v4521_v56  ;;  %v678_v32 = vmin.f32 %v5599_v25, 20.0  ;;  %v8577_v12 = vld [vmem:[#allocation9_spill] sm:$0xff] }
 0x153   : > { %4534 = vpow2.f32 %v710_v50  ;;  %v932_v60 = vsel %vm5601_vm3, %v929_v48, %v926_v44  ;;  %v920_v43 = vmul.f32 %v5480_v27, %v919_v5  ;;  %v671_v61 = vmin.f32 %v5606_v41, 20.0 }
 0x154   : > { %v5608_v39 = vpop.eup %4522  ;;  %v1066_v52 = vmul.f32 0.01, %v914_v34  ;;  %vm5628_vm4 = vcmp.lt.f32.partialorder %v921_v26, 0.0004427343  ;;  %v673_v31 = vmin.f32 %v5613_v58, 20.0  ;;  %v5641_v53 = vmul.f32 100.0, %v5487_v23 }
 0x155   : > { %v978_v42 = vadd.f32 1.0, %v5608_v39  ;;  %v1068_v9 = vmul.f32 0.01, %v932_v60  ;;  %v923_v27 = vsel %vm5628_vm4, %v920_v43, %v917_v40  ;;  %v981_v1 = vmul.f32 -0.5, %v5608_v39 }
 0x156   : > { %v5618_v10 = vpop.eup %4524  ;;  %v722_v22 = vmul.f32 1.442695, %v678_v32  ;;  %vm652_vm6 = vcmp.gt.f32.partialorder %v5371_v11, 20.0  ;;  %v936_v13 = vmul.f32 -0.5, %v5590_v54  ;;  %v708_v29 = vmul.f32 1.442695, %v671_v61 }
 0x157   : > { %v5623_v49 = vpop.eup %4526  ;;  %4536 = vlog2.f32 %v978_v42  ;;  %v996_v46 = vadd.f32 1.0, %v5618_v10  ;;  %v5647_v63 = vsel %vm650_vm5, %v8576_v7, %v1066_v52  ;;  %v939_v28 = vand.u32 2147483647, %v5590_v54  ;;  %v8580_v52 = vld [vmem:[#allocation15_spill] sm:$0xff] }
 0x158   : > { %v987_v36 = vadd.f32 1.0, %v5623_v49  ;;  %v999_v21 = vmul.f32 -0.5, %v5618_v10  ;;  %v712_v50 = vmul.f32 1.442695, %v673_v31  ;;  %v5654_v44 = vsel %vm652_vm6, %v8577_v12, %v1068_v9 }
 0x159   : > { %v5634_v45 = vpop.eup %4528  ;;  %4538 = vlog2.f32 %v996_v46  ;;  %v5656_v47 = vmul.f32 0.01, %v923_v27  ;;  %v990_v11 = vmul.f32 -0.5, %v5623_v49  ;;  %vm658_vm7 = vcmp.gt.f32.partialorder %v5403_v33, 20.0 }
 0x15a   : > { %4540 = vlog2.f32 %v987_v36  ;;  %v1005_v6 = vadd.f32 1.0, %v5634_v45  ;;  %v982_v5 = vadd.f32 1.0, %v981_v1  ;;  %v680_v26 = vmin.f32 %v5641_v53, 20.0 }
 0x15b   : > { %v5651_v56 = vpop.eup %4530  ;;  %v937_v40 = vadd.f32 1.0, %v936_v13  ;;  %v984_v42 = vand.u32 2147483647, %v5608_v39  ;;  %v1002_v60 = vand.u32 2147483647, %v5618_v10  ;;  %vm660_vm9 = vcmp.gt.f32.partialorder %v5407_v35, 20.0 }
 0x15c   : > { %4542 = vlog2.f32 %v1005_v6  ;;  %v4533_v2 = vpop.eup %4532  ;;  %v798_v48 = vadd.f32 1.0, %v5651_v56  ;;  %vm5666_vm8 = vcmp.lt.f32.partialorder %v939_v28, 0.0004427343  ;;  %v1000_v43 = vadd.f32 1.0, %v999_v21  ;;  %v8583_v21 = vld [vmem:[#allocation16_spill] sm:$0xff] }
 0x15d   : > { %4544 = vpow2.f32 %v722_v22  ;;  %v5662_v34 = vpop.eup %4534  ;;  %v1008_v46 = vmul.f32 -0.5, %v5634_v45  ;;  %vm651_vm10 = vcmp.gt.f32.partialorder %v8580_v52, 20.0  ;;  %vm659_vm11 = vcmp.gt.f32.partialorder %v5414_v51, 20.0 }
 0x15e   : > { %4546 = vpow2.f32 %v708_v29  ;;  %v991_v30 = vadd.f32 1.0, %v990_v11  ;;  %v993_v36 = vand.u32 2147483647, %v5623_v49  ;;  %v816_v31 = vadd.f32 1.0, %v5662_v34 }
 0x15f   : > { %4548 = vpow2.f32 %v712_v50  ;;  %v935_v9 = vmul.f32 0.6931472, %v4533_v2  ;;  %v983_v1 = vmul.f32 %v5608_v39, %v982_v5  ;;  %v726_v22 = vmul.f32 1.442695, %v680_v26 }
 0x160   : > { %4550 = vlog2.f32 %v798_v48  ;;  %v938_v6 = vmul.f32 %v5590_v54, %v937_v40  ;;  %vm985_vm12 = vcmp.lt.f32.partialorder %v984_v42, 0.0004427343  ;;  %vm5678_vm13 = vcmp.lt.f32.partialorder %v1002_v60, 0.0004427343  ;;  %v8584_v42 = vld [vmem:[#allocation12_spill] sm:$0xff] }
 0x161   : > { %v4537_v61 = vpop.eup %4536  ;;  %v1011_v7 = vand.u32 2147483647, %v5634_v45  ;;  %vm653_vm14 = vcmp.gt.f32.partialorder %v8583_v21, 20.0  ;;  %v1001_v11 = vmul.f32 %v5618_v10, %v1000_v43  ;;  %vm661_vm15 = vcmp.gt.f32.partialorder %v5574_v55, 20.0 }
 0x162   : > { %v980_v27 = vmul.f32 0.6931472, %v4537_v61  ;;  %v1009_v39 = vadd.f32 1.0, %v1008_v46  ;;  %v992_v54 = vmul.f32 %v5623_v49, %v991_v30  ;;  %4552 = vlog2.f32 %v816_v31 }
 0x163   : > { %v4539_v13 = vpop.eup %4538  ;;  %v941_v48 = vsel %vm5666_vm8, %v938_v6, %v935_v9  ;;  %vm994_vm1 = vcmp.lt.f32.partialorder %v993_v36, 0.0004427343  ;;  %4554 = vpow2.f32 %v726_v22  ;;  %v801_v46 = vmul.f32 -0.5, %v5651_v56 }
 0x164   : > { %v4541_v28 = vpop.eup %4540  ;;  %v986_v50 = vsel %vm985_vm12, %v983_v1, %v980_v27  ;;  %v998_v12 = vmul.f32 0.6931472, %v4539_v13  ;;  %v1010_v31 = vmul.f32 %v5634_v45, %v1009_v39  ;;  %v1069_v36 = vmul.f32 0.01, %v941_v48  ;;  %v8585_v27 = vld [vmem:[#allocation13_spill] sm:$0xff]  ;;  %v8586_v13 = vld [vmem:[#allocation10_spill] sm:$0xff] }
 0x165   : > { %v1074_v2 = vmul.f32 0.01, %v986_v50  ;;  %v989_v5 = vmul.f32 0.6931472, %v4541_v28  ;;  %vm1012_vm2 = vcmp.lt.f32.partialorder %v1011_v7, 0.0004427343 }
 0x166   : > { %v1004_v26 = vsel %vm5678_vm13, %v1001_v11, %v998_v12  ;;  %v4543_v40 = vpop.eup %4542  ;;  %v8587_v45 = vld [vmem:[#allocation14_spill] sm:$0xff]  ;;  %v804_v7 = vand.u32 2147483647, %v5651_v56  ;;  %v8588_v11 = vld [vmem:[#allocation17_spill] sm:$0xff]  ;;  %v5738_v55 = vmul.f32 100.0, %v5506_v18  ;;  %vm638_vm3 = vcmp.gt.f32.partialorder %v5579_v59, 20.0 }
 0x167   : > { %v1106_v10 = vsel %vm658_vm7, %v8584_v42, %v1074_v2  ;;  %v1076_v60 = vmul.f32 0.01, %v1004_v26  ;;  %v995_v43 = vsel %vm994_vm1, %v992_v54, %v989_v5  ;;  %v5695_v61 = vpop.eup %4544  ;;  %v1007_v30 = vmul.f32 0.6931472, %v4543_v40  ;;  %v5732_v26 = vld [vmem:[%s8473_s1 + $0x20] sm:$0xff]  }
 0x168   : > { %v1122_v49 = vpack.c.bf16 %v1106_v10, %v5647_v63  ;;  %v1075_v32 = vmul.f32 0.01, %v995_v43  ;;  %v5699_v9 = vpop.eup %4546  ;;  %v870_v1 = vadd.f32 1.0, %v5695_v61  ;;  %v1099_v63 = vsel %vm651_vm10, %v8586_v13, %v5656_v47 }
 0x169   : > { %v1108_v33 = vsel %vm660_vm9, %v8585_v27, %v1076_v60  ;;  %v5705_v22 = vpop.eup %4548  ;;  %v1013_v28 = vsel %vm1012_vm2, %v1010_v31, %v1007_v30  ;;  %v5717_v39 = vmul.f32 100.0, %v8588_v11  ;;  %v802_v2 = vadd.f32 1.0, %v801_v46 }
 0x16a   : > { %v1124_v6 = vpack.c.bf16 %v1108_v33, %v5654_v44  ;;  %v1107_v29 = vsel %vm659_vm11, %v8587_v45, %v1075_v32  ;;  %v4551_v50 = vpop.eup %4550  ;;  %v1077_v12 = vmul.f32 0.01, %v1013_v28  ;;  %v819_v5 = vmul.f32 -0.5, %v5662_v34  ;;  %v8589_v44 = vld [vmem:[#allocation11_spill] sm:$0xff] }
 0x16b   : > { %v1123_v35 = vpack.c.bf16 %v1107_v29, %v1099_v63  ;;  %v807_v47 = vadd.f32 1.0, %v5699_v9  ;;  %4556 = vlog2.f32 %v870_v1  ;;  %v1101_v51 = vsel %vm653_vm14, %v8589_v44, %v1069_v36 }
 0x16c   : > { %v1109_v52 = vsel %vm661_vm15, %v5378_v16, %v1077_v12  ;;  %v822_v54 = vand.u32 2147483647, %v5662_v34  ;;  %v810_v48 = vmul.f32 -0.5, %v5699_v9  ;;  %v800_v42 = vmul.f32 0.6931472, %v4551_v50  ;;  %v4553_v21 = vpop.eup %4552 }
 0x16d   : > { %1172 = vmatprep.subr.bf16.mxu0 %v1123_v35  ;;  %v1125_v40 = vpack.c.bf16 %v1109_v52, %v1101_v51  ;;  %v825_v10 = vadd.f32 1.0, %v5705_v22  ;;  %v873_v60 = vmul.f32 -0.5, %v5695_v61  ;;  %v679_v16 = vmin.f32 %v5717_v39, 20.0  ;;  %v5740_v43 = vpop.eup %4554 }
 0x16e   : > { %1173 = vmatpush1.bf16.msra.mxu0 %v1122_v49  ;;  %v803_v46 = vmul.f32 %v5651_v56, %v802_v2  ;;  %vm5744_vm4 = vcmp.lt.f32.partialorder %v804_v7, 0.0004427343  ;;  %v820_v30 = vadd.f32 1.0, %v819_v5  ;;  %4558 = vlog2.f32 %v807_v47  ;;  %v5781_v5 = vld [vmem:[%s8473_s1 + $0x28] sm:$0xff]  }
 0x16f   : > { %1225 = vmatprep.subr.bf16.mxu1 %v1125_v40  ;;  %vm5748_vm5 = vcmp.lt.f32.partialorder %v822_v54, 0.0004427343  ;;  %v811_v31 = vadd.f32 1.0, %v810_v48  ;;  %v813_v36 = vand.u32 2147483647, %v5699_v9  ;;  %v888_v27 = vadd.f32 1.0, %v5740_v43 }
 0x170   : > { %1226 = vmatpush1.bf16.msra.mxu1 %v1124_v6  ;;  %v806_v56 = vsel %vm5744_vm4, %v803_v46, %v800_v42  ;;  %4560 = vlog2.f32 %v825_v10  ;;  %v724_v33 = vmul.f32 1.442695, %v679_v16  ;;  %v681_v1 = vmin.f32 %v5738_v55, 20.0 }
 0x171   : > { %4265 = vmatmul.mubr.msk.bf16.vlgmr.msra.gmra.mrb[32].mxu0 %vm297_vm0, %v5732_v26  ;;  %v8594_v13 = vmov 0   ;;  %v818_v63 = vmul.f32 0.6931472, %v4553_v21  ;;  %vm646_vm6 = vcmp.gt.f32.partialorder %v5599_v25, 20.0  ;;  %v874_v45 = vadd.f32 1.0, %v873_v60 }
 0x172   : > { %1212 = vmatprep.mubr.bf16.mxu0 %v8594_v13  ;;  %v876_v29 = vand.u32 2147483647, %v5695_v61  ;;  %4562 = vlog2.f32 %v888_v27  ;;  %v728_v6 = vmul.f32 1.442695, %v681_v1  ;;  %v5763_v28 = vmul.f32 100.0, %v5522_v3 }
 0x173   : > { %4564 = vpow2.f32 %v724_v33  ;;  %v5766_v50 = vmul.f32 100.0, %v5529_v14  ;;  %4267 = vmatmul.mubr.msk.bf16.vlgmr.msra.gmra.mrb[32].mxu1 %vm297_vm0, %v5732_v26  ;;  %v1054_v35 = vmul.f32 0.01, %v806_v56  ;;  %v821_v12 = vmul.f32 %v5662_v34, %v820_v30 }
 0x174   : > { %v5772_v7 = vmul.f32 %v5699_v9, %v811_v31  ;;  %v5775_v2 = vmul.f32 100.0, %v5531_v19  ;;  %1265 = vmatprep.mubr.bf16.mxu1 %v8594_v13  ;;  %v828_v44 = vmul.f32 -0.5, %v5705_v22  ;;  %v891_v51 = vmul.f32 -0.5, %v5740_v43 }
 0x175   : > { %v4557_v47 = vpop.eup %4556  ;;  %4566 = vpow2.f32 %v728_v6  ;;  %v686_v34 = vmin.f32 %v5763_v28, 20.0  ;;  %v875_v54 = vmul.f32 %v5695_v61, %v874_v45  ;;  %v688_v48 = vmin.f32 %v5766_v50, 20.0 }
 0x176   : > { %v872_v52 = vmul.f32 0.6931472, %v4557_v47  ;;  %v5789_v40 = vmul.f32 100.0, %v5538_v38  ;;  %v824_v42 = vsel %vm5748_vm5, %v821_v12, %v818_v63  ;;  %vm877_vm7 = vcmp.lt.f32.partialorder %v876_v29, 0.0004427343 }
 0x177   : > { %v738_v10 = vmul.f32 1.442695, %v686_v34  ;;  %v687_v21 = vmin.f32 %v5775_v2, 20.0  ;;  %v5797_v60 = vsel %vm638_vm3, %v5460_v8, %v1054_v35  ;;  %v742_v46 = vmul.f32 1.442695, %v688_v48 }
 0x178   : > { %v878_v16 = vsel %vm877_vm7, %v875_v54, %v872_v52  ;;  %v5800_v61 = vmul.f32 100.0, %v5540_v37  ;;  %v4559_v32 = vpop.eup %4558  ;;  %vm640_vm8 = vcmp.gt.f32.partialorder %v5583_v15, 20.0  ;;  %vm648_vm9 = vcmp.gt.f32.partialorder %v5641_v53, 20.0 }
 0x179   : > { %4266 = vmatmul.mubr.msk.bf16.gmra.mrb[36].mxu0 %vm297_vm0, %v5781_v5  ;;  %v1062_v30 = vmul.f32 0.01, %v878_v16  ;;  %v892_v49 = vadd.f32 1.0, %v891_v51  ;;  %4568 = vpow2.f32 %v738_v10  ;;  %v740_v31 = vmul.f32 1.442695, %v687_v21 }
 0x17a   : > { %1308 = vmatprep.mubr.bf16.mxu0 %v8594_v13  ;;  %v894_v8 = vand.u32 2147483647, %v5740_v43  ;;  %4570 = vpow2.f32 %v742_v46  ;;  %v689_v59 = vmin.f32 %v5789_v40, 20.0  ;;  %v694_v27 = vmin.f32 %v5800_v61, 20.0  ;;  %v4561_v56 = vpop.eup %4560 }
 0x17b   : > { %v5813_v33 = vsel %vm646_vm6, %v5478_v24, %v1062_v30  ;;  %4572 = vpow2.f32 %v740_v31  ;;  %v5816_v1 = vmul.f32 100.0, %v5543_v0  ;;  %v5819_v63 = vmul.f32 100.0, %v5545_v57  ;;  %4268 = vmatmul.mubr.msk.bf16.gmra.mrb[36].mxu1 %vm297_vm0, %v5781_v5 }
 0x17c   : > { %v4563_v45 = vpop.eup %4562  ;;  %v809_v29 = vmul.f32 0.6931472, %v4559_v32  ;;  %v829_v6 = vadd.f32 1.0, %v828_v44  ;;  %v1118_v35 = vpack.c.bf16 %v5813_v33, %v5797_v60  ;;  %v754_v12 = vmul.f32 1.442695, %v694_v27  ;;  %1361 = vmatprep.mubr.bf16.mxu1 %v8594_v13 }
 0x17d   : > { %v5826_v24 = vpop.eup %4564  ;;  %v1056_v25 = vmul.f32 0.01, %v824_v42  ;;  %v890_v47 = vmul.f32 0.6931472, %v4563_v45  ;;  %v893_v51 = vmul.f32 %v5740_v43, %v892_v49  ;;  %v696_v34 = vmin.f32 %v5816_v1, 20.0 }
 0x17e   : > { %vm895_vm10 = vcmp.lt.f32.partialorder %v894_v8, 0.0004427343  ;;  %v879_v52 = vadd.f32 1.0, %v5826_v24  ;;  %v744_v54 = vmul.f32 1.442695, %v689_v59  ;;  %4574 = vpow2.f32 %v754_v12 }
 0x17f   : > { %v5831_v44 = vpop.eup %4566  ;;  %v831_v48 = vand.u32 2147483647, %v5705_v22  ;;  %v896_v10 = vsel %vm895_vm10, %v893_v51, %v890_v47  ;;  %v758_v21 = vmul.f32 1.442695, %v696_v34  ;;  %v695_v16 = vmin.f32 %v5819_v63, 20.0 }
 0x180   : > { %vm5837_vm11 = vcmp.lt.f32.partialorder %v813_v36, 0.0004427343  ;;  %v827_v43 = vmul.f32 0.6931472, %v4561_v56  ;;  %v1064_v46 = vmul.f32 0.01, %v896_v10  ;;  %4576 = vlog2.f32 %v879_v52 }
 0x181   : > { %v815_v32 = vsel %vm5837_vm11, %v5772_v7, %v809_v29  ;;  %v830_v30 = vmul.f32 %v5705_v22, %v829_v6  ;;  %v897_v49 = vadd.f32 1.0, %v5831_v44  ;;  %4578 = vpow2.f32 %v758_v21  ;;  %v5877_v29 = vld [vmem:[%s8473_s1 + $0x70] sm:$0xff]  }
 0x182   : > { %v5849_v9 = vsel %vm640_vm8, %v5469_v4, %v1056_v25  ;;  %v5854_v36 = vsel %vm648_vm9, %v5487_v23, %v1064_v46  ;;  %4580 = vpow2.f32 %v744_v54  ;;  %v756_v31 = vmul.f32 1.442695, %v695_v16  ;;  %8599 = vst [vmem:[#allocation8_spill] sm:$0xff] %v5877_v29 }
 0x183   : > { %v5856_v8 = vpop.eup %4568  ;;  %vm5858_vm12 = vcmp.lt.f32.partialorder %v831_v48, 0.0004427343  ;;  %v1120_v22 = vpack.c.bf16 %v5854_v36, %v5849_v9  ;;  %v882_v15 = vmul.f32 -0.5, %v5826_v24  ;;  %4582 = vlog2.f32 %v897_v49 }
 0x184   : > { %v5865_v4 = vpop.eup %4570  ;;  %v833_v23 = vsel %vm5858_vm12, %v830_v30, %v827_v43  ;;  %v942_v53 = vadd.f32 1.0, %v5856_v8  ;;  %4584 = vpow2.f32 %v756_v31  ;;  %v1055_v27 = vmul.f32 0.01, %v815_v32 }
 0x185   : > { %v5870_v59 = vpop.eup %4572  ;;  %v900_v56 = vmul.f32 -0.5, %v5831_v44  ;;  %v960_v45 = vadd.f32 1.0, %v5865_v4  ;;  %vm639_vm13 = vcmp.gt.f32.partialorder %v5606_v41, 20.0  ;;  %v1057_v12 = vmul.f32 0.01, %v833_v23 }
 0x186   : > { %4586 = vlog2.f32 %v942_v53  ;;  %v951_v6 = vadd.f32 1.0, %v5870_v59  ;;  %v883_v25 = vadd.f32 1.0, %v882_v15  ;;  %v885_v47 = vand.u32 2147483647, %v5826_v24 }
 0x187   : > { %4588 = vlog2.f32 %v960_v45  ;;  %vm641_vm14 = vcmp.gt.f32.partialorder %v5613_v58, 20.0  ;;  %vm647_vm15 = vcmp.gt.f32.partialorder %v5717_v39, 20.0  ;;  %v5887_v34 = vmul.f32 100.0, %v5555_v62 }
 0x188   : > { %v5882_v51 = vpop.eup %4574  ;;  %v8491_v52 = vunpack.c.l.bf16 %v5877_v29  ;;  %v1087_v41 = vsel %vm639_vm13, %v5471_v20, %v1055_v27  ;;  %v901_v54 = vadd.f32 1.0, %v900_v56  ;;  %v903_v48 = vand.u32 2147483647, %v5831_v44  ;;  %v5941_v27 = vld [vmem:[%s8473_s1 + $0x78] sm:$0xff]  }
 0x189   : > { %v948_v10 = vand.u32 2147483647, %v5856_v8  ;;  %vm649_vm1 = vcmp.gt.f32.partialorder %v5738_v55, 20.0  ;;  %v945_v16 = vmul.f32 -0.5, %v5856_v8  ;;  %v963_v58 = vmul.f32 -0.5, %v5865_v4  ;;  %8606 = vst [vmem:[#allocation9_spill] sm:$0xff] %v5941_v27 }
 0x18a   : > { %v4577_v21 = vpop.eup %4576  ;;  %4590 = vlog2.f32 %v951_v6  ;;  %v1014_v42 = vadd.f32 1.0, %v5882_v51  ;;  %v1089_v46 = vsel %vm641_vm14, %v5476_v17, %v1057_v12  ;;  %v884_v32 = vmul.f32 %v5826_v24, %v883_v25 }
 0x18b   : > { %v5897_v43 = vpop.eup %4578  ;;  %v881_v20 = vmul.f32 0.6931472, %v4577_v21  ;;  %vm886_vm2 = vcmp.lt.f32.partialorder %v885_v47, 0.0004427343  ;;  %v966_v49 = vand.u32 2147483647, %v5865_v4  ;;  %v902_v53 = vmul.f32 %v5831_v44, %v901_v54 }
 0x18c   : > { %v5901_v30 = vpop.eup %4580  ;;  %4592 = vlog2.f32 %v1014_v42  ;;  %v1032_v31 = vadd.f32 1.0, %v5897_v43  ;;  %v697_v7 = vmin.f32 %v5887_v34, 20.0  ;;  %vm5907_vm3 = vcmp.lt.f32.partialorder %v903_v48, 0.0004427343 }
 0x18d   : > { %v4583_v15 = vpop.eup %4582  ;;  %v887_v23 = vsel %vm886_vm2, %v884_v32, %v881_v20  ;;  %vm5911_vm4 = vcmp.lt.f32.partialorder %v948_v10, 0.0004427343  ;;  %v946_v6 = vadd.f32 1.0, %v945_v16  ;;  %v964_v12 = vadd.f32 1.0, %v963_v58 }
 0x18e   : > { %v5915_v24 = vpop.eup %4584  ;;  %v1063_v56 = vmul.f32 0.01, %v887_v23  ;;  %v899_v45 = vmul.f32 0.6931472, %v4583_v15  ;;  %v954_v25 = vmul.f32 -0.5, %v5870_v59  ;;  %v1017_v47 = vmul.f32 -0.5, %v5882_v51 }
 0x18f   : > { %4594 = vlog2.f32 %v1032_v31  ;;  %v1023_v44 = vadd.f32 1.0, %v5915_v24  ;;  %vm5925_vm5 = vcmp.lt.f32.partialorder %v966_v49, 0.0004427343  ;;  %v969_v16 = vadd.f32 1.0, %v5901_v30 }
 0x190   : > { %v4587_v54 = vpop.eup %4586  ;;  %v1095_v48 = vsel %vm647_vm15, %v8588_v11, %v1063_v56  ;;  %v905_v10 = vsel %vm5907_vm3, %v902_v53, %v899_v45  ;;  %v957_v31 = vand.u32 2147483647, %v5870_v59  ;;  %v947_v15 = vmul.f32 %v5856_v8, %v946_v6 }
 0x191   : > { %v4589_v58 = vpop.eup %4588  ;;  %v1119_v42 = vpack.c.bf16 %v1095_v48, %v1087_v41  ;;  %v1065_v20 = vmul.f32 0.01, %v905_v10  ;;  %v944_v32 = vmul.f32 0.6931472, %v4587_v54  ;;  %v965_v39 = vmul.f32 %v5865_v4, %v964_v12 }
 0x192   : > { %v1035_v11 = vmul.f32 -0.5, %v5897_v43  ;;  %4596 = vlog2.f32 %v1023_v44  ;;  %vm654_vm6 = vcmp.gt.f32.partialorder %v5763_v28, 20.0  ;;  %v955_v23 = vadd.f32 1.0, %v954_v25 }
 0x193   : > { %v1097_v49 = vsel %vm649_vm1, %v5506_v18, %v1065_v20  ;;  %v1018_v53 = vadd.f32 1.0, %v1017_v47  ;;  %v760_v41 = vmul.f32 1.442695, %v697_v7  ;;  %1276 = vmatprep.subr.bf16.mxu0 %v1119_v42  ;;  %v962_v56 = vmul.f32 0.6931472, %v4589_v58 }
 0x194   : > { %v4591_v8 = vpop.eup %4590  ;;  %v1121_v4 = vpack.c.bf16 %v1097_v49, %v1089_v46  ;;  %4598 = vlog2.f32 %v969_v16  ;;  %v1020_v45 = vand.u32 2147483647, %v5882_v51  ;;  %1277 = vmatpush1.bf16.msra.mxu0 %v1118_v35  ;;  %v950_v18 = vsel %vm5911_vm4, %v947_v15, %v944_v32 }
 0x195   : > { %vm5949_vm7 = vcmp.lt.f32.partialorder %v957_v31, 0.0004427343  ;;  %v1026_v7 = vmul.f32 -0.5, %v5915_v24  ;;  %4600 = vpow2.f32 %v760_v41  ;;  %v1036_v46 = vadd.f32 1.0, %v1035_v11 }
 0x196   : > { %v4593_v6 = vpop.eup %4592  ;;  %v1038_v12 = vand.u32 2147483647, %v5897_v43  ;;  %1329 = vmatprep.subr.bf16.mxu1 %v1121_v4  ;;  %v8493_v25 = vunpack.c.h.bf16 %v5877_v29  ;;  %v8492_v60 = vunpack.c.l.bf16 %v5941_v27  ;;  %v953_v33 = vmul.f32 0.6931472, %v4591_v8 }
 0x197   : > { %v1016_v35 = vmul.f32 0.6931472, %v4593_v6  ;;  %v1019_v17 = vmul.f32 %v5882_v51, %v1018_v53  ;;  %1330 = vmatpush1.bf16.msra.mxu1 %v1120_v22  ;;  %v8490_v47 = vunpack.c.h.bf16 %v5941_v27  ;;  %v1070_v44 = vmul.f32 0.01, %v950_v18 }
 0x198   : > { %v968_v54 = vsel %vm5925_vm5, %v965_v39, %v962_v56  ;;  %vm1021_vm8 = vcmp.lt.f32.partialorder %v1020_v45, 0.0004427343  ;;  %v5968_v48 = vpack.i.bf16 %v8493_v25, %v8491_v52  ;;  %v956_v51 = vmul.f32 %v5870_v59, %v955_v23 }
 0x199   : > { %v4595_v10 = vpop.eup %4594  ;;  %v1022_v16 = vsel %vm1021_vm8, %v1019_v17, %v1016_v35  ;;  %v1027_v58 = vadd.f32 1.0, %v1026_v7  ;;  %v1029_v9 = vand.u32 2147483647, %v5915_v24  ;;  %v1037_v42 = vmul.f32 %v5897_v43, %v1036_v46 }
 0x19a   : > { %8609 = vst [vmem:[#allocation15_spill] sm:$0xff] %v5968_v48  ;;  %v1078_v36 = vmul.f32 0.01, %v1022_v16  ;;  %v1034_v22 = vmul.f32 0.6931472, %v4595_v10  ;;  %4423 = vperm.xlu0 %4421, %v5968_v48   ;;  %v5978_v21 = vpack.i.bf16 %v8490_v47, %v8492_v60  ;;  %v959_v59 = vsel %vm5949_vm7, %v956_v51, %v953_v33 }
 0x19b   : > { %v1072_v20 = vmul.f32 0.01, %v968_v54  ;;  %vm662_vm9 = vcmp.gt.f32.partialorder %v5800_v61, 20.0  ;;  %vm1039_vm10 = vcmp.lt.f32.partialorder %v1038_v12, 0.0004427343  ;;  %v1102_v43 = vsel %vm654_vm6, %v5522_v3, %v1070_v44 }
 0x19c   : > { %8610 = vst [vmem:[#allocation16_spill] sm:$0xff] %v5978_v21  ;;  %v4597_v32 = vpop.eup %4596  ;;  %v1110_v31 = vsel %vm662_vm9, %v5540_v37, %v1078_v36  ;;  %v1040_v15 = vsel %vm1039_vm10, %v1037_v42, %v1034_v22  ;;  %v1028_v23 = vmul.f32 %v5915_v24, %v1027_v58  ;;  %vm656_vm11 = vcmp.gt.f32.partialorder %v5766_v50, 20.0 }
 0x19d   : > { %v1126_v39 = vpack.c.bf16 %v1110_v31, %v1102_v43  ;;  %v1080_v11 = vmul.f32 0.01, %v1040_v15  ;;  %v1025_v49 = vmul.f32 0.6931472, %v4597_v32  ;;  %v1071_v41 = vmul.f32 0.01, %v959_v59 }
 0x19e   : > { %v4599_v53 = vpop.eup %4598  ;;  %vm664_vm12 = vcmp.gt.f32.partialorder %v5816_v1, 20.0  ;;  %vm1030_vm13 = vcmp.lt.f32.partialorder %v1029_v9, 0.0004427343  ;;  %4428 = vperm.xlu0 %4421, %v5978_v21   ;;  %v1104_v3 = vsel %vm656_vm11, %v5529_v14, %v1072_v20  ;;  %vm655_vm14 = vcmp.gt.f32.partialorder %v5775_v2, 20.0 }
 0x19f   : > { %v4601_v61 = vpop.eup %4600  ;;  %v1112_v37 = vsel %vm664_vm12, %v5543_v0, %v1080_v11  ;;  %v1031_v28 = vsel %vm1030_vm13, %v1028_v23, %v1025_v49  ;;  %v972_v24 = vmul.f32 -0.5, %v5901_v30  ;;  %vm663_vm15 = vcmp.gt.f32.partialorder %v5819_v63, 20.0 }
 0x1a0   : > { %v1128_v8 = vpack.c.bf16 %v1112_v37, %v1104_v3  ;;  %v1079_v4 = vmul.f32 0.01, %v1031_v28  ;;  %v1041_v56 = vadd.f32 1.0, %v4601_v61  ;;  %v1103_v50 = vsel %vm655_vm14, %v5531_v19, %v1071_v41 }
 0x1a1   : > { %v973_v18 = vadd.f32 1.0, %v972_v24  ;;  %v1044_v14 = vmul.f32 -0.5, %v4601_v61  ;;  %v975_v0 = vand.u32 2147483647, %v5901_v30  ;;  %v971_v55 = vmul.f32 0.6931472, %v4599_v53 }
 0x1a2   : > { %v1111_v1 = vsel %vm663_vm15, %v5545_v57, %v1079_v4  ;;  %4602 = vlog2.f32 %v1041_v56  ;;  %v1047_v63 = vand.u32 2147483647, %v4601_v61  ;;  %vm657_vm3 = vcmp.gt.f32.partialorder %v5789_v40, 20.0 }
 0x1a3   : > { %v1127_v45 = vpack.c.bf16 %v1111_v1, %v1103_v50  ;;  %v974_v7 = vmul.f32 %v5901_v30, %v973_v18  ;;  %v1045_v2 = vadd.f32 1.0, %v1044_v14  ;;  %vm976_vm1 = vcmp.lt.f32.partialorder %v975_v0, 0.0004427343 }
 0x1a4   : > { %vm1048_vm2 = vcmp.lt.f32.partialorder %v1047_v63, 0.0004427343  ;;  %vm665_vm4 = vcmp.gt.f32.partialorder %v5887_v34, 20.0 }
 0x1a5   : > { %1278 = vmatprep.subr.bf16.mxu0 %v1127_v45  ;;  %v977_v19 = vsel %vm976_vm1, %v974_v7, %v971_v55  ;;  %v1046_v46 = vmul.f32 %v4601_v61, %v1045_v2 }
 0x1a6   : > { %1279 = vmatpush1.bf16.msra.mxu0 %v1126_v39  ;;  %v1073_v12 = vmul.f32 0.01, %v977_v19 }
 0x1a8   : > { %v1105_v30 = vsel %vm657_vm3, %v5538_v38, %v1073_v12 }
 0x1a9   : > { %4269 = vmatmul.mubr.msk.bf16.vlgmr.msra.gmra.mrb[40].mxu0 %vm297_vm0, %v5732_v26 }
 0x1aa   : > { %1318 = vmatprep.mubr.bf16.mxu0 %v8594_v13 }
 0x1ac   : > { %v4603_v57 = vpop.eup %4602 }
 0x1ad   : > { %v1043_v6 = vmul.f32 0.6931472, %v4603_v57 }
 0x1af   : > { %v1049_v33 = vsel %vm1048_vm2, %v1046_v46, %v1043_v6 }
 0x1b0   : > { %v1081_v35 = vmul.f32 0.01, %v1049_v33 }
 0x1b1   : > { %4270 = vmatmul.mubr.msk.bf16.gmra.mrb[44].mxu0 %vm297_vm0, %v5781_v5 }
 0x1b2   : > { %v1113_v17 = vsel %vm665_vm4, %v5555_v62, %v1081_v35  ;;  %1978 = vmatprep.mubr.bf16.mxu0 %v8594_v13 }
 0x1b3   : > { %v1129_v44 = vpack.c.bf16 %v1113_v17, %v1105_v30 }
 0x1b5   : > { %1331 = vmatprep.subr.bf16.mxu1 %v1129_v44 }
 0x1b6   : > { %1332 = vmatpush1.bf16.msra.mxu1 %v1128_v8 }
 0x1b9   : > { %4271 = vmatmul.mubr.msk.bf16.vlgmr.msra.gmra.mrb[40].mxu1 %vm297_vm0, %v5732_v26 }
 0x1ba   : > { %1371 = vmatprep.mubr.bf16.mxu1 %v8594_v13 }
 0x1c1   : > { %4272 = vmatmul.mubr.msk.bf16.gmra.mrb[44].mxu1 %vm297_vm0, %v5781_v5 }
 0x1c2   : > { %2031 = vmatprep.mubr.bf16.mxu1 %v8594_v13 }
 0x219   : > { %v4424_v40 = vpop.permute.xlu0 %4423 }
 0x21a   : > { %v6016_v34 = vunpack.i.l.bf16 %v4424_v40  ;;  %v6018_v38 = vunpack.i.h.bf16 %v4424_v40 }
 0x21d   : > { %v4429_v32 = vpop.permute.xlu0 %4428 }
 0x21e   : > { %v6053_v41 = vunpack.i.l.bf16 %v4429_v32  ;;  %v6083_v6 = vunpack.i.h.bf16 %v4429_v32 }
 0x244   : > { %v1204_v62 = vpop.f32.mrb[32].mxu0 }
 0x245   : > { %v6021_v54 = vadd.f32 %v6016_v34, %v1204_v62  ;;  %v1206_v10 = vpop.f32.mrb[33].mxu0 }
 0x246   : > { %v1208_v51 = vpop.f32.mrb[34].mxu0  ;;  %v1257_v16 = vpop.f32.mrb[32].mxu1  ;;  %v6027_v58 = vadd.f32 %v6016_v34, %v1206_v10 }
 0x247   : > { %v6024_v26 = vmul.f32 100.0, %v6021_v54  ;;  %v6030_v5 = vadd.f32 %v6018_v38, %v1208_v51  ;;  %v1210_v9 = vpop.f32.mrb[35].mxu0  ;;  %v6033_v36 = vadd.f32 %v6016_v34, %v1257_v16  ;;  %v1259_v22 = vpop.f32.mrb[33].mxu1 }
 0x248   : > { %v1261_v59 = vpop.f32.mrb[34].mxu1  ;;  %v6046_v11 = vmul.f32 100.0, %v6027_v58  ;;  %v6070_v0 = vadd.f32 %v6018_v38, %v1210_v9  ;;  %v6081_v57 = vadd.f32 %v6016_v34, %v1259_v22 }
 0x249   : > { %v1446_v42 = vmin.f32 %v6024_v26, 20.0  ;;  %v6037_v20 = vmul.f32 100.0, %v6030_v5  ;;  %v6040_v43 = vmul.f32 100.0, %v6033_v36  ;;  %v6043_v31 = vadd.f32 %v6018_v38, %v1261_v59  ;;  %v1263_v15 = vpop.f32.mrb[35].mxu1 }
 0x24a   : > { %v1447_v56 = vmin.f32 %v6046_v11, 20.0  ;;  %v6088_v33 = vmul.f32 100.0, %v6070_v0  ;;  %v6091_v40 = vmul.f32 100.0, %v6081_v57  ;;  %v6098_v59 = vadd.f32 %v6018_v38, %v1263_v15 }
 0x24b   : > { %v1478_v39 = vmul.f32 1.442695, %v1446_v42  ;;  %v1454_v49 = vmin.f32 %v6037_v20, 20.0  ;;  %v1448_v23 = vmin.f32 %v6040_v43, 20.0  ;;  %v6051_v53 = vmul.f32 100.0, %v6043_v31 }
 0x24c   : > { %v1214_v61 = vpop.f32.mrb[36].mxu0  ;;  %v1480_v19 = vmul.f32 1.442695, %v1447_v56  ;;  %v1455_v51 = vmin.f32 %v6088_v33, 20.0  ;;  %v6111_v15 = vmul.f32 100.0, %v6098_v59  ;;  %vm1414_vm5 = vcmp.gt.f32.partialorder %v6024_v26, 20.0 }
 0x24d   : > { %4604 = vpow2.f32 %v1478_v39  ;;  %v1494_v3 = vmul.f32 1.442695, %v1454_v49  ;;  %v6055_v37 = vpop.f32.mrb[37].mxu0  ;;  %v1482_v28 = vmul.f32 1.442695, %v1448_v23  ;;  %v1456_v8 = vmin.f32 %v6051_v53, 20.0 }
 0x24e   : > { %v1218_v4 = vpop.f32.mrb[38].mxu0  ;;  %v1267_v24 = vpop.f32.mrb[36].mxu1  ;;  %v6062_v45 = vadd.f32 %v6053_v41, %v1214_v61  ;;  %v1449_v39 = vmin.f32 %v6091_v40, 20.0  ;;  %v1496_v61 = vmul.f32 1.442695, %v1455_v51  ;;  %vm1422_vm6 = vcmp.gt.f32.partialorder %v6037_v20, 20.0 }
 0x24f   : > { %4606 = vpow2.f32 %v1494_v3  ;;  %v6059_v50 = vpop.f32.mrb[39].mxu0  ;;  %v1498_v1 = vmul.f32 1.442695, %v1456_v8  ;;  %v6065_v18 = vadd.f32 %v6053_v41, %v1267_v24  ;;  %v6067_v14 = vpop.f32.mrb[37].mxu1  ;;  %v6094_v62 = vadd.f32 %v6083_v6, %v1218_v4 }
 0x250   : > { %4608 = vpow2.f32 %v1482_v28  ;;  %v1271_v55 = vpop.f32.mrb[38].mxu1  ;;  %v6073_v7 = vmul.f32 100.0, %v6062_v45  ;;  %v1484_v24 = vmul.f32 1.442695, %v1449_v39  ;;  %v1457_v39 = vmin.f32 %v6111_v15, 20.0 }
 0x251   : > { %4610 = vpow2.f32 %v1498_v1  ;;  %v6076_v2 = vmul.f32 100.0, %v6065_v18  ;;  %v6078_v63 = vpop.f32.mrb[39].mxu1  ;;  %v6104_v49 = vmul.f32 100.0, %v6094_v62  ;;  %v6108_v8 = vadd.f32 %v6083_v6, %v1271_v55 }
 0x252   : > { %v1462_v46 = vmin.f32 %v6073_v7, 20.0  ;;  %4612 = vpow2.f32 %v1480_v19  ;;  %vm1416_vm10 = vcmp.gt.f32.partialorder %v6040_v43, 20.0  ;;  %vm1424_vm11 = vcmp.gt.f32.partialorder %v6051_v53, 20.0 }
 0x253   : > { %v1464_v12 = vmin.f32 %v6076_v2, 20.0  ;;  %v1470_v1 = vmin.f32 %v6104_v49, 20.0  ;;  %v6196_v20 = vadd.f32 %v6083_v6, %v6078_v63  ;;  %vm1430_vm15 = vcmp.gt.f32.partialorder %v6073_v7, 20.0 }
 0x254   : > { %v1510_v35 = vmul.f32 1.442695, %v1462_v46  ;;  %vm1438_vm1 = vcmp.gt.f32.partialorder %v6104_v49, 20.0  ;;  %vm1432_vm2 = vcmp.gt.f32.partialorder %v6076_v2, 20.0 }
 0x255   : > { %v1514_v30 = vmul.f32 1.442695, %v1464_v12  ;;  %v1526_v51 = vmul.f32 1.442695, %v1470_v1  ;;  %8620 = vst [vmem:[#allocation13_spill] sm:$0xff] %v6196_v20 }
 0x256   : > { %4614 = vpow2.f32 %v1510_v35 }
 0x257   : > { %v4605_v17 = vpop.eup %4604  ;;  %4616 = vpow2.f32 %v1514_v30 }
 0x258   : > { %v1542_v44 = vadd.f32 1.0, %v4605_v17  ;;  %v1545_v22 = vmul.f32 -0.5, %v4605_v17  ;;  %v1548_v56 = vand.u32 2147483647, %v4605_v17 }
 0x259   : > { %v4607_v10 = vpop.eup %4606 }
 0x25a   : > { %v4609_v16 = vpop.eup %4608  ;;  %4618 = vlog2.f32 %v1542_v44  ;;  %v1614_v9 = vadd.f32 1.0, %v4607_v10  ;;  %v1617_v23 = vmul.f32 -0.5, %v4607_v10  ;;  %v1546_v4 = vadd.f32 1.0, %v1545_v22 }
 0x25b   : > { %v1560_v42 = vadd.f32 1.0, %v4609_v16  ;;  %v6100_v32 = vpop.eup %4610  ;;  %v1563_v3 = vmul.f32 -0.5, %v4609_v16  ;;  %v1566_v46 = vand.u32 2147483647, %v4609_v16  ;;  %v1620_v44 = vand.u32 2147483647, %v4607_v10 }
 0x25c   : > { %4620 = vlog2.f32 %v1614_v9  ;;  %v1632_v28 = vadd.f32 1.0, %v6100_v32  ;;  %v6114_v19 = vpop.eup %4612  ;;  %v1618_v12 = vadd.f32 1.0, %v1617_v23  ;;  %v1635_v35 = vmul.f32 -0.5, %v6100_v32 }
 0x25d   : > { %4622 = vlog2.f32 %v1560_v42  ;;  %v1564_v55 = vadd.f32 1.0, %v1563_v3  ;;  %v6120_v9 = vmul.f32 100.0, %v6108_v8  ;;  %v1547_v42 = vmul.f32 %v4605_v17, %v1546_v4 }
 0x25e   : > { %4624 = vlog2.f32 %v1632_v28  ;;  %vm6132_vm7 = vcmp.lt.f32.partialorder %v1548_v56, 0.0004427343  ;;  %v6139_v17 = vadd.f32 %v6053_v41, %v6067_v14  ;;  %vm6141_vm8 = vcmp.lt.f32.partialorder %v1566_v46, 0.0004427343 }
 0x25f   : > { %4626 = vpow2.f32 %v1496_v61  ;;  %v6130_v61 = vadd.f32 %v6053_v41, %v6055_v37  ;;  %v1619_v52 = vmul.f32 %v4607_v10, %v1618_v12  ;;  %v1636_v37 = vadd.f32 1.0, %v1635_v35 }
 0x260   : > { %v6117_v30 = vpop.eup %4614  ;;  %8613 = vst [vmem:[#allocation12_spill] sm:$0xff] %v6139_v17  ;;  %4628 = vpow2.f32 %v1526_v51  ;;  %v1565_v25 = vmul.f32 %v4609_v16, %v1564_v55  ;;  %vm6145_vm9 = vcmp.lt.f32.partialorder %v1620_v44, 0.0004427343  ;;  %v1638_v27 = vand.u32 2147483647, %v6100_v32 }
 0x261   : > { %v6122_v22 = vpop.eup %4616  ;;  %v1686_v23 = vadd.f32 1.0, %v6117_v30  ;;  %v1472_v29 = vmin.f32 %v6120_v9, 20.0  ;;  %v1551_v10 = vadd.f32 1.0, %v6114_v19  ;;  %v1637_v44 = vmul.f32 %v6100_v32, %v1636_v37 }
 0x262   : > { %v1704_v1 = vadd.f32 1.0, %v6122_v22  ;;  %vm6164_vm12 = vcmp.lt.f32.partialorder %v1638_v27, 0.0004427343  ;;  %v1689_v32 = vmul.f32 -0.5, %v6117_v30  ;;  %v6187_v37 = vmul.f32 100.0, %v6139_v17 }
 0x263   : > { %4630 = vlog2.f32 %v1686_v23  ;;  %v1530_v35 = vmul.f32 1.442695, %v1472_v29 }
 0x264   : > { %v4619_v3 = vpop.eup %4618  ;;  %4632 = vlog2.f32 %v1704_v1 }
 0x265   : > { %v1544_v4 = vmul.f32 0.6931472, %v4619_v3  ;;  %v1500_v3 = vmul.f32 1.442695, %v1457_v39  ;;  %4634 = vpow2.f32 %v1530_v35  ;;  %v1707_v39 = vmul.f32 -0.5, %v6122_v22 }
 0x266   : > { %v4621_v60 = vpop.eup %4620  ;;  %4636 = vpow2.f32 %v1484_v24 }
 0x267   : > { %v4623_v14 = vpop.eup %4622  ;;  %v1550_v51 = vsel %vm6132_vm7, %v1547_v42, %v1544_v4  ;;  %v1616_v46 = vmul.f32 0.6931472, %v4621_v60  ;;  %v6160_v42 = vmul.f32 100.0, %v6130_v61  ;;  %4638 = vlog2.f32 %v1551_v10 }
 0x268   : > { %v1830_v16 = vmul.f32 0.01, %v1550_v51  ;;  %v1562_v12 = vmul.f32 0.6931472, %v4623_v14  ;;  %v4625_v28 = vpop.eup %4624  ;;  %4640 = vpow2.f32 %v1500_v3  ;;  %v1692_v14 = vand.u32 2147483647, %v6117_v30 }
 0x269   : > { %v1622_v55 = vsel %vm6145_vm9, %v1619_v52, %v1616_v46  ;;  %v6168_v29 = vpop.eup %4626  ;;  %v1634_v52 = vmul.f32 0.6931472, %v4625_v28  ;;  %v1710_v51 = vand.u32 2147483647, %v6122_v22  ;;  %v1708_v63 = vadd.f32 1.0, %v1707_v39 }
 0x26a   : > { %v1568_v60 = vsel %vm6141_vm8, %v1565_v25, %v1562_v12  ;;  %v1838_v23 = vmul.f32 0.01, %v1622_v55  ;;  %v6175_v1 = vsel %vm1414_vm5, %v6021_v54, %v1830_v16  ;;  %v6191_v54 = vadd.f32 %v6083_v6, %v6059_v50  ;;  %v4629_v26 = vpop.eup %4628 }
 0x26b   : > { %v1832_v25 = vmul.f32 0.01, %v1568_v60  ;;  %v1640_v24 = vsel %vm6164_vm12, %v1637_v44, %v1634_v52  ;;  %v1758_v46 = vadd.f32 1.0, %v4629_v26  ;;  %v1623_v10 = vadd.f32 1.0, %v6168_v29 }
 0x26c   : > { %v6180_v27 = vsel %vm1422_vm6, %v6030_v5, %v1838_v23  ;;  %v1840_v56 = vmul.f32 0.01, %v1640_v24  ;;  %v1463_v5 = vmin.f32 %v6160_v42, 20.0  ;;  %v1690_v12 = vadd.f32 1.0, %v1689_v32 }
 0x26d   : > { %v6204_v50 = vsel %vm1416_vm10, %v6033_v36, %v1832_v25  ;;  %v4631_v35 = vpop.eup %4630  ;;  %4642 = vlog2.f32 %v1758_v46  ;;  %v6214_v44 = vmul.f32 100.0, %v6191_v54  ;;  %v1554_v3 = vmul.f32 -0.5, %v6114_v19 }
 0x26e   : > { %v6209_v16 = vsel %vm1424_vm11, %v6043_v31, %v1840_v56  ;;  %v4633_v43 = vpop.eup %4632  ;;  %v1761_v36 = vmul.f32 -0.5, %v4629_v26  ;;  %v6218_v28 = vmul.f32 100.0, %v6196_v20  ;;  %4644 = vlog2.f32 %v1623_v10 }
 0x26f   : > { %vm6220_vm13 = vcmp.lt.f32.partialorder %v1692_v14, 0.0004427343  ;;  %v1512_v53 = vmul.f32 1.442695, %v1463_v5  ;;  %v1465_v60 = vmin.f32 %v6187_v37, 20.0  ;;  %v1626_v23 = vmul.f32 -0.5, %v6168_v29  ;;  %v6226_v4 = vpop.eup %4634 }
 0x270   : > { %v1688_v52 = vmul.f32 0.6931472, %v4631_v35  ;;  %v1691_v32 = vmul.f32 %v6117_v30, %v1690_v12  ;;  %v1709_v39 = vmul.f32 %v6122_v22, %v1708_v63  ;;  %vm6230_vm14 = vcmp.lt.f32.partialorder %v1710_v51, 0.0004427343  ;;  %v6234_v24 = vpop.eup %4636 }
 0x271   : > { %v1706_v56 = vmul.f32 0.6931472, %v4633_v43  ;;  %v1776_v5 = vadd.f32 1.0, %v6226_v4  ;;  %v1471_v14 = vmin.f32 %v6214_v44, 20.0  ;;  %v1555_v46 = vadd.f32 1.0, %v1554_v3  ;;  %v4639_v10 = vpop.eup %4638 }
 0x272   : > { %v1762_v55 = vadd.f32 1.0, %v1761_v36  ;;  %v1764_v47 = vand.u32 2147483647, %v4629_v26  ;;  %v1473_v35 = vmin.f32 %v6218_v28, 20.0  ;;  %v1557_v30 = vand.u32 2147483647, %v6114_v19  ;;  %v6241_v63 = vpop.eup %4640 }
 0x273   : > { %v1516_v22 = vmul.f32 1.442695, %v1465_v60  ;;  %4646 = vlog2.f32 %v1776_v5  ;;  %v1779_v51 = vmul.f32 -0.5, %v6226_v4  ;;  %v1627_v12 = vadd.f32 1.0, %v1626_v23 }
 0x274   : > { %v1694_v43 = vsel %vm6220_vm13, %v1691_v32, %v1688_v52  ;;  %4648 = vpow2.f32 %v1512_v53  ;;  %v1629_v3 = vand.u32 2147483647, %v6168_v29  ;;  %v1712_v36 = vsel %vm6230_vm14, %v1709_v39, %v1706_v56 }
 0x275   : > { %v1528_v60 = vmul.f32 1.442695, %v1471_v14  ;;  %v1553_v5 = vmul.f32 0.6931472, %v4639_v10  ;;  %v1556_v21 = vmul.f32 %v6114_v19, %v1555_v46  ;;  %v1763_v23 = vmul.f32 %v4629_v26, %v1762_v55 }
 0x276   : > { %vm6252_vm3 = vcmp.lt.f32.partialorder %v1764_v47, 0.0004427343  ;;  %v1532_v31 = vmul.f32 1.442695, %v1473_v35  ;;  %vm6256_vm4 = vcmp.lt.f32.partialorder %v1557_v30, 0.0004427343  ;;  %v1628_v19 = vmul.f32 %v6168_v29, %v1627_v12 }
 0x277   : > { %v4643_v52 = vpop.eup %4642  ;;  %vm1415_vm5 = vcmp.gt.f32.partialorder %v6046_v11, 20.0  ;;  %vm1423_vm6 = vcmp.gt.f32.partialorder %v6088_v33, 20.0  ;;  %v1846_v32 = vmul.f32 0.01, %v1694_v43  ;;  %v1780_v39 = vadd.f32 1.0, %v1779_v51 }
 0x278   : > { %v1569_v26 = vadd.f32 1.0, %v6234_v24  ;;  %v4645_v47 = vpop.eup %4644  ;;  %v1848_v55 = vmul.f32 0.01, %v1712_v36  ;;  %4650 = vpow2.f32 %v1516_v22  ;;  %v1760_v25 = vmul.f32 0.6931472, %v4643_v52 }
 0x279   : > { %vm6264_vm7 = vcmp.lt.f32.partialorder %v1629_v3, 0.0004427343  ;;  %v1782_v14 = vand.u32 2147483647, %v6226_v4  ;;  %4652 = vpow2.f32 %v1528_v60  ;;  %v1559_v10 = vsel %vm6256_vm4, %v1556_v21, %v1553_v5 }
 0x27a   : > { %v1625_v35 = vmul.f32 0.6931472, %v4645_v47  ;;  %v1766_v29 = vsel %vm6252_vm3, %v1763_v23, %v1760_v25  ;;  %vm1440_vm8 = vcmp.gt.f32.partialorder %v6120_v9, 20.0  ;;  %v1572_v51 = vmul.f32 -0.5, %v6234_v24 }
 0x27b   : > { %v1641_v12 = vadd.f32 1.0, %v6241_v63  ;;  %v1854_v43 = vmul.f32 0.01, %v1766_v29  ;;  %v1781_v3 = vmul.f32 %v6226_v4, %v1780_v39  ;;  %4654 = vlog2.f32 %v1569_v26 }
 0x27c   : > { %v1310_v46 = vpop.f32.mrb[40].mxu0  ;;  %v1631_v21 = vsel %vm6264_vm7, %v1628_v19, %v1625_v35  ;;  %v1831_v23 = vmul.f32 0.01, %v1559_v10  ;;  %v6291_v47 = vsel %vm1430_vm15, %v6062_v45, %v1846_v32  ;;  %vm1783_vm9 = vcmp.lt.f32.partialorder %v1782_v14, 0.0004427343 }
 0x27d   : > { %v6275_v30 = vadd.f32 %v6016_v34, %v1310_v46  ;;  %v1312_v22 = vpop.f32.mrb[41].mxu0  ;;  %v1839_v53 = vmul.f32 0.01, %v1631_v21  ;;  %v4647_v52 = vpop.eup %4646  ;;  %v6296_v4 = vsel %vm1438_vm1, %v6094_v62, %v1854_v43  ;;  %4656 = vlog2.f32 %v1641_v12 }
 0x27e   : > { %v1314_v36 = vpop.f32.mrb[42].mxu0  ;;  %v6299_v39 = vadd.f32 %v6016_v34, %v1312_v22  ;;  %v6301_v19 = vpop.eup %4648  ;;  %v1778_v25 = vmul.f32 0.6931472, %v4647_v52  ;;  %v6309_v45 = vsel %vm1432_vm2, %v6065_v18, %v1848_v55  ;;  %4658 = vpow2.f32 %v1532_v31 }
 0x27f   : > { %v6283_v48 = vmul.f32 100.0, %v6275_v30  ;;  %v6286_v60 = vadd.f32 %v6018_v38, %v1314_v36  ;;  %v1316_v5 = vpop.f32.mrb[43].mxu0  ;;  %8632 = vst [vmem:[#allocation14_spill] sm:$0xff] %v6309_v45  ;;  %v1644_v62 = vmul.f32 -0.5, %v6241_v63  ;;  %v1863_v14 = vsel %vm1415_vm5, %v6027_v58, %v1831_v23 }
 0x280   : > { %8631 = vst [vmem:[#allocation10_spill] sm:$0xff] %v6299_v39  ;;  %v1784_v49 = vsel %vm1783_vm9, %v1781_v3, %v1778_v25  ;;  %v1871_v46 = vsel %vm1423_vm6, %v6070_v0, %v1839_v53  ;;  %v6322_v18 = vmul.f32 100.0, %v6299_v39  ;;  %v6326_v31 = vadd.f32 %v6018_v38, %v1316_v5 }
 0x281   : > { %v1450_v56 = vmin.f32 %v6283_v48, 20.0  ;;  %v6312_v7 = vmul.f32 100.0, %v6286_v60  ;;  %v1856_v10 = vmul.f32 0.01, %v1784_v49  ;;  %v1895_v29 = vpack.c.bf16 %v1871_v46, %v1863_v14 }
 0x282   : > { %8633 = vst [vmem:[#allocation17_spill] sm:$0xff] %v6322_v18  ;;  %8634 = vst [vmem:[#allocation11_spill] sm:$0xff] %v6326_v31  ;;  %v6328_v55 = vpop.eup %4650  ;;  %v1573_v11 = vadd.f32 1.0, %v1572_v51  ;;  %v1698_v58 = vmul.f32 -0.5, %v6301_v19  ;;  %v1575_v3 = vand.u32 2147483647, %v6234_v24 }
 0x283   : > { %v1486_v32 = vmul.f32 1.442695, %v1450_v56  ;;  %v1458_v2 = vmin.f32 %v6312_v7, 20.0  ;;  %v6331_v22 = vpop.eup %4652  ;;  %v6336_v0 = vsel %vm1440_vm8, %v6108_v8, %v1856_v10  ;;  %1946 = vmatprep.subr.bf16.mxu0 %v1895_v29  ;;  %v1645_v21 = vadd.f32 1.0, %v1644_v62 }
 0x284   : > { %v1320_v35 = vpop.f32.mrb[44].mxu0  ;;  %8635 = vst [vmem:[#allocation18_spill] sm:$0xff] %v6336_v0  ;;  %v1647_v5 = vand.u32 2147483647, %v6241_v63  ;;  %v1695_v23 = vadd.f32 1.0, %v6301_v19  ;;  %v1451_v8 = vmin.f32 %v6322_v18, 20.0  ;;  %v8637_v56 = vpack.c.bf16 %v6180_v27, %v6175_v1 }
 0x285   : > { %4660 = vpow2.f32 %v1486_v32  ;;  %v1502_v33 = vmul.f32 1.442695, %v1458_v2  ;;  %v6339_v12 = vadd.f32 %v6053_v41, %v1320_v35  ;;  %v1322_v43 = vpop.f32.mrb[45].mxu0  ;;  %v4655_v9 = vpop.eup %4654  ;;  %v6348_v53 = vmul.f32 100.0, %v6326_v31 }
 0x286   : > { %v1324_v51 = vpop.f32.mrb[46].mxu0  ;;  %1947 = vmatpush1.bf16.msra.mxu0 %v8637_v56  ;;  %v6357_v62 = vadd.f32 %v6053_v41, %v1322_v43  ;;  %v1574_v49 = vmul.f32 %v6234_v24, %v1573_v11  ;;  %v1699_v32 = vadd.f32 1.0, %v1698_v58  ;;  %v1767_v14 = vadd.f32 1.0, %v6331_v22 }
 0x287   : > { %4662 = vpow2.f32 %v1502_v33  ;;  %8636 = vst [vmem:[#allocation19_spill] sm:$0xff] %v6348_v53  ;;  %v6351_v52 = vmul.f32 100.0, %v6339_v12  ;;  %v1326_v25 = vpop.f32.mrb[47].mxu0  ;;  %v6363_v10 = vadd.f32 %v6083_v6, %v1324_v51  ;;  %vm6365_vm10 = vcmp.lt.f32.partialorder %v1575_v3, 0.0004427343  ;;  %v4657_v27 = vpop.eup %4656 }
 0x288   : > { %8638 = vst [vmem:[#allocation20_spill] sm:$0xff] %v6357_v62  ;;  %v1770_v1 = vmul.f32 -0.5, %v6331_v22  ;;  %v1571_v35 = vmul.f32 0.6931472, %v4655_v9  ;;  %vm6370_vm11 = vcmp.lt.f32.partialorder %v1647_v5, 0.0004427343  ;;  %4664 = vlog2.f32 %v1695_v23  ;;  %v6375_v11 = vpop.eup %4658 }
 0x289   : > { %v1466_v46 = vmin.f32 %v6351_v52, 20.0  ;;  %v1488_v33 = vmul.f32 1.442695, %v1451_v8  ;;  %v1459_v43 = vmin.f32 %v6348_v53, 20.0  ;;  %v1646_v51 = vmul.f32 %v6241_v63, %v1645_v21 }
 0x28a   : > { %v6383_v5 = vmul.f32 100.0, %v6357_v62  ;;  %v6386_v23 = vmul.f32 %v6301_v19, %v1699_v32  ;;  %4666 = vlog2.f32 %v1767_v14  ;;  %vm1417_vm12 = vcmp.gt.f32.partialorder %v6091_v40, 20.0 }
 0x28b   : > { %v1518_v3 = vmul.f32 1.442695, %v1466_v46  ;;  %v6390_v8 = vmul.f32 100.0, %v6363_v10  ;;  %v1643_v46 = vmul.f32 0.6931472, %v4657_v27  ;;  %v6392_v63 = vadd.f32 1.0, %v1770_v1 }
 0x28c   : > { %v1363_v58 = vpop.f32.mrb[40].mxu1  ;;  %8643 = vst [vmem:[#allocation21_spill] sm:$0xff] %v6383_v5  ;;  %v1504_v1 = vmul.f32 1.442695, %v1459_v43  ;;  %v6409_v27 = vadd.f32 %v6083_v6, %v1326_v25  ;;  %vm1425_vm13 = vcmp.gt.f32.partialorder %v6111_v15, 20.0  ;;  %v1467_v2 = vmin.f32 %v6383_v5, 20.0 }
 0x28d   : > { %v6380_v56 = vadd.f32 %v6016_v34, %v1363_v58  ;;  %v1365_v9 = vpop.f32.mrb[41].mxu1  ;;  %4668 = vpow2.f32 %v1518_v3  ;;  %v1577_v3 = vsel %vm6365_vm10, %v1574_v49, %v1571_v35  ;;  %v1474_v35 = vmin.f32 %v6390_v8, 20.0 }
 0x28e   : > { %v1367_v36 = vpop.f32.mrb[42].mxu1  ;;  %v6400_v26 = vadd.f32 %v6016_v34, %v1365_v9  ;;  %4670 = vpow2.f32 %v1488_v33  ;;  %8645 = vst [vmem:[#allocation23_spill] sm:$0xff] %v6409_v27  ;;  %v1649_v25 = vsel %vm6370_vm11, %v1646_v51, %v1643_v46  ;;  %v1833_v33 = vmul.f32 0.01, %v1577_v3 }
 0x28f   : > { %v6394_v21 = vpop.eup %4660  ;;  %v6397_v58 = vmul.f32 100.0, %v6380_v56  ;;  %v6403_v32 = vadd.f32 %v6018_v38, %v1367_v36  ;;  %v1369_v14 = vpop.f32.mrb[43].mxu1  ;;  %v1841_v3 = vmul.f32 0.01, %v1649_v25  ;;  %vm1418_vm14 = vcmp.gt.f32.partialorder %v6283_v48, 20.0 }
 0x290   : > { %8644 = vst [vmem:[#allocation22_spill] sm:$0xff] %v6400_v26  ;;  %v1578_v24 = vadd.f32 1.0, %v6394_v21  ;;  %v6417_v36 = vadd.f32 %v6018_v38, %v1369_v14  ;;  %v1581_v43 = vmul.f32 -0.5, %v6394_v21  ;;  %v6427_v31 = vmul.f32 100.0, %v6400_v26 }
 0x291   : > { %v1452_v62 = vmin.f32 %v6397_v58, 20.0  ;;  %v6414_v34 = vmul.f32 100.0, %v6403_v32  ;;  %v6420_v49 = vpop.eup %4662  ;;  %vm1426_vm1 = vcmp.gt.f32.partialorder %v6312_v7, 20.0  ;;  %vm1431_vm5 = vcmp.gt.f32.partialorder %v6160_v42, 20.0 }
 0x292   : > { %8646 = vst [vmem:[#allocation24_spill] sm:$0xff] %v6417_v36  ;;  %4672 = vlog2.f32 %v1578_v24  ;;  %8647 = vst [vmem:[#allocation25_spill] sm:$0xff] %v6427_v31  ;;  %v1650_v38 = vadd.f32 1.0, %v6420_v49  ;;  %v6432_v24 = vmul.f32 100.0, %v6409_v27  ;;  %v6435_v29 = vpop.eup %4664  ;;  %v6438_v51 = vmul.f32 100.0, %v6417_v36 }
 0x293   : > { %v1490_v9 = vmul.f32 1.442695, %v1452_v62  ;;  %v1460_v14 = vmin.f32 %v6414_v34, 20.0  ;;  %4674 = vpow2.f32 %v1504_v1  ;;  %v1520_v62 = vmul.f32 1.442695, %v1467_v2 }
 0x294   : > { %v1373_v5 = vpop.f32.mrb[44].mxu1  ;;  %8648 = vst [vmem:[#allocation26_spill] sm:$0xff] %v6432_v24  ;;  %8649 = vst [vmem:[#allocation27_spill] sm:$0xff] %v6438_v51  ;;  %v1534_v1 = vmul.f32 1.442695, %v1474_v35  ;;  %v6443_v27 = vpop.eup %4666  ;;  %v1582_v53 = vadd.f32 1.0, %v1581_v43  ;;  %v1865_v2 = vsel %vm1417_vm12, %v6081_v57, %v1833_v33  ;;  %v1772_v7 = vmul.f32 %v6331_v22, %v6392_v63 }
 0x295   : > { %4676 = vpow2.f32 %v1490_v9  ;;  %v1375_v46 = vpop.f32.mrb[45].mxu1  ;;  %v1506_v26 = vmul.f32 1.442695, %v1460_v14  ;;  %v6441_v45 = vadd.f32 %v6053_v41, %v1373_v5  ;;  %v1453_v39 = vmin.f32 %v6427_v31, 20.0 }
 0x296   : > { %4678 = vlog2.f32 %v1650_v38  ;;  %v1377_v0 = vpop.f32.mrb[46].mxu1  ;;  %v1653_v9 = vmul.f32 -0.5, %v6420_v49  ;;  %v6456_v35 = vadd.f32 %v6053_v41, %v1375_v46  ;;  %v1461_v38 = vmin.f32 %v6438_v51, 20.0 }
 0x297   : > { %v1379_v20 = vpop.f32.mrb[47].mxu1  ;;  %v6450_v25 = vpop.eup %4668  ;;  %4680 = vpow2.f32 %v1506_v26  ;;  %v6453_v5 = vmul.f32 100.0, %v6441_v45  ;;  %v6459_v43 = vadd.f32 %v6083_v6, %v1377_v0  ;;  %v1475_v40 = vmin.f32 %v6432_v24, 20.0 }
 0x298   : > { %8650 = vst [vmem:[#allocation28_spill] sm:$0xff] %v6456_v35  ;;  %v1722_v14 = vadd.f32 1.0, %v6450_v25  ;;  %4682 = vpow2.f32 %v1520_v62  ;;  %v6464_v57 = vpop.eup %4670  ;;  %v1584_v26 = vand.u32 2147483647, %v6394_v21  ;;  %v1873_v41 = vsel %vm1425_vm13, %v6098_v59, %v1841_v3 }
 0x299   : > { %8651 = vst [vmem:[#allocation29_spill] sm:$0xff] %v6459_v43  ;;  %v1468_v33 = vmin.f32 %v6453_v5, 20.0  ;;  %4684 = vpow2.f32 %v1534_v1  ;;  %v1583_v0 = vmul.f32 %v6394_v21, %v1582_v53  ;;  %v1492_v46 = vmul.f32 1.442695, %v1453_v39 }
 0x29a   : > { %v1656_v36 = vand.u32 2147483647, %v6420_v49  ;;  %v6474_v62 = vmul.f32 100.0, %v6459_v43  ;;  %v1654_v51 = vadd.f32 1.0, %v1653_v9  ;;  %4686 = vlog2.f32 %v1722_v14 }
 0x29b   : > { %v1522_v31 = vmul.f32 1.442695, %v1468_v33  ;;  %v6477_v17 = vmul.f32 100.0, %v6456_v35  ;;  %v1508_v15 = vmul.f32 1.442695, %v1461_v38  ;;  %v1725_v59 = vmul.f32 -0.5, %v6450_v25 }
 0x29c   : > { %v4673_v24 = vpop.eup %4672  ;;  %v1476_v39 = vmin.f32 %v6474_v62, 20.0  ;;  %vm6484_vm15 = vcmp.lt.f32.partialorder %v1584_v26, 0.0004427343  ;;  %v1897_v3 = vpack.c.bf16 %v1873_v41, %v1865_v2  ;;  %v8654_v9 = vand.u32 2147483647, %v6301_v19 }
 0x29d   : > { %v1580_v1 = vmul.f32 0.6931472, %v4673_v24  ;;  %v6482_v53 = vpop.eup %4674  ;;  %4688 = vpow2.f32 %v1522_v31  ;;  %vm6497_vm3 = vcmp.lt.f32.partialorder %v1656_v36, 0.0004427343  ;;  %v1728_v26 = vand.u32 2147483647, %v6450_v25 }
 0x29e   : > { %vm6491_vm2 = vcmp.lt.f32.partialorder %v8654_v9, 0.0004427343  ;;  %v1536_v35 = vmul.f32 1.442695, %v1475_v40  ;;  %4690 = vpow2.f32 %v1492_v46  ;;  %v1469_v19 = vmin.f32 %v6477_v17, 20.0  ;;  %1999 = vmatprep.subr.bf16.mxu1 %v1897_v3 }
 0x29f   : > { %v4677_v24 = vpop.eup %4676  ;;  %v1586_v38 = vsel %vm6484_vm15, %v1583_v0, %v1580_v1  ;;  %v1538_v2 = vmul.f32 1.442695, %v1476_v39  ;;  %v1655_v9 = vmul.f32 %v6420_v49, %v1654_v51  ;;  %4692 = vpow2.f32 %v1508_v15 }
 0x2a0   : > { %v4679_v43 = vpop.eup %4678  ;;  %v1596_v31 = vadd.f32 1.0, %v4677_v24  ;;  %v1726_v21 = vadd.f32 1.0, %v1725_v59  ;;  %v8659_v36 = vpack.c.bf16 %v6209_v16, %v6204_v50  ;;  %v1834_v1 = vmul.f32 0.01, %v1586_v38 }
 0x2a1   : > { %v1652_v41 = vmul.f32 0.6931472, %v4679_v43  ;;  %v4681_v0 = vpop.eup %4680  ;;  %v1599_v40 = vmul.f32 -0.5, %v4677_v24  ;;  %v6508_v18 = vadd.f32 %v6083_v6, %v1379_v20  ;;  %vm6514_vm4 = vcmp.lt.f32.partialorder %v1728_v26, 0.0004427343 }
 0x2a2   : > { %2000 = vmatpush1.bf16.msra.mxu1 %v8659_v36  ;;  %4694 = vlog2.f32 %v1596_v31  ;;  %v6510_v46 = vpop.eup %4682  ;;  %v1668_v39 = vadd.f32 1.0, %v4681_v0  ;;  %v1524_v51 = vmul.f32 1.442695, %v1469_v19  ;;  %v1697_v15 = vmul.f32 0.6931472, %v6435_v29 }
 0x2a3   : > { %v1658_v43 = vsel %vm6497_vm3, %v1655_v9, %v1652_v41  ;;  %4696 = vpow2.f32 %v1536_v35  ;;  %v6518_v50 = vpop.eup %4684  ;;  %v1602_v6 = vand.u32 2147483647, %v4677_v24  ;;  %v1671_v20 = vmul.f32 -0.5, %v4681_v0 }
 0x2a4   : > { %v1842_v16 = vmul.f32 0.01, %v1658_v43  ;;  %4698 = vpow2.f32 %v1538_v2  ;;  %v1794_v59 = vadd.f32 1.0, %v6518_v50  ;;  %v4687_v3 = vpop.eup %4686  ;;  %v6525_v38 = vsel %vm1418_vm14, %v6275_v30, %v1834_v1 }
 0x2a5   : > { %4700 = vlog2.f32 %v1668_v39  ;;  %v1600_v33 = vadd.f32 1.0, %v1599_v40  ;;  %v6533_v26 = vmul.f32 100.0, %v6508_v18  ;;  %vm1439_vm6 = vcmp.gt.f32.partialorder %v6214_v44, 20.0  ;;  %v6614_v39 = vld [vmem:[%s8473_s1 + $0x30] sm:$0xff]  }
 0x2a6   : > { %v6530_v35 = vsel %vm1426_vm1, %v6286_v60, %v1842_v16  ;;  %v1674_v31 = vand.u32 2147483647, %v4681_v0  ;;  %4702 = vlog2.f32 %v1794_v59  ;;  %v1797_v30 = vmul.f32 -0.5, %v6518_v50 }
 0x2a7   : > { %v1898_v29 = vpack.c.bf16 %v6530_v35, %v6525_v38  ;;  %v6540_v48 = vpop.eup %4688  ;;  %v1724_v19 = vmul.f32 0.6931472, %v4687_v3  ;;  %v1727_v60 = vmul.f32 %v6450_v25, %v1726_v21  ;;  %4704 = vpow2.f32 %v1524_v51 }
 0x2a8   : > { %v1672_v2 = vadd.f32 1.0, %v1671_v20  ;;  %v1740_v41 = vadd.f32 1.0, %v6540_v48  ;;  %v1800_v9 = vand.u32 2147483647, %v6518_v50  ;;  %v1703_v36 = vsel %vm6491_vm2, %v6386_v23, %v1697_v15  ;;  %v6550_v1 = vpop.eup %4690 }
 0x2a9   : > { %v1601_v40 = vmul.f32 %v4677_v24, %v1600_v33  ;;  %vm6552_vm7 = vcmp.lt.f32.partialorder %v1602_v6, 0.0004427343  ;;  %vm1434_vm8 = vcmp.gt.f32.partialorder %v6351_v52, 20.0  ;;  %v1477_v63 = vmin.f32 %v6533_v26, 20.0  ;;  %v6559_v21 = vpop.eup %4692 }
 0x2aa   : > { %v1769_v25 = vmul.f32 0.6931472, %v6443_v27  ;;  %vm6561_vm9 = vcmp.lt.f32.partialorder %v1674_v31, 0.0004427343  ;;  %4706 = vlog2.f32 %v1740_v41  ;;  %v1798_v23 = vadd.f32 1.0, %v1797_v30 }
 0x2ab   : > { %v8666_v14 = vand.u32 2147483647, %v6331_v22  ;;  %vm1420_vm11 = vcmp.gt.f32.partialorder %v6397_v58, 20.0  ;;  %vm1428_vm12 = vcmp.gt.f32.partialorder %v6414_v34, 20.0  ;;  %v1730_v16 = vsel %vm6514_vm4, %v1727_v60, %v1724_v19 }
 0x2ac   : > { %v4695_v24 = vpop.eup %4694  ;;  %v1847_v51 = vmul.f32 0.01, %v1703_v36  ;;  %v1713_v15 = vadd.f32 1.0, %v6328_v55  ;;  %v1673_v59 = vmul.f32 %v4681_v0, %v1672_v2  ;;  %vm6574_vm13 = vcmp.lt.f32.partialorder %v1800_v9, 0.0004427343 }
 0x2ad   : > { %vm1774_vm10 = vcmp.lt.f32.partialorder %v8666_v14, 0.0004427343  ;;  %v6572_v6 = vpop.eup %4696  ;;  %v1598_v20 = vmul.f32 0.6931472, %v4695_v24  ;;  %v1743_v31 = vmul.f32 -0.5, %v6540_v48  ;;  %vm1442_vm14 = vcmp.gt.f32.partialorder %v6390_v8, 20.0 }
 0x2ae   : > { %v1775_v27 = vsel %vm1774_vm10, %v1772_v7, %v1769_v25  ;;  %v6578_v33 = vpop.eup %4698  ;;  %v1746_v49 = vand.u32 2147483647, %v6540_v48  ;;  %v6583_v30 = vmul.f32 1.442695, %v1477_v63  ;;  %4708 = vlog2.f32 %v1713_v15 }
 0x2af   : > { %v1855_v22 = vmul.f32 0.01, %v1775_v27  ;;  %v4701_v19 = vpop.eup %4700  ;;  %v1604_v0 = vsel %vm6552_vm7, %v1601_v40, %v1598_v20  ;;  %v1850_v60 = vmul.f32 0.01, %v1730_v16  ;;  %v1812_v7 = vadd.f32 1.0, %v6578_v33 }
 0x2b0   : > { %v1785_v2 = vadd.f32 1.0, %v6375_v11  ;;  %v1670_v41 = vmul.f32 0.6931472, %v4701_v19  ;;  %v1879_v9 = vsel %vm1431_vm5, %v6130_v61, %v1847_v51  ;;  %v1716_v63 = vmul.f32 -0.5, %v6328_v55  ;;  %v4703_v25 = vpop.eup %4702 }
 0x2b1   : > { %v1887_v36 = vsel %vm1439_vm6, %v6191_v54, %v1855_v22  ;;  %v1836_v14 = vmul.f32 0.01, %v1604_v0  ;;  %v1799_v40 = vmul.f32 %v6518_v50, %v1798_v23  ;;  %4710 = vlog2.f32 %v1812_v7  ;;  %v6597_v24 = vpop.eup %4704 }
 0x2b2   : > { %v1903_v43 = vpack.c.bf16 %v1887_v36, %v1879_v9  ;;  %v1676_v16 = vsel %vm6561_vm9, %v1673_v59, %v1670_v41  ;;  %v1744_v27 = vadd.f32 1.0, %v1743_v31  ;;  %vm6601_vm15 = vcmp.lt.f32.partialorder %v1746_v49, 0.0004427343 }
 0x2b3   : > { %v1796_v42 = vmul.f32 0.6931472, %v4703_v25  ;;  %v1844_v54 = vmul.f32 0.01, %v1676_v16  ;;  %v6608_v44 = vsel %vm1434_vm8, %v6339_v12, %v1850_v60  ;;  %v1815_v50 = vmul.f32 -0.5, %v6578_v33 }
 0x2b4   : > { %1948 = vmatprep.subr.bf16.mxu0 %v1903_v43  ;;  %4712 = vlog2.f32 %v1785_v2  ;;  %v1717_v51 = vadd.f32 1.0, %v1716_v63  ;;  %v1788_v15 = vmul.f32 -0.5, %v6375_v11  ;;  %v8671_v52 = vpack.c.bf16 %v6296_v4, %v6291_v47  ;;  %v4707_v20 = vpop.eup %4706 }
 0x2b5   : > { %v1802_v23 = vsel %vm6574_vm13, %v1799_v40, %v1796_v42  ;;  %v1587_v12 = vadd.f32 1.0, %v6464_v57  ;;  %v6626_v59 = vsel %vm1420_vm11, %v6380_v56, %v1836_v14  ;;  %v6631_v3 = vsel %vm1428_vm12, %v6403_v32, %v1844_v54  ;;  %v6670_v40 = vld [vmem:[%s8473_s1 + $0x38] sm:$0xff]  }
 0x2b6   : > { %1949 = vmatpush1.bf16.msra.mxu0 %v8671_v52  ;;  %v1858_v22 = vmul.f32 0.01, %v1802_v23  ;;  %v1719_v31 = vand.u32 2147483647, %v6328_v55  ;;  %v1900_v47 = vpack.c.bf16 %v6631_v3, %v6626_v59  ;;  %v1742_v4 = vmul.f32 0.6931472, %v4707_v20 }
 0x2b7   : > { %v1745_v49 = vmul.f32 %v6540_v48, %v1744_v27  ;;  %v1590_v19 = vmul.f32 -0.5, %v6464_v57  ;;  %vm1436_vm1 = vcmp.gt.f32.partialorder %v6453_v5, 20.0  ;;  %v1816_v58 = vadd.f32 1.0, %v1815_v50  ;;  %v8701_v59 = vld [vmem:[#allocation23_spill] sm:$0xff] }
 0x2b8   : > { %v6642_v56 = vsel %vm1442_vm14, %v6363_v10, %v1858_v22  ;;  %v1789_v32 = vadd.f32 1.0, %v1788_v15  ;;  %4714 = vlog2.f32 %v1587_v12  ;;  %v4709_v34 = vpop.eup %4708  ;;  %v1818_v48 = vand.u32 2147483647, %v6578_v33 }
 0x2b9   : > { %4275 = vmatmul.mubr.msk.bf16.vlgmr.msra.gmra.mrb[48].mxu0 %vm297_vm0, %v6614_v39  ;;  %v1906_v0 = vpack.c.bf16 %v6642_v56, %v6608_v44  ;;  %v1718_v60 = vmul.f32 %v6328_v55, %v1717_v51  ;;  %v1659_v8 = vadd.f32 1.0, %v6482_v53  ;;  %v1748_v10 = vsel %vm6601_vm15, %v1745_v49, %v1742_v4  ;;  %v8678_v4 = vld [vmem:[#allocation17_spill] sm:$0xff] }
 0x2ba   : > { %1988 = vmatprep.mubr.bf16.mxu0 %v8594_v13  ;;  %v1715_v7 = vmul.f32 0.6931472, %v4709_v34  ;;  %vm6654_vm2 = vcmp.lt.f32.partialorder %v1719_v31, 0.0004427343  ;;  %v1791_v41 = vand.u32 2147483647, %v6375_v11  ;;  %v1817_v25 = vmul.f32 %v6578_v33, %v1816_v58 }
 0x2bb   : > { %vm1433_vm3 = vcmp.gt.f32.partialorder %v6187_v37, 20.0  ;;  %vm1441_vm4 = vcmp.gt.f32.partialorder %v6218_v28, 20.0  ;;  %v1591_v9 = vadd.f32 1.0, %v1590_v19  ;;  %v1593_v55 = vand.u32 2147483647, %v6464_v57  ;;  %v4711_v63 = vpop.eup %4710  ;;  %v8679_v49 = vld [vmem:[#allocation29_spill] sm:$0xff] }
 0x2bc   : > { %4716 = vlog2.f32 %v1659_v8  ;;  %v1605_v36 = vadd.f32 1.0, %v6550_v1  ;;  %vm1444_vm5 = vcmp.gt.f32.partialorder %v6474_v62, 20.0  ;;  %v1790_v14 = vmul.f32 %v6375_v11, %v1789_v32 }
 0x2bd   : > { %4718 = vpow2.f32 %v6583_v30  ;;  %v1852_v43 = vmul.f32 0.01, %v1748_v10  ;;  %v1814_v16 = vmul.f32 0.6931472, %v4711_v63  ;;  %v1721_v27 = vsel %vm6654_vm2, %v1718_v60, %v1715_v7  ;;  %v8680_v60 = vld [vmem:[#allocation12_spill] sm:$0xff]  ;;  %v8681_v10 = vld [vmem:[#allocation13_spill] sm:$0xff] }
 0x2be   : > { %4720 = vlog2.f32 %v1605_v36  ;;  %v4713_v61 = vpop.eup %4712  ;;  %vm1819_vm6 = vcmp.lt.f32.partialorder %v1818_v48, 0.0004427343  ;;  %vm6674_vm7 = vcmp.lt.f32.partialorder %v1791_v41, 0.0004427343  ;;  %v1662_v33 = vmul.f32 -0.5, %v6482_v53 }
 0x2bf   : > { %v1677_v11 = vadd.f32 1.0, %v6559_v21  ;;  %v1820_v30 = vsel %vm1819_vm6, %v1817_v25, %v1814_v16  ;;  %v1787_v54 = vmul.f32 0.6931472, %v4713_v61  ;;  %v1592_v50 = vmul.f32 %v6464_v57, %v1591_v9  ;;  %v8682_v9 = vld [vmem:[#allocation19_spill] sm:$0xff]  ;;  %v8683_v16 = vld [vmem:[#allocation25_spill] sm:$0xff] }
 0x2c0   : > { %vm6681_vm8 = vcmp.lt.f32.partialorder %v1593_v55, 0.0004427343  ;;  %v1860_v51 = vmul.f32 0.01, %v1820_v30  ;;  %v1849_v15 = vmul.f32 0.01, %v1721_v27  ;;  %v6691_v12 = vsel %vm1436_vm1, %v6441_v45, %v1852_v43 }
 0x2c1   : > { %4276 = vmatmul.mubr.msk.bf16.gmra.mrb[52].mxu0 %vm297_vm0, %v6670_v40  ;;  %v1608_v52 = vmul.f32 -0.5, %v6550_v1  ;;  %4722 = vlog2.f32 %v1677_v11  ;;  %v1793_v57 = vsel %vm6674_vm7, %v1790_v14, %v1787_v54  ;;  %v1665_v20 = vand.u32 2147483647, %v6482_v53  ;;  %v8685_v11 = vld [vmem:[#allocation14_spill] sm:$0xff] }
 0x2c2   : > { %v1731_v22 = vadd.f32 1.0, %v6510_v46  ;;  %2084 = vmatprep.mubr.bf16.mxu0 %v8594_v13  ;;  %v4715_v31 = vpop.eup %4714  ;;  %vm1419_vm9 = vcmp.gt.f32.partialorder %v8678_v4, 20.0  ;;  %v6702_v19 = vsel %vm1444_vm5, %v8679_v49, %v1860_v51  ;;  %v1857_v5 = vmul.f32 0.01, %v1793_v57  ;;  %v8691_v49 = vld [vmem:[#allocation10_spill] sm:$0xff] }
 0x2c3   : > { %v1663_v45 = vadd.f32 1.0, %v1662_v33  ;;  %v1611_v58 = vand.u32 2147483647, %v6550_v1  ;;  %v1908_v32 = vpack.c.bf16 %v6702_v19, %v6691_v12  ;;  %v1589_v34 = vmul.f32 0.6931472, %v4715_v31  ;;  %v8684_v33 = vld [vmem:[#allocation18_spill] sm:$0xff] }
 0x2c4   : > { %v1680_v48 = vmul.f32 -0.5, %v6559_v21  ;;  %4724 = vlog2.f32 %v1731_v22  ;;  %v1881_v8 = vsel %vm1433_vm3, %v8680_v60, %v1849_v15  ;;  %v1889_v62 = vsel %vm1441_vm4, %v8681_v10, %v1857_v5  ;;  %v8698_v15 = vld [vmem:[#allocation26_spill] sm:$0xff] }
 0x2c5   : > { %v1609_v7 = vadd.f32 1.0, %v1608_v52  ;;  %v1803_v2 = vadd.f32 1.0, %v6572_v6  ;;  %vm1427_vm10 = vcmp.gt.f32.partialorder %v8682_v9, 20.0  ;;  %v1905_v55 = vpack.c.bf16 %v1889_v62, %v1881_v8 }
 0x2c6   : > { %v4717_v41 = vpop.eup %4716  ;;  %v1595_v36 = vsel %vm6681_vm8, %v1592_v50, %v1589_v34  ;;  %v1683_v63 = vand.u32 2147483647, %v6559_v21  ;;  %v1664_v14 = vmul.f32 %v6482_v53, %v1663_v45  ;;  %v1734_v28 = vmul.f32 -0.5, %v6510_v46  ;;  %v8692_v45 = vld [vmem:[#allocation11_spill] sm:$0xff] }
 0x2c7   : > { %v6719_v25 = vpop.eup %4718  ;;  %v1661_v37 = vmul.f32 0.6931472, %v4717_v41  ;;  %4726 = vlog2.f32 %v1803_v2  ;;  %vm1421_vm11 = vcmp.gt.f32.partialorder %v8683_v16, 20.0  ;;  %2001 = vmatprep.subr.bf16.mxu1 %v1905_v55  ;;  %vm1666_vm12 = vcmp.lt.f32.partialorder %v1665_v20, 0.0004427343 }
 0x2c8   : > { %v4721_v43 = vpop.eup %4720  ;;  %v1835_v27 = vmul.f32 0.01, %v1595_v36  ;;  %v1681_v61 = vadd.f32 1.0, %v1680_v48  ;;  %v1749_v42 = vadd.f32 1.0, %v6597_v24  ;;  %v8686_v30 = vpack.c.bf16 %v8684_v33, %v8685_v11  ;;  %v8693_v36 = vld [vmem:[#allocation27_spill] sm:$0xff] }
 0x2c9   : > { %v1667_v54 = vsel %vm1666_vm12, %v1664_v14, %v1661_v37  ;;  %v1607_v50 = vmul.f32 0.6931472, %v4721_v43  ;;  %v1610_v53 = vmul.f32 %v6550_v1, %v1609_v7  ;;  %vm6729_vm13 = vcmp.lt.f32.partialorder %v1611_v58, 0.0004427343  ;;  %v8694_v14 = vld [vmem:[#allocation15_spill] sm:$0xff]  ;;  %v8695_v43 = vld [vmem:[#allocation22_spill] sm:$0xff] }
 0x2ca   : > { %2002 = vmatpush1.bf16.msra.mxu1 %v8686_v30  ;;  %v1843_v51 = vmul.f32 0.01, %v1667_v54  ;;  %vm6733_vm14 = vcmp.lt.f32.partialorder %v1683_v63, 0.0004427343  ;;  %v1806_v52 = vmul.f32 -0.5, %v6572_v6  ;;  %4728 = vlog2.f32 %v1749_v42 }
 0x2cb   : > { %v4723_v57 = vpop.eup %4722  ;;  %v1613_v20 = vsel %vm6729_vm13, %v1610_v53, %v1607_v50  ;;  %v1735_v22 = vadd.f32 1.0, %v1734_v28  ;;  %v1737_v31 = vand.u32 2147483647, %v6510_v46  ;;  %v1821_v1 = vadd.f32 1.0, %v6719_v25 }
 0x2cc   : > { %v1867_v5 = vsel %vm1419_vm9, %v8691_v49, %v1835_v27  ;;  %v1875_v58 = vsel %vm1427_vm10, %v8692_v45, %v1843_v51  ;;  %v1679_v34 = vmul.f32 0.6931472, %v4723_v57  ;;  %v1682_v48 = vmul.f32 %v6559_v21, %v1681_v61  ;;  %v8696_v27 = vld [vmem:[#allocation24_spill] sm:$0xff] }
 0x2cd   : > { %4277 = vmatmul.mubr.msk.bf16.vlgmr.msra.gmra.mrb[48].mxu1 %vm297_vm0, %v6614_v39  ;;  %v1899_v60 = vpack.c.bf16 %v1875_v58, %v1867_v5  ;;  %v1837_v8 = vmul.f32 0.01, %v1613_v20  ;;  %v1752_v10 = vmul.f32 -0.5, %v6597_v24  ;;  %4730 = vlog2.f32 %v1821_v1  ;;  %v8700_v20 = vld [vmem:[#allocation20_spill] sm:$0xff] }
 0x2ce   : > { %2041 = vmatprep.mubr.bf16.mxu1 %v8594_v13  ;;  %v4725_v62 = vpop.eup %4724  ;;  %v1685_v7 = vsel %vm6733_vm14, %v1682_v48, %v1679_v34  ;;  %v1807_v4 = vadd.f32 1.0, %v1806_v52  ;;  %v1736_v9 = vmul.f32 %v6510_v46, %v1735_v22  ;;  %v1809_v55 = vand.u32 2147483647, %v6572_v6  ;;  %v8699_v52 = vld [vmem:[#allocation16_spill] sm:$0xff] }
 0x2cf   : > { %2052 = vmatprep.subr.bf16.mxu0 %v1899_v60  ;;  %v1845_v2 = vmul.f32 0.01, %v1685_v7  ;;  %v1733_v41 = vmul.f32 0.6931472, %v4725_v62  ;;  %v5107_v21 = vmov 1   ;;  %vm1429_vm15 = vcmp.gt.f32.partialorder %v8693_v36, 20.0 }
 0x2d0   : > { %4432 = vset.pattern.permute.xlu1 %v5107_v21  ;;  %2053 = vmatpush1.bf16.msra.mxu0 %v1898_v29  ;;  %vm1738_vm1 = vcmp.lt.f32.partialorder %v1737_v31, 0.0004427343  ;;  %v1755_v63 = vand.u32 2147483647, %v6597_v24  ;;  %v1824_v37 = vmul.f32 -0.5, %v6719_v25  ;;  %v1869_v46 = vsel %vm1421_vm11, %v8695_v43, %v1837_v8  ;;  %v8702_v58 = vld [vmem:[#allocation28_spill] sm:$0xff] }
 0x2d1   : > { %4434 = vperm.xlu1 %4432, %v8694_v14   ;;  %v4727_v28 = vpop.eup %4726  ;;  %v1877_v61 = vsel %vm1429_vm15, %v8696_v27, %v1845_v2  ;;  %v1739_v42 = vsel %vm1738_vm1, %v1736_v9, %v1733_v41  ;;  %v1753_v33 = vadd.f32 1.0, %v1752_v10  ;;  %v1808_v38 = vmul.f32 %v6572_v6, %v1807_v4  ;;  %v8697_v6 = vld [vmem:[#allocation21_spill] sm:$0xff]  ;;  %v6835_v43 = vld [vmem:[%s8473_s1 + $0x40] sm:$0xff]  }
 0x2d2   : > { %v1901_v11 = vpack.c.bf16 %v1877_v61, %v1869_v46  ;;  %v1805_v30 = vmul.f32 0.6931472, %v4727_v28  ;;  %vm1810_vm2 = vcmp.lt.f32.partialorder %v1809_v55, 0.0004427343  ;;  %v1851_v35 = vmul.f32 0.01, %v1739_v42 }
 0x2d3   : > { %v1825_v50 = vadd.f32 1.0, %v1824_v37  ;;  %v1754_v23 = vmul.f32 %v6597_v24, %v1753_v33  ;;  %v1827_v51 = vand.u32 2147483647, %v6719_v25  ;;  %vm1435_vm3 = vcmp.gt.f32.partialorder %v8697_v6, 20.0 }
 0x2d4   : > { %v4729_v29 = vpop.eup %4728  ;;  %2105 = vmatprep.subr.bf16.mxu1 %v1901_v11  ;;  %v1811_v54 = vsel %vm1810_vm2, %v1808_v38, %v1805_v30  ;;  %vm1443_vm4 = vcmp.gt.f32.partialorder %v8698_v15, 20.0  ;;  %vm1756_vm5 = vcmp.lt.f32.partialorder %v1755_v63, 0.0004427343  ;;  %v1883_v22 = vsel %vm1435_vm3, %v8700_v20, %v1851_v35 }
 0x2d5   : > { %4278 = vmatmul.mubr.msk.bf16.gmra.mrb[52].mxu1 %vm297_vm0, %v6670_v40  ;;  %v1859_v16 = vmul.f32 0.01, %v1811_v54  ;;  %v1751_v53 = vmul.f32 0.6931472, %v4729_v29  ;;  %4439 = vperm.xlu1 %4432, %v8699_v52   ;;  %v1826_v24 = vmul.f32 %v6719_v25, %v1825_v50  ;;  %vm1828_vm6 = vcmp.lt.f32.partialorder %v1827_v51, 0.0004427343 }
 0x2d6   : > { %2106 = vmatpush1.bf16.msra.mxu1 %v1900_v47  ;;  %2137 = vmatprep.mubr.bf16.mxu1 %v8594_v13  ;;  %vm1437_vm7 = vcmp.gt.f32.partialorder %v6477_v17, 20.0  ;;  %vm1445_vm8 = vcmp.gt.f32.partialorder %v6533_v26, 20.0  ;;  %v6850_v29 = vld [vmem:[%s8473_s1 + $0x48] sm:$0xff]  }
 0x2d7   : > { %v4731_v57 = vpop.eup %4730  ;;  %v1891_v3 = vsel %vm1443_vm4, %v8701_v59, %v1859_v16  ;;  %v1757_v47 = vsel %vm1756_vm5, %v1754_v23, %v1751_v53 }
 0x2d8   : > { %v1907_v31 = vpack.c.bf16 %v1891_v3, %v1883_v22  ;;  %v1823_v1 = vmul.f32 0.6931472, %v4731_v57  ;;  %v1853_v49 = vmul.f32 0.01, %v1757_v47 }
 0x2da   : > { %2054 = vmatprep.subr.bf16.mxu0 %v1907_v31  ;;  %v1829_v5 = vsel %vm1828_vm6, %v1826_v24, %v1823_v1  ;;  %v1885_v34 = vsel %vm1437_vm7, %v8702_v58, %v1853_v49 }
 0x2db   : > { %v1861_v45 = vmul.f32 0.01, %v1829_v5  ;;  %2055 = vmatpush1.bf16.msra.mxu0 %v1906_v0 }
 0x2dd   : > { %v1893_v48 = vsel %vm1445_vm8, %v6508_v18, %v1861_v45 }
 0x2de   : > { %v1909_v60 = vpack.c.bf16 %v1893_v48, %v1885_v34  ;;  %4279 = vmatmul.mubr.msk.bf16.vlgmr.msra.gmra.mrb[56].mxu0 %vm297_vm0, %v6614_v39 }
 0x2df   : > { %2094 = vmatprep.mubr.bf16.mxu0 %v8594_v13 }
 0x2e0   : > { %2107 = vmatprep.subr.bf16.mxu1 %v1909_v60 }
 0x2e1   : > { %2108 = vmatpush1.bf16.msra.mxu1 %v1908_v32 }
 0x2e4   : > { %4281 = vmatmul.mubr.msk.bf16.vlgmr.msra.gmra.mrb[56].mxu1 %vm297_vm0, %v6614_v39 }
 0x2e5   : > { %2147 = vmatprep.mubr.bf16.mxu1 %v8594_v13 }
 0x2e6   : > { %4280 = vmatmul.mubr.msk.bf16.gmra.mrb[60].mxu0 %vm297_vm0, %v6670_v40 }
 0x2e7   : > { %2226 = vmatprep.mubr.bf16.mxu0 %v8594_v13 }
 0x2ec   : > { %4282 = vmatmul.mubr.msk.bf16.gmra.mrb[60].mxu1 %vm297_vm0, %v6670_v40 }
 0x2ed   : > { %2279 = vmatprep.mubr.bf16.mxu1 %v8594_v13 }
 0x350   : > { %v4435_v17 = vpop.permute.xlu1 %4434 }
 0x351   : > { %v6805_v18 = vunpack.i.l.bf16 %v4435_v17  ;;  %v6808_v26 = vunpack.i.h.bf16 %v4435_v17 }
 0x354   : > { %v4440_v19 = vpop.permute.xlu1 %4439 }
 0x355   : > { %v6819_v10 = vunpack.i.l.bf16 %v4440_v19  ;;  %v6822_v7 = vunpack.i.h.bf16 %v4440_v19 }
 0x38c   : > { %v1980_v44 = vpop.f32.mrb[48].mxu0 }
 0x38d   : > { %v1982_v39 = vpop.f32.mrb[49].mxu0  ;;  %v1981_v56 = vadd.f32 %v6805_v18, %v1980_v44 }
 0x38e   : > { %v1983_v0 = vadd.f32 %v6805_v18, %v1982_v39  ;;  %v1984_v12 = vpop.f32.mrb[50].mxu0 }
 0x38f   : > { %v1985_v32 = vadd.f32 %v6808_v26, %v1984_v12  ;;  %3990 = vst [vmem:[%s6813_s3] sm:$0xff] %v1981_v56  ;;  %v1986_v40 = vpop.f32.mrb[51].mxu0 }
 0x390   : > { %3991 = vst [vmem:[%s6813_s3 + $0x8] sm:$0xff] %v1983_v0  ;;  %v1987_v25 = vadd.f32 %v6808_v26, %v1986_v40 }
 0x391   : > { %v2158_v8 = vpack.c.bf16 %v1985_v32, %v1981_v56  ;;  %3998 = vst [vmem:[%s6813_s3 + $0x40] sm:$0xff] %v1985_v32 }
 0x392   : > { %v2159_v62 = vpack.c.bf16 %v1987_v25, %v1983_v0  ;;  %3999 = vst [vmem:[%s6813_s3 + $0x48] sm:$0xff] %v1987_v25 }
 0x394   : > { %v1990_v4 = vpop.f32.mrb[52].mxu0  ;;  %2194 = vmatprep.subr.bf16.mxu0 %v2159_v62 }
 0x395   : > { %v1992_v2 = vpop.f32.mrb[53].mxu0  ;;  %v1991_v41 = vadd.f32 %v6819_v10, %v1990_v4  ;;  %2195 = vmatpush1.bf16.msra.mxu0 %v2158_v8 }
 0x396   : > { %v1993_v9 = vadd.f32 %v6819_v10, %v1992_v2  ;;  %v1994_v55 = vpop.f32.mrb[54].mxu0 }
 0x397   : > { %v1995_v21 = vadd.f32 %v6822_v7, %v1994_v55  ;;  %4006 = vst [vmem:[%s6813_s3 + $0x80] sm:$0xff] %v1991_v41  ;;  %v1996_v36 = vpop.f32.mrb[55].mxu0 }
 0x398   : > { %4007 = vst [vmem:[%s6813_s3 + $0x88] sm:$0xff] %v1993_v9  ;;  %v1997_v63 = vadd.f32 %v6822_v7, %v1996_v36 }
 0x399   : > { %v2166_v37 = vpack.c.bf16 %v1995_v21, %v1991_v41  ;;  %4014 = vst [vmem:[%s6813_s3 + $0xc0] sm:$0xff] %v1995_v21 }
 0x39a   : > { %v2167_v28 = vpack.c.bf16 %v1997_v63, %v1993_v9  ;;  %4015 = vst [vmem:[%s6813_s3 + $0xc8] sm:$0xff] %v1997_v63 }
 0x39c   : > { %2196 = vmatprep.subr.bf16.mxu0 %v2167_v28 }
 0x39d   : > { %2197 = vmatpush1.bf16.msra.mxu0 %v2166_v37 }
 0x3a0   : > { %v2033_v46 = vpop.f32.mrb[48].mxu1  ;;  %4285 = vmatmul.mubr.msk.bf16.vlgmr.msra.gmra.mrb[8].mxu0 %vm297_vm0, %v6835_v43 }
 0x3a1   : > { %v2035_v27 = vpop.f32.mrb[49].mxu1  ;;  %v2034_v61 = vadd.f32 %v6805_v18, %v2033_v46  ;;  %2236 = vmatprep.mubr.bf16.mxu0 %v8594_v13 }
 0x3a2   : > { %v2036_v42 = vadd.f32 %v6805_v18, %v2035_v27  ;;  %v2037_v33 = vpop.f32.mrb[50].mxu1 }
 0x3a3   : > { %v2038_v11 = vadd.f32 %v6808_v26, %v2037_v33  ;;  %3992 = vst [vmem:[%s6813_s3 + $0x10] sm:$0xff] %v2034_v61  ;;  %v2039_v30 = vpop.f32.mrb[51].mxu1 }
 0x3a4   : > { %3993 = vst [vmem:[%s6813_s3 + $0x18] sm:$0xff] %v2036_v42  ;;  %v2040_v38 = vadd.f32 %v6808_v26, %v2039_v30 }
 0x3a5   : > { %v2160_v35 = vpack.c.bf16 %v2038_v11, %v2034_v61  ;;  %4000 = vst [vmem:[%s6813_s3 + $0x50] sm:$0xff] %v2038_v11 }
 0x3a6   : > { %v2161_v54 = vpack.c.bf16 %v2040_v38, %v2036_v42  ;;  %4001 = vst [vmem:[%s6813_s3 + $0x58] sm:$0xff] %v2040_v38 }
 0x3a8   : > { %v2043_v50 = vpop.f32.mrb[52].mxu1  ;;  %2247 = vmatprep.subr.bf16.mxu1 %v2161_v54  ;;  %4286 = vmatmul.mubr.msk.bf16.gmra.mrb[12].mxu0 %vm297_vm0, %v6850_v29 }
 0x3a9   : > { %v2045_v16 = vpop.f32.mrb[53].mxu1  ;;  %v2044_v53 = vadd.f32 %v6819_v10, %v2043_v50  ;;  %2248 = vmatpush1.bf16.msra.mxu1 %v2160_v35  ;;  %2332 = vmatprep.mubr.bf16.mxu0 %v8594_v13 }
 0x3aa   : > { %v2046_v23 = vadd.f32 %v6819_v10, %v2045_v16  ;;  %v2047_v51 = vpop.f32.mrb[54].mxu1 }
 0x3ab   : > { %v2048_v6 = vadd.f32 %v6822_v7, %v2047_v51  ;;  %4008 = vst [vmem:[%s6813_s3 + $0x90] sm:$0xff] %v2044_v53  ;;  %v2049_v15 = vpop.f32.mrb[55].mxu1 }
 0x3ac   : > { %4009 = vst [vmem:[%s6813_s3 + $0x98] sm:$0xff] %v2046_v23  ;;  %v2050_v57 = vadd.f32 %v6822_v7, %v2049_v15 }
 0x3ad   : > { %v2168_v20 = vpack.c.bf16 %v2048_v6, %v2044_v53  ;;  %4016 = vst [vmem:[%s6813_s3 + $0xd0] sm:$0xff] %v2048_v6 }
 0x3ae   : > { %v2169_v22 = vpack.c.bf16 %v2050_v57, %v2046_v23  ;;  %4017 = vst [vmem:[%s6813_s3 + $0xd8] sm:$0xff] %v2050_v57 }
 0x3b0   : > { %2249 = vmatprep.subr.bf16.mxu1 %v2169_v22 }
 0x3b1   : > { %2250 = vmatpush1.bf16.msra.mxu1 %v2168_v20  ;;  %v2086_v59 = vpop.f32.mrb[56].mxu0 }
 0x3b2   : > { %v2087_v3 = vadd.f32 %v6805_v18, %v2086_v59  ;;  %v2088_v47 = vpop.f32.mrb[57].mxu0 }
 0x3b3   : > { %v2089_v31 = vadd.f32 %v6805_v18, %v2088_v47  ;;  %v2090_v1 = vpop.f32.mrb[58].mxu0 }
 0x3b4   : > { %4287 = vmatmul.mubr.msk.bf16.vlgmr.msra.gmra.mrb[8].mxu1 %vm297_vm0, %v6835_v43  ;;  %3994 = vst [vmem:[%s6813_s3 + $0x20] sm:$0xff] %v2087_v3  ;;  %v2091_v24 = vadd.f32 %v6808_v26, %v2090_v1  ;;  %v2092_v49 = vpop.f32.mrb[59].mxu0 }
 0x3b5   : > { %2289 = vmatprep.mubr.bf16.mxu1 %v8594_v13  ;;  %3995 = vst [vmem:[%s6813_s3 + $0x28] sm:$0xff] %v2089_v31  ;;  %v2093_v5 = vadd.f32 %v6808_v26, %v2092_v49 }
 0x3b6   : > { %v2162_v45 = vpack.c.bf16 %v2091_v24, %v2087_v3  ;;  %4002 = vst [vmem:[%s6813_s3 + $0x60] sm:$0xff] %v2091_v24 }
 0x3b7   : > { %v2139_v58 = vpop.f32.mrb[56].mxu1  ;;  %v2163_v34 = vpack.c.bf16 %v2093_v5, %v2089_v31  ;;  %4003 = vst [vmem:[%s6813_s3 + $0x68] sm:$0xff] %v2093_v5 }
 0x3b8   : > { %v2140_v48 = vadd.f32 %v6805_v18, %v2139_v58  ;;  %v2141_v60 = vpop.f32.mrb[57].mxu1 }
 0x3b9   : > { %v2142_v17 = vadd.f32 %v6805_v18, %v2141_v60  ;;  %v2143_v44 = vpop.f32.mrb[58].mxu1  ;;  %v2096_v39 = vpop.f32.mrb[60].mxu0  ;;  %2300 = vmatprep.subr.bf16.mxu0 %v2163_v34 }
 0x3ba   : > { %3996 = vst [vmem:[%s6813_s3 + $0x30] sm:$0xff] %v2140_v48  ;;  %v2144_v56 = vadd.f32 %v6808_v26, %v2143_v44  ;;  %v2145_v0 = vpop.f32.mrb[59].mxu1  ;;  %v2097_v12 = vadd.f32 %v6819_v10, %v2096_v39  ;;  %v2098_v19 = vpop.f32.mrb[61].mxu0  ;;  %2301 = vmatpush1.bf16.msra.mxu0 %v2162_v45 }
 0x3bb   : > { %3997 = vst [vmem:[%s6813_s3 + $0x38] sm:$0xff] %v2142_v17  ;;  %v2146_v18 = vadd.f32 %v6808_v26, %v2145_v0  ;;  %v2099_v32 = vadd.f32 %v6819_v10, %v2098_v19  ;;  %v2100_v40 = vpop.f32.mrb[62].mxu0 }
 0x3bc   : > { %4288 = vmatmul.mubr.msk.bf16.gmra.mrb[12].mxu1 %vm297_vm0, %v6850_v29  ;;  %v2164_v25 = vpack.c.bf16 %v2144_v56, %v2140_v48  ;;  %4004 = vst [vmem:[%s6813_s3 + $0x70] sm:$0xff] %v2144_v56  ;;  %4010 = vst [vmem:[%s6813_s3 + $0xa0] sm:$0xff] %v2097_v12  ;;  %v2101_v8 = vadd.f32 %v6822_v7, %v2100_v40  ;;  %v2102_v62 = vpop.f32.mrb[63].mxu0 }
 0x3bd   : > { %2385 = vmatprep.mubr.bf16.mxu1 %v8594_v13  ;;  %v2165_v4 = vpack.c.bf16 %v2146_v18, %v2142_v17  ;;  %4005 = vst [vmem:[%s6813_s3 + $0x78] sm:$0xff] %v2146_v18  ;;  %4011 = vst [vmem:[%s6813_s3 + $0xa8] sm:$0xff] %v2099_v32  ;;  %v2103_v2 = vadd.f32 %v6822_v7, %v2102_v62 }
 0x3be   : > { %v2170_v41 = vpack.c.bf16 %v2101_v8, %v2097_v12  ;;  %4018 = vst [vmem:[%s6813_s3 + $0xe0] sm:$0xff] %v2101_v8 }
 0x3bf   : > { %v2149_v26 = vpop.f32.mrb[60].mxu1  ;;  %2353 = vmatprep.subr.bf16.mxu1 %v2165_v4  ;;  %v2171_v9 = vpack.c.bf16 %v2103_v2, %v2099_v32  ;;  %4019 = vst [vmem:[%s6813_s3 + $0xe8] sm:$0xff] %v2103_v2 }
 0x3c0   : > { %v2150_v55 = vadd.f32 %v6819_v10, %v2149_v26  ;;  %v2151_v21 = vpop.f32.mrb[61].mxu1  ;;  %2354 = vmatpush1.bf16.msra.mxu1 %v2164_v25 }
 0x3c1   : > { %v2152_v36 = vadd.f32 %v6819_v10, %v2151_v21  ;;  %v2153_v63 = vpop.f32.mrb[62].mxu1  ;;  %2302 = vmatprep.subr.bf16.mxu0 %v2171_v9 }
 0x3c2   : > { %4012 = vst [vmem:[%s6813_s3 + $0xb0] sm:$0xff] %v2150_v55  ;;  %v2154_v37 = vadd.f32 %v6822_v7, %v2153_v63  ;;  %v2155_v28 = vpop.f32.mrb[63].mxu1  ;;  %2303 = vmatpush1.bf16.msra.mxu0 %v2170_v41 }
 0x3c3   : > { %4013 = vst [vmem:[%s6813_s3 + $0xb8] sm:$0xff] %v2152_v36  ;;  %v2156_v46 = vadd.f32 %v6822_v7, %v2155_v28 }
 0x3c4   : > { %v2172_v27 = vpack.c.bf16 %v2154_v37, %v2150_v55  ;;  %4020 = vst [vmem:[%s6813_s3 + $0xf0] sm:$0xff] %v2154_v37 }
 0x3c5   : > { %v2173_v61 = vpack.c.bf16 %v2156_v46, %v2152_v36  ;;  %4021 = vst [vmem:[%s6813_s3 + $0xf8] sm:$0xff] %v2156_v46  ;;  %4289 = vmatmul.mubr.msk.bf16.vlgmr.msra.gmra.mrb[24].mxu0 %vm297_vm0, %v6835_v43 }
 0x3c6   : > { %2342 = vmatprep.mubr.bf16.mxu0 %v8594_v13 }
 0x3c7   : > { %2355 = vmatprep.subr.bf16.mxu1 %v2173_v61 }
 0x3c8   : > { %2356 = vmatpush1.bf16.msra.mxu1 %v2172_v27 }
 0x3cb   : > { %4291 = vmatmul.mubr.msk.bf16.vlgmr.msra.gmra.mrb[24].mxu1 %vm297_vm0, %v6835_v43 }
 0x3cc   : > { %2395 = vmatprep.mubr.bf16.mxu1 %v8594_v13 }
 0x3cd   : > { %4290 = vmatmul.mubr.msk.bf16.gmra.mrb[28].mxu0 %vm297_vm0, %v6850_v29 }
 0x3ce   : > { %3034 = vmatprep.mubr.bf16.mxu0 %v8594_v13 }
 0x3d3   : > { %4292 = vmatmul.mubr.msk.bf16.gmra.mrb[28].mxu1 %vm297_vm0, %v6850_v29 }
 0x3d4   : > { %3087 = vmatprep.mubr.bf16.mxu1 %v8594_v13 }
 0x473   : > { %v6914_v10 = vpop.f32.mrb[8].mxu0 }
 0x474   : > { %v6917_v7 = vmul.f32 100.0, %v6914_v10  ;;  %v6919_v42 = vpop.f32.mrb[9].mxu0 }
 0x475   : > { %v6922_v43 = vmul.f32 100.0, %v6919_v42  ;;  %v6924_v33 = vpop.f32.mrb[10].mxu0 }
 0x476   : > { %v2502_v11 = vmin.f32 %v6917_v7, 20.0  ;;  %v6928_v30 = vmul.f32 100.0, %v6924_v33  ;;  %v6930_v38 = vpop.f32.mrb[11].mxu0  ;;  %vm2470_vm10 = vcmp.gt.f32.partialorder %v6917_v7, 20.0 }
 0x477   : > { %v2503_v35 = vmin.f32 %v6922_v43, 20.0  ;;  %v6934_v29 = vmul.f32 100.0, %v6930_v38  ;;  %vm2471_vm11 = vcmp.gt.f32.partialorder %v6922_v43, 20.0 }
 0x478   : > { %v2534_v54 = vmul.f32 1.442695, %v2502_v11  ;;  %v2510_v50 = vmin.f32 %v6928_v30, 20.0  ;;  %vm2478_vm14 = vcmp.gt.f32.partialorder %v6928_v30, 20.0 }
 0x479   : > { %v2536_v16 = vmul.f32 1.442695, %v2503_v35  ;;  %v2511_v53 = vmin.f32 %v6934_v29, 20.0  ;;  %vm2479_vm15 = vcmp.gt.f32.partialorder %v6934_v29, 20.0 }
 0x47a   : > { %4732 = vpow2.f32 %v2534_v54  ;;  %v2550_v23 = vmul.f32 1.442695, %v2510_v50 }
 0x47b   : > { %4734 = vpow2.f32 %v2536_v16  ;;  %v2552_v51 = vmul.f32 1.442695, %v2511_v53  ;;  %v6938_v6 = vpop.f32.mrb[12].mxu0 }
 0x47c   : > { %4736 = vpow2.f32 %v2550_v23  ;;  %v6941_v15 = vmul.f32 100.0, %v6938_v6  ;;  %v6943_v57 = vpop.f32.mrb[13].mxu0 }
 0x47d   : > { %v6946_v20 = vmul.f32 100.0, %v6943_v57  ;;  %v6948_v22 = vpop.f32.mrb[14].mxu0  ;;  %4738 = vpow2.f32 %v2552_v51 }
 0x47e   : > { %v2518_v59 = vmin.f32 %v6941_v15, 20.0  ;;  %v6951_v3 = vpop.f32.mrb[15].mxu0  ;;  %v6957_v49 = vmul.f32 100.0, %v6948_v22 }
 0x47f   : > { %v2519_v47 = vmin.f32 %v6946_v20, 20.0  ;;  %v6973_v44 = vmul.f32 100.0, %v6951_v3 }
 0x480   : > { %v2566_v31 = vmul.f32 1.442695, %v2518_v59  ;;  %v2526_v0 = vmin.f32 %v6957_v49, 20.0 }
 0x481   : > { %v2568_v1 = vmul.f32 1.442695, %v2519_v47  ;;  %v2527_v4 = vmin.f32 %v6973_v44, 20.0 }
 0x482   : > { %4740 = vpow2.f32 %v2566_v31  ;;  %v2582_v26 = vmul.f32 1.442695, %v2526_v0 }
 0x483   : > { %4742 = vpow2.f32 %v2568_v1  ;;  %v2584_v61 = vmul.f32 1.442695, %v2527_v4 }
 0x484   : > { %v6954_v24 = vpop.eup %4732 }
 0x485   : > { %v6959_v5 = vpop.eup %4734  ;;  %v2598_v45 = vadd.f32 1.0, %v6954_v24  ;;  %v2601_v40 = vmul.f32 -0.5, %v6954_v24  ;;  %v2604_v35 = vand.u32 2147483647, %v6954_v24 }
 0x486   : > { %v6962_v58 = vpop.eup %4736  ;;  %v2607_v48 = vadd.f32 1.0, %v6959_v5  ;;  %v2610_v9 = vmul.f32 -0.5, %v6959_v5  ;;  %v2613_v54 = vand.u32 2147483647, %v6959_v5 }
 0x487   : > { %v6964_v34 = vpop.f32.mrb[8].mxu1  ;;  %4744 = vlog2.f32 %v2598_v45  ;;  %v6981_v12 = vpop.eup %4738  ;;  %v2670_v18 = vadd.f32 1.0, %v6962_v58  ;;  %v2602_v21 = vadd.f32 1.0, %v2601_v40  ;;  %v2673_v36 = vmul.f32 -0.5, %v6962_v58 }
 0x488   : > { %v6968_v60 = vmul.f32 100.0, %v6964_v34  ;;  %v6970_v17 = vpop.f32.mrb[9].mxu1  ;;  %4746 = vlog2.f32 %v2607_v48  ;;  %v2679_v41 = vadd.f32 1.0, %v6981_v12  ;;  %v2611_v53 = vadd.f32 1.0, %v2610_v9 }
 0x489   : > { %v6976_v39 = vmul.f32 100.0, %v6970_v17  ;;  %v6978_v56 = vpop.f32.mrb[10].mxu1  ;;  %4748 = vlog2.f32 %v2670_v18  ;;  %v2603_v1 = vmul.f32 %v6954_v24, %v2602_v21  ;;  %v2674_v45 = vadd.f32 1.0, %v2673_v36 }
 0x48a   : > { %v2504_v19 = vmin.f32 %v6968_v60, 20.0  ;;  %v6985_v32 = vpop.f32.mrb[11].mxu1  ;;  %v6990_v62 = vmul.f32 100.0, %v6978_v56  ;;  %v2676_v48 = vand.u32 2147483647, %v6962_v58  ;;  %v2682_v0 = vmul.f32 -0.5, %v6981_v12 }
 0x48b   : > { %v2505_v25 = vmin.f32 %v6976_v39, 20.0  ;;  %v7002_v46 = vmul.f32 100.0, %v6985_v32  ;;  %vm7023_vm9 = vcmp.lt.f32.partialorder %v2604_v35, 0.0004427343  ;;  %vm7033_vm12 = vcmp.lt.f32.partialorder %v2613_v54, 0.0004427343 }
 0x48c   : > { %v2538_v8 = vmul.f32 1.442695, %v2504_v19  ;;  %v2512_v55 = vmin.f32 %v6990_v62, 20.0  ;;  %v6999_v37 = vpop.eup %4740  ;;  %vm7037_vm13 = vcmp.lt.f32.partialorder %v2676_v48, 0.0004427343  ;;  %vm2472_vm5 = vcmp.gt.f32.partialorder %v6968_v60, 20.0 }
 0x48d   : > { %v2540_v2 = vmul.f32 1.442695, %v2505_v25  ;;  %v7006_v11 = vpop.eup %4742  ;;  %v2513_v23 = vmin.f32 %v7002_v46, 20.0  ;;  %v2742_v18 = vadd.f32 1.0, %v6999_v37  ;;  %v2685_v35 = vand.u32 2147483647, %v6981_v12 }
 0x48e   : > { %4750 = vpow2.f32 %v2538_v8  ;;  %v2554_v28 = vmul.f32 1.442695, %v2512_v55  ;;  %v2751_v4 = vadd.f32 1.0, %v7006_v11  ;;  %v2748_v21 = vand.u32 2147483647, %v6999_v37 }
 0x48f   : > { %4752 = vpow2.f32 %v2540_v2  ;;  %v6997_v63 = vpop.f32.mrb[12].mxu1  ;;  %v2556_v19 = vmul.f32 1.442695, %v2513_v23  ;;  %vm2686_vm1 = vcmp.lt.f32.partialorder %v2685_v35, 0.0004427343  ;;  %vm2480_vm7 = vcmp.gt.f32.partialorder %v6990_v62, 20.0 }
 0x490   : > { %4754 = vlog2.f32 %v2679_v41  ;;  %v7004_v27 = vpop.f32.mrb[13].mxu1  ;;  %v7014_v51 = vmul.f32 100.0, %v6997_v63  ;;  %vm7103_vm2 = vcmp.lt.f32.partialorder %v2748_v21, 0.0004427343  ;;  %vm2473_vm8 = vcmp.gt.f32.partialorder %v6976_v39, 20.0 }
 0x491   : > { %8703 = vst [vmem:[#allocation17_spill] sm:$0xff] %v7004_v27  ;;  %4756 = vpow2.f32 %v2582_v26  ;;  %v7010_v50 = vpop.f32.mrb[14].mxu1  ;;  %v4745_v16 = vpop.eup %4744  ;;  %v2612_v26 = vmul.f32 %v6959_v5, %v2611_v53 }
 0x492   : > { %4758 = vpow2.f32 %v2554_v28  ;;  %v7016_v59 = vpop.f32.mrb[15].mxu1  ;;  %v4747_v47 = vpop.eup %4746  ;;  %v2600_v31 = vmul.f32 0.6931472, %v4745_v16  ;;  %v2520_v40 = vmin.f32 %v7014_v51, 20.0  ;;  %v2675_v28 = vmul.f32 %v6962_v58, %v2674_v45 }
 0x493   : > { %v2609_v8 = vmul.f32 0.6931472, %v4747_v47  ;;  %4760 = vpow2.f32 %v2584_v61  ;;  %v4749_v2 = vpop.eup %4748  ;;  %v2683_v61 = vadd.f32 1.0, %v2682_v0  ;;  %v2745_v0 = vmul.f32 -0.5, %v6999_v37 }
 0x494   : > { %v2606_v24 = vsel %vm7023_vm9, %v2603_v1, %v2600_v31  ;;  %4762 = vpow2.f32 %v2556_v19  ;;  %v2570_v41 = vmul.f32 1.442695, %v2520_v40  ;;  %v2672_v55 = vmul.f32 0.6931472, %v4749_v2 }
 0x495   : > { %4764 = vlog2.f32 %v2742_v18  ;;  %v2886_v5 = vmul.f32 0.01, %v2606_v24  ;;  %v2615_v53 = vsel %vm7033_vm12, %v2612_v26, %v2609_v8  ;;  %v2684_v8 = vmul.f32 %v6981_v12, %v2683_v61 }
 0x496   : > { %4766 = vlog2.f32 %v2751_v4  ;;  %v2678_v58 = vsel %vm7037_vm13, %v2675_v28, %v2672_v55  ;;  %v2887_v40 = vmul.f32 0.01, %v2615_v53  ;;  %vm2481_vm9 = vcmp.gt.f32.partialorder %v7002_v46, 20.0 }
 0x497   : > { %4768 = vpow2.f32 %v2570_v41  ;;  %v2894_v48 = vmul.f32 0.01, %v2678_v58  ;;  %v2918_v2 = vsel %vm2470_vm10, %v6914_v10, %v2886_v5  ;;  %v2746_v10 = vadd.f32 1.0, %v2745_v0 }
 0x498   : > { %v7041_v36 = vpop.eup %4750  ;;  %v7050_v23 = vpop.f32.mrb[24].mxu0  ;;  %v2919_v35 = vsel %vm2471_vm11, %v6919_v42, %v2887_v40  ;;  %vm2486_vm11 = vcmp.gt.f32.partialorder %v6941_v15, 20.0  ;;  %vm2494_vm13 = vcmp.gt.f32.partialorder %v6957_v49, 20.0 }
 0x499   : > { %v7045_v16 = vpop.eup %4752  ;;  %v2616_v54 = vadd.f32 1.0, %v7041_v36  ;;  %v7056_v1 = vpop.f32.mrb[25].mxu0  ;;  %v2926_v24 = vsel %vm2478_vm14, %v6924_v33, %v2894_v48  ;;  %v2619_v26 = vmul.f32 -0.5, %v7041_v36  ;;  %v2622_v33 = vand.u32 2147483647, %v7041_v36 }
 0x49a   : > { %v4755_v47 = vpop.eup %4754  ;;  %v2625_v31 = vadd.f32 1.0, %v7045_v16  ;;  %v7062_v19 = vpop.f32.mrb[26].mxu0  ;;  %v2950_v9 = vpack.c.bf16 %v2926_v24, %v2918_v2  ;;  %v2628_v28 = vmul.f32 -0.5, %v7045_v16  ;;  %v2631_v5 = vand.u32 2147483647, %v7045_v16 }
 0x49b   : > { %v7058_v45 = vpop.eup %4756  ;;  %4770 = vlog2.f32 %v2616_v54  ;;  %v2681_v25 = vmul.f32 0.6931472, %v4755_v47  ;;  %v7067_v4 = vpop.f32.mrb[27].mxu0  ;;  %v2754_v54 = vmul.f32 -0.5, %v7006_v11  ;;  %v2620_v40 = vadd.f32 1.0, %v2619_v26 }
 0x49c   : > { %v7064_v18 = vpop.eup %4758  ;;  %4772 = vlog2.f32 %v2625_v31  ;;  %v7108_v2 = vmul.f32 100.0, %v7004_v27  ;;  %vm7120_vm3 = vcmp.lt.f32.partialorder %v2622_v33, 0.0004427343  ;;  %vm7124_vm4 = vcmp.lt.f32.partialorder %v2631_v5, 0.0004427343 }
 0x49d   : > { %v2688_v41 = vadd.f32 1.0, %v7064_v18  ;;  %v2687_v55 = vsel %vm2686_vm1, %v2684_v8, %v2681_v25  ;;  %v7078_v12 = vpop.eup %4760  ;;  %v2691_v47 = vmul.f32 -0.5, %v7064_v18  ;;  %v2694_v31 = vand.u32 2147483647, %v7064_v18 }
 0x49e   : > { %v2895_v7 = vmul.f32 0.01, %v2687_v55  ;;  %v7081_v61 = vpop.f32.mrb[24].mxu1  ;;  %v7083_v30 = vpop.eup %4762  ;;  %v7129_v52 = vmul.f32 %v6999_v37, %v2746_v10  ;;  %v2621_v27 = vmul.f32 %v7041_v36, %v2620_v40  ;;  %v2521_v10 = vmin.f32 %v7108_v2, 20.0 }
 0x49f   : > { %4774 = vlog2.f32 %v2688_v41  ;;  %v7091_v53 = vpop.f32.mrb[25].mxu1  ;;  %v2697_v48 = vadd.f32 1.0, %v7083_v30  ;;  %v4765_v42 = vpop.eup %4764  ;;  %v2629_v41 = vadd.f32 1.0, %v2628_v28  ;;  %v2700_v55 = vmul.f32 -0.5, %v7083_v30 }
 0x4a0   : > { %v2927_v58 = vsel %vm2479_vm15, %v6930_v38, %v2895_v7  ;;  %v7099_v0 = vpop.f32.mrb[26].mxu1  ;;  %v7101_v43 = vpop.f32.mrb[28].mxu0  ;;  %v2692_v7 = vadd.f32 1.0, %v2691_v47  ;;  %vm7134_vm6 = vcmp.lt.f32.partialorder %v2694_v31, 0.0004427343  ;;  %v2826_v14 = vmul.f32 -0.5, %v7078_v12 }
 0x4a1   : > { %8710 = vst [vmem:[#allocation29_spill] sm:$0xff] %v7101_v43  ;;  %v2951_v25 = vpack.c.bf16 %v2927_v58, %v2919_v35  ;;  %v7110_v24 = vpop.f32.mrb[27].mxu1  ;;  %v7112_v29 = vpop.f32.mrb[29].mxu0  ;;  %4776 = vlog2.f32 %v2697_v48  ;;  %v2744_v33 = vmul.f32 0.6931472, %v4765_v42  ;;  %v2630_v47 = vmul.f32 %v7045_v16, %v2629_v41 }
 0x4a2   : > { %8713 = vst [vmem:[#allocation12_spill] sm:$0xff] %v7112_v29  ;;  %v4767_v38 = vpop.eup %4766  ;;  %v7116_v26 = vpop.f32.mrb[30].mxu0  ;;  %v2703_v37 = vand.u32 2147483647, %v7083_v30  ;;  %v2701_v31 = vadd.f32 1.0, %v2700_v55  ;;  %v2817_v42 = vmul.f32 -0.5, %v7058_v45  ;;  %v2693_v16 = vmul.f32 %v7064_v18, %v2692_v7 }
 0x4a3   : > { %8714 = vst [vmem:[#allocation13_spill] sm:$0xff] %v7116_v26  ;;  %v7118_v21 = vpop.eup %4768  ;;  %3002 = vmatprep.subr.bf16.mxu0 %v2951_v25  ;;  %v7131_v28 = vpop.f32.mrb[31].mxu0  ;;  %v2755_v26 = vadd.f32 1.0, %v2754_v54  ;;  %v2572_v36 = vmul.f32 1.442695, %v2521_v10  ;;  %v2750_v18 = vsel %vm7103_vm2, %v7129_v52, %v2744_v33  ;;  %v2823_v7 = vadd.f32 1.0, %v7078_v12 }
 0x4a4   : > { %8719 = vst [vmem:[#allocation19_spill] sm:$0xff] %v7131_v28  ;;  %3003 = vmatpush1.bf16.msra.mxu0 %v2950_v9  ;;  %v2814_v28 = vadd.f32 1.0, %v7058_v45  ;;  %v2760_v54 = vadd.f32 1.0, %v7118_v21  ;;  %v7154_v41 = vmul.f32 0.6931472, %v4767_v38  ;;  %v7172_v38 = vmul.f32 100.0, %v7010_v50 }
 0x4a5   : > { %v4771_v48 = vpop.eup %4770  ;;  %v7157_v55 = vmul.f32 %v7006_v11, %v2755_v26  ;;  %vm7164_vm10 = vcmp.lt.f32.partialorder %v2703_v37, 0.0004427343  ;;  %v2818_v37 = vadd.f32 1.0, %v2817_v42  ;;  %v7196_v42 = vmul.f32 100.0, %v7081_v61 }
 0x4a6   : > { %v4773_v5 = vpop.eup %4772  ;;  %v2618_v29 = vmul.f32 0.6931472, %v4771_v48  ;;  %v7144_v43 = vpop.f32.mrb[28].mxu1  ;;  %4778 = vlog2.f32 %v2814_v28  ;;  %v2702_v28 = vmul.f32 %v7083_v30, %v2701_v31  ;;  %v2528_v52 = vmin.f32 %v7172_v38, 20.0 }
 0x4a7   : > { %v2627_v25 = vmul.f32 0.6931472, %v4773_v5  ;;  %v7150_v40 = vpop.f32.mrb[29].mxu1  ;;  %4780 = vpow2.f32 %v2572_v36  ;;  %v7187_v36 = vmul.f32 100.0, %v7016_v59  ;;  %v2902_v60 = vmul.f32 0.01, %v2750_v18 }
 0x4a8   : > { %v2624_v9 = vsel %vm7120_vm3, %v2621_v27, %v2618_v29  ;;  %v7159_v35 = vpop.f32.mrb[30].mxu1  ;;  %4782 = vlog2.f32 %v2760_v54  ;;  %v2586_v31 = vmul.f32 1.442695, %v2528_v52  ;;  %v7193_v54 = vmul.f32 100.0, %v7050_v23 }
 0x4a9   : > { %v4775_v48 = vpop.eup %4774  ;;  %v2888_v27 = vmul.f32 0.01, %v2624_v9  ;;  %v2633_v29 = vsel %vm7124_vm4, %v2630_v47, %v2627_v25  ;;  %v7175_v26 = vpop.f32.mrb[31].mxu1  ;;  %4784 = vlog2.f32 %v2823_v7  ;;  %v2820_v62 = vand.u32 2147483647, %v7058_v45 }
 0x4aa   : > { %v2690_v5 = vmul.f32 0.6931472, %v4775_v48  ;;  %v2889_v47 = vmul.f32 0.01, %v2633_v29  ;;  %4786 = vpow2.f32 %v2586_v31  ;;  %v2529_v29 = vmin.f32 %v7187_v36, 20.0 }
 0x4ab   : > { %v4777_v25 = vpop.eup %4776  ;;  %v2920_v8 = vsel %vm2472_vm5, %v6964_v34, %v2888_v27  ;;  %v2819_v10 = vmul.f32 %v7058_v45, %v2818_v37  ;;  %v2506_v18 = vmin.f32 %v7193_v54, 20.0  ;;  %vm2487_vm14 = vcmp.gt.f32.partialorder %v6946_v20, 20.0 }
 0x4ac   : > { %v2696_v58 = vsel %vm7134_vm6, %v2693_v16, %v2690_v5  ;;  %v2699_v33 = vmul.f32 0.6931472, %v4777_v25  ;;  %v8724_v16 = vand.u32 2147483647, %v7006_v11  ;;  %v2921_v5 = vsel %vm2473_vm8, %v6970_v17, %v2889_v47 }
 0x4ad   : > { %v2896_v9 = vmul.f32 0.01, %v2696_v58  ;;  %v2588_v25 = vmul.f32 1.442695, %v2529_v29  ;;  %v2508_v17 = vmin.f32 %v7196_v42, 20.0  ;;  %v7226_v45 = vmul.f32 100.0, %v7056_v1 }
 0x4ae   : > { %v2705_v34 = vsel %vm7164_vm10, %v2702_v28, %v2699_v33  ;;  %vm7202_vm12 = vcmp.lt.f32.partialorder %v8724_v16, 0.0004427343  ;;  %v2827_v28 = vadd.f32 1.0, %v2826_v14  ;;  %vm2821_vm15 = vcmp.lt.f32.partialorder %v2820_v62, 0.0004427343 }
 0x4af   : > { %v2928_v30 = vsel %vm2480_vm7, %v6978_v56, %v2896_v9  ;;  %v2897_v56 = vmul.f32 0.01, %v2705_v34  ;;  %v2759_v11 = vsel %vm7202_vm12, %v7157_v55, %v7154_v41  ;;  %v2542_v41 = vmul.f32 1.442695, %v2506_v18 }
 0x4b0   : > { %v2952_v48 = vpack.c.bf16 %v2928_v30, %v2920_v8  ;;  %v4779_v7 = vpop.eup %4778  ;;  %v2763_v55 = vmul.f32 -0.5, %v7118_v21  ;;  %v2934_v52 = vsel %vm2486_vm11, %v6938_v6, %v2902_v60  ;;  %4788 = vpow2.f32 %v2588_v25 }
 0x4b1   : > { %v2929_v58 = vsel %vm2481_vm9, %v6985_v32, %v2897_v56  ;;  %v7223_v39 = vpop.eup %4780  ;;  %v2816_v9 = vmul.f32 0.6931472, %v4779_v7  ;;  %v2829_v32 = vand.u32 2147483647, %v7078_v12  ;;  %v2546_v33 = vmul.f32 1.442695, %v2508_v17 }
 0x4b2   : > { %v2953_v47 = vpack.c.bf16 %v2929_v58, %v2921_v5  ;;  %v2769_v37 = vadd.f32 1.0, %v7223_v39  ;;  %v4783_v46 = vpop.eup %4782  ;;  %v2903_v30 = vmul.f32 0.01, %v2759_v11  ;;  %v2828_v34 = vmul.f32 %v7078_v12, %v2827_v28 }
 0x4b3   : > { %v2822_v8 = vsel %vm2821_vm15, %v2819_v10, %v2816_v9  ;;  %v4785_v14 = vpop.eup %4784  ;;  %v2507_v27 = vmin.f32 %v7226_v45, 20.0  ;;  %v7237_v56 = vmul.f32 100.0, %v7091_v53  ;;  %vm2830_vm1 = vcmp.lt.f32.partialorder %v2829_v32, 0.0004427343 }
 0x4b4   : > { %3055 = vmatprep.subr.bf16.mxu1 %v2953_v47  ;;  %4790 = vlog2.f32 %v2769_v37  ;;  %v2910_v31 = vmul.f32 0.01, %v2822_v8  ;;  %v2825_v16 = vmul.f32 0.6931472, %v4785_v14  ;;  %v7243_v15 = vmul.f32 100.0, %v7062_v19  ;;  %v7245_v29 = vpop.eup %4786 }
 0x4b5   : > { %3056 = vmatpush1.bf16.msra.mxu1 %v2952_v48  ;;  %4792 = vpow2.f32 %v2542_v41  ;;  %v2764_v60 = vadd.f32 1.0, %v2763_v55  ;;  %v2544_v48 = vmul.f32 1.442695, %v2507_v27  ;;  %v2766_v5 = vand.u32 2147483647, %v7118_v21 }
 0x4b6   : > { %v2942_v6 = vsel %vm2494_vm13, %v6948_v22, %v2910_v31  ;;  %4794 = vpow2.f32 %v2546_v33  ;;  %v2831_v12 = vsel %vm2830_vm1, %v2828_v34, %v2825_v16  ;;  %v2509_v10 = vmin.f32 %v7237_v56, 20.0 }
 0x4b7   : > { %v2958_v62 = vpack.c.bf16 %v2942_v6, %v2934_v52  ;;  %v2911_v11 = vmul.f32 0.01, %v2831_v12  ;;  %v2514_v18 = vmin.f32 %v7243_v15, 20.0  ;;  %v2762_v49 = vmul.f32 0.6931472, %v4783_v46 }
 0x4b8   : > { %v2935_v22 = vsel %vm2487_vm14, %v6943_v57, %v2903_v30  ;;  %v2832_v7 = vadd.f32 1.0, %v7245_v29  ;;  %vm2495_vm2 = vcmp.gt.f32.partialorder %v6973_v44, 20.0  ;;  %4796 = vpow2.f32 %v2544_v48  ;;  %v7266_v44 = vld [vmem:[%s8473_s1 + $0x50] sm:$0xff]  }
 0x4b9   : > { %v2943_v58 = vsel %vm2495_vm2, %v6951_v3, %v2911_v11  ;;  %v2558_v28 = vmul.f32 1.442695, %v2514_v18  ;;  %v7257_v25 = vmul.f32 100.0, %v7099_v0  ;;  %v2765_v17 = vmul.f32 %v7118_v21, %v2764_v60 }
 0x4ba   : > { %4798 = vlog2.f32 %v2832_v7  ;;  %v2959_v47 = vpack.c.bf16 %v2943_v58, %v2935_v22  ;;  %v2548_v9 = vmul.f32 1.442695, %v2509_v10  ;;  %vm2767_vm3 = vcmp.lt.f32.partialorder %v2766_v5, 0.0004427343  ;;  %v4789_v57 = vpop.eup %4788  ;;  %v8734_v10 = vld [vmem:[#allocation17_spill] sm:$0xff] }
 0x4bb   : > { %v2772_v20 = vmul.f32 -0.5, %v7223_v39  ;;  %v2768_v41 = vsel %vm2767_vm3, %v2765_v17, %v2762_v49  ;;  %v2835_v55 = vmul.f32 -0.5, %v7245_v29  ;;  %4800 = vpow2.f32 %v2558_v28 }
 0x4bc   : > { %v2516_v3 = vmin.f32 %v7257_v25, 20.0  ;;  %3004 = vmatprep.subr.bf16.mxu0 %v2959_v47  ;;  %v2841_v37 = vadd.f32 1.0, %v4789_v57  ;;  %4802 = vpow2.f32 %v2548_v9  ;;  %v2904_v52 = vmul.f32 0.01, %v2768_v41 }
 0x4bd   : > { %3005 = vmatpush1.bf16.msra.mxu0 %v2958_v62  ;;  %v2773_v8 = vadd.f32 1.0, %v2772_v20  ;;  %v2775_v14 = vand.u32 2147483647, %v7223_v39  ;;  %v2836_v30 = vadd.f32 1.0, %v2835_v55  ;;  %v2844_v31 = vmul.f32 -0.5, %v4789_v57  ;;  %v8731_v20 = vld [vmem:[#allocation29_spill] sm:$0xff] }
 0x4be   : > { %v4791_v21 = vpop.eup %4790  ;;  %4804 = vlog2.f32 %v2841_v37  ;;  %v2562_v34 = vmul.f32 1.442695, %v2516_v3  ;;  %v7277_v27 = vmul.f32 100.0, %v7067_v4  ;;  %vm2488_vm4 = vcmp.gt.f32.partialorder %v7014_v51, 20.0 }
 0x4bf   : > { %v7268_v32 = vpop.eup %4792  ;;  %v2771_v16 = vmul.f32 0.6931472, %v4791_v21  ;;  %v2838_v6 = vand.u32 2147483647, %v7245_v29  ;;  %v7286_v12 = vsel %vm2488_vm4, %v6997_v63, %v2904_v52  ;;  %v2774_v48 = vmul.f32 %v7223_v39, %v2773_v8  ;;  %v7299_v63 = vld [vmem:[%s8473_s1 + $0x58] sm:$0xff]  }
 0x4c0   : > { %v7270_v46 = vpop.eup %4794  ;;  %v2634_v33 = vadd.f32 1.0, %v7268_v32  ;;  %4295 = vmatmul.mubr.msk.bf16.vlgmr.msra.gmra.mrb[64].mxu0 %vm297_vm0, %v7266_v44  ;;  %vm2496_vm5 = vcmp.gt.f32.partialorder %v7172_v38, 20.0  ;;  %v2847_v5 = vand.u32 2147483647, %v4789_v57  ;;  %vm2489_vm6 = vcmp.gt.f32.partialorder %v7108_v2, 20.0 }
 0x4c1   : > { %3044 = vmatprep.mubr.bf16.mxu0 %v8594_v13  ;;  %v2652_v60 = vadd.f32 1.0, %v7270_v46  ;;  %vm7291_vm7 = vcmp.lt.f32.partialorder %v2775_v14, 0.0004427343  ;;  %v2837_v51 = vmul.f32 %v7245_v29, %v2836_v30  ;;  %v2845_v18 = vadd.f32 1.0, %v2844_v31 }
 0x4c2   : > { %4806 = vlog2.f32 %v2634_v33  ;;  %v7283_v62 = vpop.eup %4796  ;;  %v2777_v39 = vsel %vm7291_vm7, %v2774_v48, %v2771_v16  ;;  %v2637_v22 = vmul.f32 -0.5, %v7268_v32  ;;  %v2515_v7 = vmin.f32 %v7277_v27, 20.0 }
 0x4c3   : > { %4808 = vpow2.f32 %v2562_v34  ;;  %vm2839_vm8 = vcmp.lt.f32.partialorder %v2838_v6, 0.0004427343  ;;  %vm2497_vm9 = vcmp.gt.f32.partialorder %v7187_v36, 20.0  ;;  %v2643_v29 = vadd.f32 1.0, %v7283_v62 }
 0x4c4   : > { %v4799_v11 = vpop.eup %4798  ;;  %4810 = vlog2.f32 %v2652_v60  ;;  %v7310_v28 = vmul.f32 100.0, %v7110_v24  ;;  %vm7312_vm10 = vcmp.lt.f32.partialorder %v2847_v5, 0.0004427343  ;;  %v7318_v41 = vmul.f32 100.0, %v8731_v20 }
 0x4c5   : > { %v2834_v49 = vmul.f32 0.6931472, %v4799_v11  ;;  %v7305_v58 = vpop.eup %4800  ;;  %v2905_v3 = vmul.f32 0.01, %v2777_v39  ;;  %v2846_v37 = vmul.f32 %v4789_v57, %v2845_v18  ;;  %v2640_v52 = vand.u32 2147483647, %v7268_v32 }
 0x4c6   : > { %v2706_v9 = vadd.f32 1.0, %v7305_v58  ;;  %v7320_v55 = vpop.eup %4802  ;;  %v2638_v33 = vadd.f32 1.0, %v2637_v22  ;;  %v2655_v14 = vmul.f32 -0.5, %v7270_v46  ;;  %v2560_v30 = vmul.f32 1.442695, %v2515_v7 }
 0x4c7   : > { %v2840_v17 = vsel %vm2839_vm8, %v2837_v51, %v2834_v49  ;;  %v2517_v57 = vmin.f32 %v7310_v28, 20.0  ;;  %v2646_v60 = vmul.f32 -0.5, %v7283_v62  ;;  %v2709_v48 = vmul.f32 -0.5, %v7305_v58 }
 0x4c8   : > { %v2912_v21 = vmul.f32 0.01, %v2840_v17  ;;  %4296 = vmatmul.mubr.msk.bf16.gmra.mrb[68].mxu0 %vm297_vm0, %v7299_v63  ;;  %v4805_v8 = vpop.eup %4804  ;;  %4812 = vlog2.f32 %v2706_v9  ;;  %vm7336_vm11 = vcmp.lt.f32.partialorder %v2640_v52, 0.0004427343  ;;  %v2937_v51 = vsel %vm2489_vm6, %v8734_v10, %v2905_v3  ;;  %v8735_v52 = vld [vmem:[#allocation12_spill] sm:$0xff] }
 0x4c9   : > { %3140 = vmatprep.mubr.bf16.mxu0 %v8594_v13  ;;  %v2843_v34 = vmul.f32 0.6931472, %v4805_v8  ;;  %4814 = vlog2.f32 %v2643_v29  ;;  %v2564_v38 = vmul.f32 1.442695, %v2517_v57  ;;  %v2658_v39 = vand.u32 2147483647, %v7270_v46 }
 0x4ca   : > { %v2944_v31 = vsel %vm2496_vm5, %v7010_v50, %v2912_v21  ;;  %4816 = vpow2.f32 %v2560_v30  ;;  %v2661_v50 = vadd.f32 1.0, %v7320_v55  ;;  %v2639_v22 = vmul.f32 %v7268_v32, %v2638_v33 }
 0x4cb   : > { %v2960_v6 = vpack.c.bf16 %v2944_v31, %v7286_v12  ;;  %v2849_v5 = vsel %vm7312_vm10, %v2846_v37, %v2843_v34  ;;  %v2656_v7 = vadd.f32 1.0, %v2655_v14  ;;  %4818 = vpow2.f32 %v2564_v38 }
 0x4cc   : > { %v4807_v16 = vpop.eup %4806  ;;  %v2913_v12 = vmul.f32 0.01, %v2849_v5  ;;  %v2522_v29 = vmin.f32 %v7318_v41, 20.0  ;;  %vm2474_vm12 = vcmp.gt.f32.partialorder %v7193_v54, 20.0  ;;  %v2647_v2 = vadd.f32 1.0, %v2646_v60 }
 0x4cd   : > { %v2636_v18 = vmul.f32 0.6931472, %v4807_v16  ;;  %v7345_v49 = vpop.eup %4808  ;;  %v2710_v47 = vadd.f32 1.0, %v2709_v48  ;;  %4820 = vlog2.f32 %v2661_v50  ;;  %v2664_v37 = vmul.f32 -0.5, %v7320_v55 }
 0x4ce   : > { %v2945_v17 = vsel %vm2497_vm9, %v7016_v59, %v2913_v12  ;;  %v2724_v9 = vadd.f32 1.0, %v7345_v49  ;;  %v4811_v3 = vpop.eup %4810  ;;  %vm2482_vm13 = vcmp.gt.f32.partialorder %v7243_v15, 20.0  ;;  %v7357_v32 = vmul.f32 100.0, %v7144_v43  ;;  %v8745_v15 = vld [vmem:[#allocation16_spill] sm:$0xff] }
 0x4cf   : > { %v2961_v21 = vpack.c.bf16 %v2945_v17, %v2937_v51  ;;  %v2642_v36 = vsel %vm7336_vm11, %v2639_v22, %v2636_v18  ;;  %v2712_v59 = vand.u32 2147483647, %v7305_v58  ;;  %v7363_v8 = vmul.f32 100.0, %v8735_v52 }
 0x4d0   : > { %4822 = vlog2.f32 %v2724_v9  ;;  %vm7365_vm14 = vcmp.lt.f32.partialorder %v2658_v39, 0.0004427343  ;;  %v2649_v14 = vand.u32 2147483647, %v7283_v62  ;;  %v2574_v30 = vmul.f32 1.442695, %v2522_v29 }
 0x4d1   : > { %3057 = vmatprep.subr.bf16.mxu1 %v2961_v21  ;;  %v2654_v34 = vmul.f32 0.6931472, %v4811_v3  ;;  %v2657_v57 = vmul.f32 %v7270_v46, %v2656_v7  ;;  %v2667_v16 = vand.u32 2147483647, %v7320_v55  ;;  %v2711_v60 = vmul.f32 %v7305_v58, %v2710_v47 }
 0x4d2   : > { %v4813_v31 = vpop.eup %4812  ;;  %3058 = vmatpush1.bf16.msra.mxu1 %v2960_v6  ;;  %v2890_v5 = vmul.f32 0.01, %v2642_v36  ;;  %v2727_v50 = vmul.f32 -0.5, %v7345_v49  ;;  %v2524_v38 = vmin.f32 %v7357_v32, 20.0  ;;  %v2648_v51 = vmul.f32 %v7283_v62, %v2647_v2 }
 0x4d3   : > { %v4815_v48 = vpop.eup %4814  ;;  %v2708_v11 = vmul.f32 0.6931472, %v4813_v31  ;;  %v2665_v12 = vadd.f32 1.0, %v2664_v37  ;;  %vm2713_vm15 = vcmp.lt.f32.partialorder %v2712_v59, 0.0004427343  ;;  %v2523_v46 = vmin.f32 %v7363_v8, 20.0 }
 0x4d4   : > { %v7375_v10 = vpop.eup %4816  ;;  %vm2476_vm1 = vcmp.gt.f32.partialorder %v7196_v42, 20.0  ;;  %4824 = vpow2.f32 %v2574_v30  ;;  %v7382_v6 = vmul.f32 100.0, %v7150_v40  ;;  %v2660_v39 = vsel %vm7365_vm14, %v2657_v57, %v2654_v34  ;;  %v8742_v31 = vld [vmem:[#allocation13_spill] sm:$0xff]  ;;  %v8743_v42 = vld [vmem:[#allocation19_spill] sm:$0xff] }
 0x4d5   : > { %v2714_v18 = vsel %vm2713_vm15, %v2711_v60, %v2708_v11  ;;  %v2715_v58 = vadd.f32 1.0, %v7375_v10  ;;  %4297 = vmatmul.mubr.msk.bf16.vlgmr.msra.gmra.mrb[64].mxu1 %vm297_vm0, %v7266_v44  ;;  %v2645_v62 = vmul.f32 0.6931472, %v4815_v48  ;;  %v2578_v7 = vmul.f32 1.442695, %v2524_v38  ;;  %v7389_v29 = vpop.eup %4818 }
 0x4d6   : > { %v2898_v22 = vmul.f32 0.01, %v2714_v18  ;;  %3097 = vmatprep.mubr.bf16.mxu1 %v8594_v13  ;;  %v7394_v17 = vsel %vm2474_vm12, %v7050_v23, %v2890_v5  ;;  %vm2484_vm2 = vcmp.gt.f32.partialorder %v7257_v25, 20.0  ;;  %v2728_v2 = vadd.f32 1.0, %v2727_v50  ;;  %v8744_v23 = vld [vmem:[#allocation15_spill] sm:$0xff] }
 0x4d7   : > { %4826 = vlog2.f32 %v2715_v58  ;;  %v2718_v47 = vmul.f32 -0.5, %v7375_v10  ;;  %v2730_v3 = vand.u32 2147483647, %v7345_v49  ;;  %v2733_v21 = vadd.f32 1.0, %v7389_v29  ;;  %v4821_v36 = vpop.eup %4820 }
 0x4d8   : > { %v7401_v9 = vsel %vm2482_vm13, %v7062_v19, %v2898_v22  ;;  %v2576_v37 = vmul.f32 1.442695, %v2523_v46  ;;  %v2892_v54 = vmul.f32 0.01, %v2660_v39  ;;  %vm7405_vm3 = vcmp.lt.f32.partialorder %v2649_v14, 0.0004427343 }
 0x4d9   : > { %v2954_v59 = vpack.c.bf16 %v7401_v9, %v7394_v17  ;;  %4828 = vpow2.f32 %v2578_v7  ;;  %v2651_v19 = vsel %vm7405_vm3, %v2648_v51, %v2645_v62  ;;  %vm7413_vm4 = vcmp.lt.f32.partialorder %v2667_v16, 0.0004427343 }
 0x4da   : > { %v4823_v33 = vpop.eup %4822  ;;  %4830 = vlog2.f32 %v2733_v21  ;;  %v2525_v30 = vmin.f32 %v7382_v6, 20.0  ;;  %v7419_v14 = vmul.f32 100.0, %v8742_v31  ;;  %v2729_v57 = vmul.f32 %v7345_v49, %v2728_v2 }
 0x4db   : > { %v2726_v34 = vmul.f32 0.6931472, %v4823_v33  ;;  %v2719_v60 = vadd.f32 1.0, %v2718_v47  ;;  %v7423_v48 = vmul.f32 100.0, %v7159_v35  ;;  %v2666_v5 = vmul.f32 %v7320_v55, %v2665_v12 }
 0x4dc   : > { %vm2731_vm5 = vcmp.lt.f32.partialorder %v2730_v3, 0.0004427343  ;;  %4832 = vpow2.f32 %v2576_v37  ;;  %v2530_v16 = vmin.f32 %v7419_v14, 20.0  ;;  %v2891_v11 = vmul.f32 0.01, %v2651_v19 }
 0x4dd   : > { %v2663_v50 = vmul.f32 0.6931472, %v4821_v36  ;;  %v2732_v38 = vsel %vm2731_vm5, %v2729_v57, %v2726_v34  ;;  %v2736_v51 = vmul.f32 -0.5, %v7389_v29  ;;  %4298 = vmatmul.mubr.msk.bf16.gmra.mrb[68].mxu1 %vm297_vm0, %v7299_v63  ;;  %v7433_v49 = vsel %vm2476_vm1, %v7081_v61, %v2892_v54 }
 0x4de   : > { %v2900_v46 = vmul.f32 0.01, %v2732_v38  ;;  %v2580_v18 = vmul.f32 1.442695, %v2525_v30  ;;  %v2590_v55 = vmul.f32 1.442695, %v2530_v16  ;;  %3193 = vmatprep.mubr.bf16.mxu1 %v8594_v13  ;;  %v7436_v12 = vpop.eup %4824  ;;  %v2720_v58 = vmul.f32 %v7375_v10, %v2719_v60 }
 0x4df   : > { %v2721_v39 = vand.u32 2147483647, %v7375_v10  ;;  %v2532_v62 = vmin.f32 %v7423_v48, 20.0  ;;  %v2739_v61 = vand.u32 2147483647, %v7389_v29  ;;  %v7446_v7 = vmul.f32 100.0, %v8743_v42 }
 0x4e0   : > { %v2932_v22 = vsel %vm2484_vm2, %v7099_v0, %v2900_v46  ;;  %4834 = vpow2.f32 %v2590_v55  ;;  %v2737_v3 = vadd.f32 1.0, %v2736_v51  ;;  %v2778_v10 = vadd.f32 1.0, %v7436_v12 }
 0x4e1   : > { %v4827_v2 = vpop.eup %4826  ;;  %v2956_v47 = vpack.c.bf16 %v2932_v22, %v7433_v49  ;;  %v2594_v21 = vmul.f32 1.442695, %v2532_v62  ;;  %4836 = vpow2.f32 %v2580_v18  ;;  %v2531_v36 = vmin.f32 %v7446_v7, 20.0 }
 0x4e2   : > { %v2717_v37 = vmul.f32 0.6931472, %v4827_v2  ;;  %v5108_v54 = vmov 2   ;;  %v2669_v25 = vsel %vm7413_vm4, %v2666_v5, %v2663_v50  ;;  %vm2722_vm6 = vcmp.lt.f32.partialorder %v2721_v39, 0.0004427343 }
 0x4e3   : > { %4443 = vset.pattern.permute.xlu0 %v5108_v54  ;;  %4449 = vset.pattern.permute.xlu1 %v5108_v54  ;;  %v7451_v0 = vpop.eup %4828  ;;  %4838 = vpow2.f32 %v2594_v21  ;;  %vm2475_vm7 = vcmp.gt.f32.partialorder %v7226_v45, 20.0  ;;  %vm2483_vm8 = vcmp.gt.f32.partialorder %v7277_v27, 20.0  ;;  %v2738_v60 = vmul.f32 %v7389_v29, %v2737_v3 }
 0x4e4   : > { %4445 = vperm.xlu0 %4443, %v8744_v23   ;;  %v4831_v33 = vpop.eup %4830  ;;  %v2723_v19 = vsel %vm2722_vm6, %v2720_v58, %v2717_v37  ;;  %v2796_v30 = vadd.f32 1.0, %v7451_v0  ;;  %v7461_v16 = vmul.f32 100.0, %v7175_v26  ;;  %4451 = vperm.xlu1 %4449, %v8745_v15   ;;  %v2893_v50 = vmul.f32 0.01, %v2669_v25 }
 0x4e5   : > { %v2899_v34 = vmul.f32 0.01, %v2723_v19  ;;  %v2735_v57 = vmul.f32 0.6931472, %v4831_v33  ;;  %vm2740_vm9 = vcmp.lt.f32.partialorder %v2739_v61, 0.0004427343  ;;  %4840 = vlog2.f32 %v2778_v10 }
 0x4e6   : > { %v7464_v5 = vpop.eup %4832  ;;  %v2592_v45 = vmul.f32 1.442695, %v2531_v36  ;;  %v2923_v27 = vsel %vm2475_vm7, %v7056_v1, %v2891_v11  ;;  %4842 = vlog2.f32 %v2796_v30  ;;  %vm2477_vm10 = vcmp.gt.f32.partialorder %v7237_v56, 20.0 }
 0x4e7   : > { %v2931_v38 = vsel %vm2483_vm8, %v7067_v4, %v2899_v34  ;;  %v2741_v51 = vsel %vm2740_vm9, %v2738_v60, %v2735_v57  ;;  %vm2485_vm11 = vcmp.gt.f32.partialorder %v7310_v28, 20.0  ;;  %v2787_v29 = vadd.f32 1.0, %v7464_v5 }
 0x4e8   : > { %v2955_v49 = vpack.c.bf16 %v2931_v38, %v2923_v27  ;;  %v2901_v46 = vmul.f32 0.01, %v2741_v51  ;;  %v2533_v18 = vmin.f32 %v7461_v16, 20.0  ;;  %v2925_v58 = vsel %vm2477_vm10, %v7091_v53, %v2893_v50 }
 0x4e9   : > { %4844 = vpow2.f32 %v2592_v45  ;;  %v2781_v11 = vmul.f32 -0.5, %v7436_v12  ;;  %v2799_v53 = vmul.f32 -0.5, %v7451_v0  ;;  %v2784_v2 = vand.u32 2147483647, %v7436_v12 }
 0x4ea   : > { %v4835_v55 = vpop.eup %4834  ;;  %v2933_v39 = vsel %vm2485_vm11, %v7110_v24, %v2901_v46  ;;  %3108 = vmatprep.subr.bf16.mxu0 %v2955_v49  ;;  %4846 = vlog2.f32 %v2787_v29  ;;  %v2596_v62 = vmul.f32 1.442695, %v2533_v18  ;;  %v2802_v36 = vand.u32 2147483647, %v7451_v0 }
 0x4eb   : > { %v2957_v1 = vpack.c.bf16 %v2933_v39, %v2925_v58  ;;  %3109 = vmatpush1.bf16.msra.mxu0 %v2954_v59  ;;  %v7477_v4 = vpop.eup %4836  ;;  %v2850_v56 = vadd.f32 1.0, %v4835_v55  ;;  %v2782_v17 = vadd.f32 1.0, %v2781_v11  ;;  %v2853_v9 = vmul.f32 -0.5, %v4835_v55 }
 0x4ec   : > { %v2805_v61 = vadd.f32 1.0, %v7477_v4  ;;  %v2800_v3 = vadd.f32 1.0, %v2799_v53  ;;  %v2790_v54 = vmul.f32 -0.5, %v7464_v5  ;;  %vm2490_vm12 = vcmp.gt.f32.partialorder %v7318_v41, 20.0 }
 0x4ed   : > { %v4839_v28 = vpop.eup %4838  ;;  %3161 = vmatprep.subr.bf16.mxu1 %v2957_v1  ;;  %4848 = vlog2.f32 %v2850_v56  ;;  %v2854_v23 = vadd.f32 1.0, %v2853_v9  ;;  %vm7490_vm13 = vcmp.lt.f32.partialorder %v2784_v2, 0.0004427343  ;;  %v2856_v34 = vand.u32 2147483647, %v4835_v55 }
 0x4ee   : > { %v2868_v24 = vadd.f32 1.0, %v4839_v28  ;;  %3162 = vmatpush1.bf16.msra.mxu1 %v2956_v47  ;;  %4850 = vpow2.f32 %v2596_v62  ;;  %v2871_v37 = vmul.f32 -0.5, %v4839_v28  ;;  %v2783_v47 = vmul.f32 %v7436_v12, %v2782_v17 }
 0x4ef   : > { %v4841_v22 = vpop.eup %4840  ;;  %v2801_v30 = vmul.f32 %v7451_v0, %v2800_v3  ;;  %vm2492_vm14 = vcmp.gt.f32.partialorder %v7357_v32, 20.0  ;;  %v2874_v15 = vand.u32 2147483647, %v4839_v28  ;;  %vm7498_vm15 = vcmp.lt.f32.partialorder %v2802_v36, 0.0004427343 }
 0x4f0   : > { %4852 = vlog2.f32 %v2868_v24  ;;  %v4843_v59 = vpop.eup %4842  ;;  %v2780_v21 = vmul.f32 0.6931472, %v4841_v22  ;;  %v2872_v12 = vadd.f32 1.0, %v2871_v37  ;;  %v2791_v27 = vadd.f32 1.0, %v2790_v54 }
 0x4f1   : > { %4854 = vlog2.f32 %v2805_v61  ;;  %v2798_v25 = vmul.f32 0.6931472, %v4843_v59  ;;  %v2793_v38 = vand.u32 2147483647, %v7464_v5  ;;  %vm2498_vm1 = vcmp.gt.f32.partialorder %v7419_v14, 20.0 }
 0x4f2   : > { %v2786_v60 = vsel %vm7490_vm13, %v2783_v47, %v2780_v21  ;;  %v2808_v49 = vmul.f32 -0.5, %v7477_v4  ;;  %v2855_v29 = vmul.f32 %v4835_v55, %v2854_v23  ;;  %vm2857_vm2 = vcmp.lt.f32.partialorder %v2856_v34, 0.0004427343 }
 0x4f3   : > { %v7483_v10 = vpop.eup %4844  ;;  %v2804_v51 = vsel %vm7498_vm15, %v2801_v30, %v2798_v25  ;;  %v2906_v58 = vmul.f32 0.01, %v2786_v60  ;;  %v2873_v62 = vmul.f32 %v4839_v28, %v2872_v12  ;;  %vm2875_vm3 = vcmp.lt.f32.partialorder %v2874_v15, 0.0004427343 }
 0x4f4   : > { %v2859_v33 = vadd.f32 1.0, %v7483_v10  ;;  %v4847_v57 = vpop.eup %4846  ;;  %v2862_v39 = vmul.f32 -0.5, %v7483_v10  ;;  %v2908_v53 = vmul.f32 0.01, %v2804_v51  ;;  %v2792_v61 = vmul.f32 %v7464_v5, %v2791_v27 }
 0x4f5   : > { %v2789_v24 = vmul.f32 0.6931472, %v4847_v57  ;;  %vm7509_vm4 = vcmp.lt.f32.partialorder %v2793_v38, 0.0004427343  ;;  %vm2500_vm5 = vcmp.gt.f32.partialorder %v7423_v48, 20.0  ;;  %v2938_v59 = vsel %vm2490_vm12, %v8731_v20, %v2906_v58 }
 0x4f6   : > { %4856 = vlog2.f32 %v2859_v33  ;;  %v2863_v3 = vadd.f32 1.0, %v2862_v39  ;;  %v2809_v21 = vadd.f32 1.0, %v2808_v49  ;;  %v2865_v37 = vand.u32 2147483647, %v7483_v10 }
 0x4f7   : > { %v4849_v50 = vpop.eup %4848  ;;  %v2940_v48 = vsel %vm2492_vm14, %v7144_v43, %v2908_v53  ;;  %v2795_v54 = vsel %vm7509_vm4, %v2792_v61, %v2789_v24  ;;  %v2811_v20 = vand.u32 2147483647, %v7477_v4  ;;  %vm2491_vm8 = vcmp.gt.f32.partialorder %v7363_v8, 20.0 }
 0x4f8   : > { %v4851_v0 = vpop.eup %4850  ;;  %v2852_v46 = vmul.f32 0.6931472, %v4849_v50  ;;  %v2864_v23 = vmul.f32 %v7483_v10, %v2863_v3  ;;  %v2907_v33 = vmul.f32 0.01, %v2795_v54  ;;  %v2810_v19 = vmul.f32 %v7477_v4, %v2809_v21 }
 0x4f9   : > { %v2877_v1 = vadd.f32 1.0, %v4851_v0  ;;  %v2880_v36 = vmul.f32 -0.5, %v4851_v0  ;;  %vm2866_vm6 = vcmp.lt.f32.partialorder %v2865_v37, 0.0004427343  ;;  %vm2812_vm7 = vcmp.lt.f32.partialorder %v2811_v20, 0.0004427343 }
 0x4fa   : > { %v4853_v18 = vpop.eup %4852  ;;  %v2858_v56 = vsel %vm2857_vm2, %v2855_v29, %v2852_v46  ;;  %v2883_v32 = vand.u32 2147483647, %v4851_v0  ;;  %vm2499_vm9 = vcmp.gt.f32.partialorder %v7446_v7, 20.0  ;;  %vm2493_vm11 = vcmp.gt.f32.partialorder %v7382_v6, 20.0 }
 0x4fb   : > { %v2870_v11 = vmul.f32 0.6931472, %v4853_v18  ;;  %v2914_v22 = vmul.f32 0.01, %v2858_v56  ;;  %4858 = vlog2.f32 %v2877_v1  ;;  %v4855_v9 = vpop.eup %4854  ;;  %v2881_v30 = vadd.f32 1.0, %v2880_v36 }
 0x4fc   : > { %vm2884_vm10 = vcmp.lt.f32.partialorder %v2883_v32, 0.0004427343  ;;  %vm2501_vm12 = vcmp.gt.f32.partialorder %v7461_v16, 20.0 }
 0x4fd   : > { %v2876_v55 = vsel %vm2875_vm3, %v2873_v62, %v2870_v11  ;;  %v2946_v28 = vsel %vm2498_vm1, %v8742_v31, %v2914_v22  ;;  %v2807_v31 = vmul.f32 0.6931472, %v4855_v9  ;;  %v2882_v15 = vmul.f32 %v4851_v0, %v2881_v30 }
 0x4fe   : > { %v2916_v2 = vmul.f32 0.01, %v2876_v55  ;;  %v2962_v5 = vpack.c.bf16 %v2946_v28, %v2938_v59 }
 0x4ff   : > { %v2813_v34 = vsel %vm2812_vm7, %v2810_v19, %v2807_v31 }
 0x500   : > { %v2948_v41 = vsel %vm2500_vm5, %v7159_v35, %v2916_v2  ;;  %v4857_v14 = vpop.eup %4856  ;;  %v2939_v35 = vsel %vm2491_vm8, %v8735_v52, %v2907_v33  ;;  %v2909_v50 = vmul.f32 0.01, %v2813_v34 }
 0x501   : > { %v2964_v47 = vpack.c.bf16 %v2948_v41, %v2940_v48  ;;  %v2861_v25 = vmul.f32 0.6931472, %v4857_v14 }
 0x502   : > { %v2941_v8 = vsel %vm2493_vm11, %v7150_v40, %v2909_v50 }
 0x503   : > { %v2867_v43 = vsel %vm2866_vm6, %v2864_v23, %v2861_v25 }
 0x504   : > { %v2915_v57 = vmul.f32 0.01, %v2867_v43 }
 0x505   : > { %v4859_v60 = vpop.eup %4858 }
 0x506   : > { %v2947_v12 = vsel %vm2499_vm9, %v8743_v42, %v2915_v57  ;;  %v2879_v10 = vmul.f32 0.6931472, %v4859_v60 }
 0x507   : > { %v2963_v4 = vpack.c.bf16 %v2947_v12, %v2939_v35 }
 0x508   : > { %v2885_v45 = vsel %vm2884_vm10, %v2882_v15, %v2879_v10 }
 0x509   : > { %v2917_v27 = vmul.f32 0.01, %v2885_v45  ;;  %3110 = vmatprep.subr.bf16.mxu0 %v2963_v4 }
 0x50a   : > { %3111 = vmatpush1.bf16.msra.mxu0 %v2962_v5 }
 0x50b   : > { %v2949_v7 = vsel %vm2501_vm12, %v7175_v26, %v2917_v27 }
 0x50c   : > { %v2965_v52 = vpack.c.bf16 %v2949_v7, %v2941_v8 }
 0x50d   : > { %4299 = vmatmul.mubr.msk.bf16.vlgmr.msra.gmra.mrb[72].mxu0 %vm297_vm0, %v7266_v44 }
 0x50e   : > { %3163 = vmatprep.subr.bf16.mxu1 %v2965_v52  ;;  %3150 = vmatprep.mubr.bf16.mxu0 %v8594_v13 }
 0x50f   : > { %3164 = vmatpush1.bf16.msra.mxu1 %v2964_v47 }
 0x512   : > { %4301 = vmatmul.mubr.msk.bf16.vlgmr.msra.gmra.mrb[72].mxu1 %vm297_vm0, %v7266_v44 }
 0x513   : > { %3203 = vmatprep.mubr.bf16.mxu1 %v8594_v13 }
 0x515   : > { %4300 = vmatmul.mubr.msk.bf16.gmra.mrb[76].mxu0 %vm297_vm0, %v7299_v63 }
 0x516   : > { %3810 = vmatprep.mubr.bf16.mxu0 %v8594_v13 }
 0x51a   : > { %4302 = vmatmul.mubr.msk.bf16.gmra.mrb[76].mxu1 %vm297_vm0, %v7299_v63 }
 0x51b   : > { %3863 = vmatprep.mubr.bf16.mxu1 %v8594_v13 }
 0x563   : > { %v4446_v40 = vpop.permute.xlu0 %4445  ;;  %v4452_v51 = vpop.permute.xlu1 %4451 }
 0x564   : > { %v7550_v26 = vunpack.i.l.bf16 %v4446_v40  ;;  %v7552_v6 = vunpack.i.h.bf16 %v4446_v40  ;;  %v7573_v39 = vunpack.i.l.bf16 %v4452_v51  ;;  %v7577_v62 = vunpack.i.h.bf16 %v4452_v51 }
 0x593   : > { %v3036_v42 = vpop.f32.mrb[64].mxu0 }
 0x594   : > { %v7555_v44 = vadd.f32 %v7550_v26, %v3036_v42  ;;  %v3038_v16 = vpop.f32.mrb[65].mxu0 }
 0x595   : > { %v7558_v38 = vadd.f32 %v7550_v26, %v3038_v16  ;;  %v3040_v0 = vpop.f32.mrb[66].mxu0 }
 0x596   : > { %v7561_v49 = vmul.f32 100.0, %v7555_v44  ;;  %v7564_v63 = vadd.f32 %v7552_v6, %v3040_v0  ;;  %v3042_v46 = vpop.f32.mrb[67].mxu0 }
 0x597   : > { %v7567_v29 = vmul.f32 100.0, %v7558_v38  ;;  %v7583_v17 = vadd.f32 %v7552_v6, %v3042_v46 }
 0x598   : > { %v3278_v18 = vmin.f32 %v7561_v49, 20.0  ;;  %v7571_v58 = vmul.f32 100.0, %v7564_v63  ;;  %vm3246_vm14 = vcmp.gt.f32.partialorder %v7561_v49, 20.0 }
 0x599   : > { %v3279_v56 = vmin.f32 %v7567_v29, 20.0  ;;  %v7596_v5 = vmul.f32 100.0, %v7583_v17  ;;  %vm3247_vm10 = vcmp.gt.f32.partialorder %v7567_v29, 20.0 }
 0x59a   : > { %v3310_v1 = vmul.f32 1.442695, %v3278_v18  ;;  %v3286_v11 = vmin.f32 %v7571_v58, 20.0  ;;  %vm3254_vm15 = vcmp.gt.f32.partialorder %v7571_v58, 20.0 }
 0x59b   : > { %v3046_v53 = vpop.f32.mrb[68].mxu0  ;;  %v3312_v9 = vmul.f32 1.442695, %v3279_v56  ;;  %v3287_v20 = vmin.f32 %v7596_v5, 20.0  ;;  %vm3255_vm12 = vcmp.gt.f32.partialorder %v7596_v5, 20.0 }
 0x59c   : > { %4860 = vpow2.f32 %v3310_v1  ;;  %v3326_v24 = vmul.f32 1.442695, %v3286_v11  ;;  %v7580_v22 = vadd.f32 %v7573_v39, %v3046_v53  ;;  %v3048_v61 = vpop.f32.mrb[69].mxu0 }
 0x59d   : > { %v3050_v55 = vpop.f32.mrb[70].mxu0  ;;  %v7601_v31 = vadd.f32 %v7573_v39, %v3048_v61  ;;  %v3328_v30 = vmul.f32 1.442695, %v3287_v20 }
 0x59e   : > { %4862 = vpow2.f32 %v3326_v24  ;;  %v7586_v59 = vmul.f32 100.0, %v7580_v22  ;;  %v7589_v28 = vadd.f32 %v7577_v62, %v3050_v55  ;;  %v3052_v2 = vpop.f32.mrb[71].mxu0 }
 0x59f   : > { %4864 = vpow2.f32 %v3312_v9  ;;  %v7618_v10 = vmul.f32 100.0, %v7601_v31  ;;  %v7627_v45 = vadd.f32 %v7577_v62, %v3052_v2 }
 0x5a0   : > { %v3294_v3 = vmin.f32 %v7586_v59, 20.0  ;;  %v7593_v21 = vmul.f32 100.0, %v7589_v28  ;;  %vm3262_vm3 = vcmp.gt.f32.partialorder %v7586_v59, 20.0 }
 0x5a1   : > { %v3295_v1 = vmin.f32 %v7618_v10, 20.0  ;;  %v7648_v24 = vmul.f32 100.0, %v7627_v45 }
 0x5a2   : > { %v3342_v37 = vmul.f32 1.442695, %v3294_v3  ;;  %v3302_v36 = vmin.f32 %v7593_v21, 20.0  ;;  %vm3270_vm4 = vcmp.gt.f32.partialorder %v7593_v21, 20.0 }
 0x5a4   : > { %4866 = vpow2.f32 %v3342_v37  ;;  %v3358_v48 = vmul.f32 1.442695, %v3302_v36 }
 0x5a6   : > { %v4861_v54 = vpop.eup %4860  ;;  %4868 = vpow2.f32 %v3358_v48 }
 0x5a7   : > { %v3374_v41 = vadd.f32 1.0, %v4861_v54  ;;  %v3377_v23 = vmul.f32 -0.5, %v4861_v54  ;;  %v3380_v15 = vand.u32 2147483647, %v4861_v54 }
 0x5a8   : > { %v4863_v14 = vpop.eup %4862  ;;  %v3089_v47 = vpop.f32.mrb[64].mxu1 }
 0x5a9   : > { %4870 = vlog2.f32 %v3374_v41  ;;  %v3446_v25 = vadd.f32 1.0, %v4863_v14  ;;  %v7604_v33 = vadd.f32 %v7550_v26, %v3089_v47  ;;  %v3091_v19 = vpop.f32.mrb[65].mxu1  ;;  %v7609_v34 = vpop.eup %4864  ;;  %v3449_v60 = vmul.f32 -0.5, %v4863_v14 }
 0x5aa   : > { %v7607_v43 = vadd.f32 %v7550_v26, %v3091_v19  ;;  %v3093_v32 = vpop.f32.mrb[66].mxu1  ;;  %v3378_v8 = vadd.f32 1.0, %v3377_v23  ;;  %v3383_v0 = vadd.f32 1.0, %v7609_v34  ;;  %vm7643_vm13 = vcmp.lt.f32.partialorder %v3380_v15, 0.0004427343 }
 0x5ab   : > { %4872 = vlog2.f32 %v3446_v25  ;;  %v7612_v57 = vmul.f32 100.0, %v7604_v33  ;;  %v7615_v35 = vadd.f32 %v7552_v6, %v3093_v32  ;;  %v3095_v12 = vpop.f32.mrb[67].mxu1  ;;  %v3450_v46 = vadd.f32 1.0, %v3449_v60 }
 0x5ac   : > { %v7621_v50 = vmul.f32 100.0, %v7607_v43  ;;  %v7624_v4 = vadd.f32 %v7552_v6, %v3095_v12  ;;  %4874 = vpow2.f32 %v3328_v30  ;;  %v3452_v11 = vand.u32 2147483647, %v4863_v14 }
 0x5ad   : > { %v3280_v7 = vmin.f32 %v7612_v57, 20.0  ;;  %v7633_v52 = vmul.f32 100.0, %v7615_v35  ;;  %v3379_v55 = vmul.f32 %v4861_v54, %v3378_v8  ;;  %v3451_v25 = vmul.f32 %v4863_v14, %v3450_v46 }
 0x5ae   : > { %v7629_v27 = vpop.eup %4866  ;;  %v3281_v40 = vmin.f32 %v7621_v50, 20.0  ;;  %v7637_v42 = vmul.f32 100.0, %v7624_v4  ;;  %v3344_v54 = vmul.f32 1.442695, %v3295_v1  ;;  %vm7659_vm1 = vcmp.lt.f32.partialorder %v3452_v11, 0.0004427343 }
 0x5af   : > { %v3518_v16 = vadd.f32 1.0, %v7629_v27  ;;  %v3314_v51 = vmul.f32 1.442695, %v3280_v7  ;;  %v3288_v18 = vmin.f32 %v7633_v52, 20.0  ;;  %v3521_v48 = vmul.f32 -0.5, %v7629_v27 }
 0x5b0   : > { %v3099_v53 = vpop.f32.mrb[68].mxu1  ;;  %v7650_v61 = vpop.eup %4868  ;;  %v3289_v2 = vmin.f32 %v7637_v42, 20.0  ;;  %v3316_v36 = vmul.f32 1.442695, %v3281_v40  ;;  %v3303_v12 = vmin.f32 %v7648_v24, 20.0  ;;  %v3386_v7 = vmul.f32 -0.5, %v7609_v34 }
 0x5b1   : > { %4876 = vlog2.f32 %v3518_v16  ;;  %v3330_v9 = vmul.f32 1.442695, %v3288_v18  ;;  %v3101_v3 = vpop.f32.mrb[69].mxu1  ;;  %v7657_v20 = vadd.f32 %v7573_v39, %v3099_v53  ;;  %v3590_v60 = vadd.f32 1.0, %v7650_v61 }
 0x5b2   : > { %4878 = vpow2.f32 %v3314_v51  ;;  %v3103_v41 = vpop.f32.mrb[70].mxu1  ;;  %v3332_v14 = vmul.f32 1.442695, %v3289_v2  ;;  %v3522_v16 = vadd.f32 1.0, %v3521_v48  ;;  %v7677_v18 = vadd.f32 %v7573_v39, %v3101_v3 }
 0x5b3   : > { %v4871_v37 = vpop.eup %4870  ;;  %4880 = vlog2.f32 %v3383_v0  ;;  %v3105_v23 = vpop.f32.mrb[71].mxu1  ;;  %v7664_v32 = vmul.f32 100.0, %v7657_v20  ;;  %v3593_v1 = vmul.f32 -0.5, %v7650_v61  ;;  %v3524_v11 = vand.u32 2147483647, %v7629_v27 }
 0x5b4   : > { %v3376_v47 = vmul.f32 0.6931472, %v4871_v37  ;;  %4882 = vpow2.f32 %v3330_v9  ;;  %8756 = vst [vmem:[#allocation25_spill] sm:$0xff] %v7677_v18  ;;  %v3360_v9 = vmul.f32 1.442695, %v3303_v12  ;;  %v3387_v48 = vadd.f32 1.0, %v3386_v7 }
 0x5b5   : > { %v4873_v19 = vpop.eup %4872  ;;  %4884 = vpow2.f32 %v3316_v36  ;;  %v3296_v0 = vmin.f32 %v7664_v32, 20.0  ;;  %v3389_v2 = vand.u32 2147483647, %v7609_v34  ;;  %v3523_v58 = vmul.f32 %v7629_v27, %v3522_v16 }
 0x5b6   : > { %v3382_v15 = vsel %vm7643_vm13, %v3379_v55, %v3376_v47  ;;  %v3448_v8 = vmul.f32 0.6931472, %v4873_v19  ;;  %v7672_v51 = vpop.eup %4874  ;;  %4886 = vlog2.f32 %v3590_v60  ;;  %v7682_v55 = vadd.f32 %v7577_v62, %v3103_v41 }
 0x5b7   : > { %v3662_v40 = vmul.f32 0.01, %v3382_v15  ;;  %v3346_v53 = vmul.f32 1.442695, %v3296_v0  ;;  %4888 = vpow2.f32 %v3344_v54  ;;  %v3594_v54 = vadd.f32 1.0, %v3593_v1 }
 0x5b8   : > { %v3454_v46 = vsel %vm7659_vm1, %v3451_v25, %v3448_v8  ;;  %4890 = vpow2.f32 %v3332_v14  ;;  %v7698_v25 = vmul.f32 100.0, %v7677_v18  ;;  %v7701_v19 = vmul.f32 100.0, %v7682_v55 }
 0x5b9   : > { %v3670_v56 = vmul.f32 0.01, %v3454_v46  ;;  %v7688_v3 = vsel %vm3246_vm14, %v7555_v44, %v3662_v40  ;;  %4892 = vpow2.f32 %v3346_v53  ;;  %vm7704_vm2 = vcmp.lt.f32.partialorder %v3524_v11, 0.0004427343 }
 0x5ba   : > { %v3596_v12 = vand.u32 2147483647, %v7650_v61  ;;  %v3304_v15 = vmin.f32 %v7701_v19, 20.0  ;;  %v7711_v8 = vadd.f32 %v7577_v62, %v3105_v23  ;;  %v3455_v14 = vadd.f32 1.0, %v7672_v51 }
 0x5bb   : > { %v4877_v37 = vpop.eup %4876  ;;  %v7693_v36 = vsel %vm3254_vm15, %v7564_v63, %v3670_v56  ;;  %v3388_v27 = vmul.f32 %v7609_v34, %v3387_v48  ;;  %v3297_v16 = vmin.f32 %v7698_v25, 20.0  ;;  %v3595_v0 = vmul.f32 %v7650_v61, %v3594_v54 }
 0x5bc   : > { %v4879_v47 = vpop.eup %4878  ;;  %v3520_v30 = vmul.f32 0.6931472, %v4877_v37  ;;  %8759 = vst [vmem:[#allocation18_spill] sm:$0xff] %v7711_v8  ;;  %vm7719_vm5 = vcmp.lt.f32.partialorder %v3389_v2, 0.0004427343  ;;  %v7732_v61 = vmul.f32 100.0, %v7711_v8 }
 0x5bd   : > { %v4881_v44 = vpop.eup %4880  ;;  %v3392_v49 = vadd.f32 1.0, %v4879_v47  ;;  %v3395_v7 = vmul.f32 -0.5, %v4879_v47  ;;  %v3362_v53 = vmul.f32 1.442695, %v3304_v15  ;;  %vm7727_vm6 = vcmp.lt.f32.partialorder %v3596_v12, 0.0004427343 }
 0x5be   : > { %v4883_v60 = vpop.eup %4882  ;;  %v3385_v46 = vmul.f32 0.6931472, %v4881_v44  ;;  %v3526_v11 = vsel %vm7704_vm2, %v3523_v58, %v3520_v30  ;;  %v3458_v44 = vmul.f32 -0.5, %v7672_v51  ;;  %v7739_v58 = vmul.f32 1.442695, %v3297_v16 }
 0x5bf   : > { %4894 = vlog2.f32 %v3392_v49  ;;  %v3464_v40 = vadd.f32 1.0, %v4883_v60  ;;  %v7723_v23 = vpop.eup %4884  ;;  %v3467_v56 = vmul.f32 -0.5, %v4883_v60  ;;  %v3398_v49 = vand.u32 2147483647, %v4879_v47 }
 0x5c0   : > { %v4887_v37 = vpop.eup %4886  ;;  %v3396_v48 = vadd.f32 1.0, %v3395_v7  ;;  %v3678_v30 = vmul.f32 0.01, %v3526_v11  ;;  %v3401_v12 = vadd.f32 1.0, %v7723_v23  ;;  %v3470_v41 = vand.u32 2147483647, %v4883_v60 }
 0x5c1   : > { %4896 = vlog2.f32 %v3464_v40  ;;  %v7734_v2 = vpop.eup %4888  ;;  %v3592_v54 = vmul.f32 0.6931472, %v4887_v37  ;;  %v3468_v40 = vadd.f32 1.0, %v3467_v56  ;;  %v3391_v7 = vsel %vm7719_vm5, %v3388_v27, %v3385_v46 }
 0x5c2   : > { %4898 = vlog2.f32 %v3455_v14  ;;  %v7737_v63 = vpop.eup %4890  ;;  %vm7748_vm7 = vcmp.lt.f32.partialorder %v3398_v49, 0.0004427343  ;;  %v3397_v37 = vmul.f32 %v4879_v47, %v3396_v48  ;;  %v3305_v8 = vmin.f32 %v7732_v61, 20.0 }
 0x5c3   : > { %4900 = vpow2.f32 %v3362_v53  ;;  %v7742_v15 = vpop.eup %4892  ;;  %v3598_v14 = vsel %vm7727_vm6, %v3595_v0, %v3592_v54  ;;  %v3404_v56 = vmul.f32 -0.5, %v7723_v23  ;;  %vm3248_vm8 = vcmp.gt.f32.partialorder %v7612_v57, 20.0 }
 0x5c4   : > { %4902 = vpow2.f32 %v3360_v9  ;;  %v3536_v16 = vadd.f32 1.0, %v7742_v15  ;;  %v3686_v11 = vmul.f32 0.01, %v3598_v14  ;;  %v3459_v9 = vadd.f32 1.0, %v3458_v44 }
 0x5c5   : > { %4904 = vlog2.f32 %v3401_v12  ;;  %vm3256_vm9 = vcmp.gt.f32.partialorder %v7633_v52, 20.0  ;;  %v7760_v27 = vsel %vm3262_vm3, %v7580_v22, %v3678_v30  ;;  %v3461_v47 = vand.u32 2147483647, %v7672_v51 }
 0x5c6   : > { %4906 = vlog2.f32 %v3536_v16  ;;  %v7765_v0 = vsel %vm3270_vm4, %v7589_v28, %v3686_v11  ;;  %v3469_v1 = vmul.f32 %v4883_v60, %v3468_v40  ;;  %vm7769_vm11 = vcmp.lt.f32.partialorder %v3470_v41, 0.0004427343 }
 0x5c7   : > { %v3473_v59 = vadd.f32 1.0, %v7737_v63  ;;  %v3539_v28 = vmul.f32 -0.5, %v7742_v15  ;;  %v3460_v34 = vmul.f32 %v7672_v51, %v3459_v9  ;;  %v3663_v48 = vmul.f32 0.01, %v3391_v7 }
 0x5c8   : > { %v3405_v44 = vadd.f32 1.0, %v3404_v56  ;;  %v3476_v41 = vmul.f32 -0.5, %v7737_v63  ;;  %v3527_v60 = vadd.f32 1.0, %v7734_v2  ;;  %v3542_v14 = vand.u32 2147483647, %v7742_v15 }
 0x5c9   : > { %v4895_v46 = vpop.eup %4894  ;;  %4908 = vlog2.f32 %v3473_v59  ;;  %vm7784_vm13 = vcmp.lt.f32.partialorder %v3461_v47, 0.0004427343  ;;  %v3407_v9 = vand.u32 2147483647, %v7723_v23  ;;  %v3540_v53 = vadd.f32 1.0, %v3539_v28  ;;  %v8781_v28 = vld [vmem:[#allocation8_spill] sm:$0xff] }
 0x5ca   : > { %v3394_v21 = vmul.f32 0.6931472, %v4895_v46  ;;  %4910 = vlog2.f32 %v3527_v60  ;;  %v3479_v59 = vand.u32 2147483647, %v7737_v63  ;;  %v3530_v60 = vmul.f32 -0.5, %v7734_v2 }
 0x5cb   : > { %v4897_v54 = vpop.eup %4896  ;;  %vm7808_vm14 = vcmp.lt.f32.partialorder %v3407_v9, 0.0004427343  ;;  %vm7830_vm1 = vcmp.lt.f32.partialorder %v3542_v14, 0.0004427343  ;;  %vm3249_vm2 = vcmp.gt.f32.partialorder %v7621_v50, 20.0  ;;  %vm3257_vm4 = vcmp.gt.f32.partialorder %v7637_v42, 20.0 }
 0x5cc   : > { %v4899_v30 = vpop.eup %4898  ;;  %v3400_v12 = vsel %vm7748_vm7, %v3397_v37, %v3394_v21  ;;  %v3466_v40 = vmul.f32 0.6931472, %v4897_v54  ;;  %v3406_v54 = vmul.f32 %v7723_v23, %v3405_v44  ;;  %v3531_v9 = vadd.f32 1.0, %v3530_v60  ;;  %v7917_v14 = vld [vmem:[%s8473_s1 + $0x60] sm:$0xff]  }
 0x5cd   : > { %v4901_v51 = vpop.eup %4900  ;;  %v3664_v7 = vmul.f32 0.01, %v3400_v12  ;;  %v3457_v11 = vmul.f32 0.6931472, %v4899_v30  ;;  %v3477_v12 = vadd.f32 1.0, %v3476_v41  ;;  %v5109_v60 = vmov 3  }
 0x5ce   : > { %v7789_v56 = vpop.eup %4902  ;;  %v3472_v46 = vsel %vm7769_vm11, %v3469_v1, %v3466_v40  ;;  %v3608_v37 = vadd.f32 1.0, %v4901_v51  ;;  %v3611_v30 = vmul.f32 -0.5, %v4901_v51  ;;  %v3614_v52 = vand.u32 2147483647, %v4901_v51  ;;  %4456 = vset.pattern.permute.xlu0 %v5109_v60  ;;  %4455 = vset.pattern.permute.xlu1 %v5109_v60 }
 0x5cf   : > { %v3672_v21 = vmul.f32 0.01, %v3472_v46  ;;  %v3463_v47 = vsel %vm7784_vm13, %v3460_v34, %v3457_v11  ;;  %v4905_v18 = vpop.eup %4904  ;;  %v7801_v1 = vsel %vm3248_vm8, %v7604_v33, %v3664_v7  ;;  %v3599_v23 = vadd.f32 1.0, %v7789_v56 }
 0x5d0   : > { %4912 = vlog2.f32 %v3608_v37  ;;  %v3671_v22 = vmul.f32 0.01, %v3463_v47  ;;  %v4907_v34 = vpop.eup %4906  ;;  %v3695_v33 = vsel %vm3247_vm10, %v7558_v38, %v3663_v48  ;;  %v3364_v41 = vmul.f32 1.442695, %v3305_v8 }
 0x5d1   : > { %v7806_v49 = vsel %vm3256_vm9, %v7615_v35, %v3672_v21  ;;  %v3403_v35 = vmul.f32 0.6931472, %v4905_v18  ;;  %v3478_v16 = vmul.f32 %v7737_v63, %v3477_v12  ;;  %v3612_v7 = vadd.f32 1.0, %v3611_v30 }
 0x5d2   : > { %v3728_v44 = vpack.c.bf16 %v7806_v49, %v7801_v1  ;;  %v3703_v57 = vsel %vm3255_vm12, %v7583_v17, %v3671_v22  ;;  %4914 = vlog2.f32 %v3599_v23  ;;  %v3538_v37 = vmul.f32 0.6931472, %v4907_v34  ;;  %v8783_v23 = vld [vmem:[#allocation9_spill] sm:$0xff] }
 0x5d3   : > { %v3727_v40 = vpack.c.bf16 %v3703_v57, %v3695_v33  ;;  %v3409_v11 = vsel %vm7808_vm14, %v3406_v54, %v3403_v35  ;;  %v4909_v46 = vpop.eup %4908  ;;  %v3541_v38 = vmul.f32 %v7742_v15, %v3540_v53  ;;  %vm7825_vm15 = vcmp.lt.f32.partialorder %v3479_v59, 0.0004427343 }
 0x5d4   : > { %v3602_v17 = vmul.f32 -0.5, %v7789_v56  ;;  %4916 = vpow2.f32 %v7739_v58  ;;  %v3475_v18 = vmul.f32 0.6931472, %v4909_v46  ;;  %v8776_v8 = vpack.c.bf16 %v7693_v36, %v7688_v3  ;;  %v4911_v15 = vpop.eup %4910 }
 0x5d5   : > { %3778 = vmatprep.subr.bf16.mxu0 %v3727_v40  ;;  %v3533_v63 = vand.u32 2147483647, %v7734_v2  ;;  %4918 = vpow2.f32 %v3364_v41  ;;  %v3665_v22 = vmul.f32 0.01, %v3409_v11  ;;  %v3613_v48 = vmul.f32 %v4901_v51, %v3612_v7 }
 0x5d6   : > { %3779 = vmatpush1.bf16.msra.mxu0 %v8776_v8  ;;  %vm7840_vm3 = vcmp.lt.f32.partialorder %v3614_v52, 0.0004427343  ;;  %v3481_v58 = vsel %vm7825_vm15, %v3478_v16, %v3475_v18  ;;  %v3532_v53 = vmul.f32 %v7734_v2, %v3531_v9  ;;  %v3544_v3 = vsel %vm7830_vm1, %v3541_v38, %v3538_v37 }
 0x5d7   : > { %v3673_v36 = vmul.f32 0.01, %v3481_v58  ;;  %v3529_v59 = vmul.f32 0.6931472, %v4911_v15  ;;  %v3603_v21 = vadd.f32 1.0, %v3602_v17  ;;  %v3697_v2 = vsel %vm3249_vm2, %v7607_v43, %v3665_v22 }
 0x5d8   : > { %vm7850_vm5 = vcmp.lt.f32.partialorder %v3533_v63, 0.0004427343  ;;  %v3605_v54 = vand.u32 2147483647, %v7789_v56  ;;  %v3680_v1 = vmul.f32 0.01, %v3544_v3  ;;  %v8782_v42 = vunpack.c.h.bf16 %v8781_v28 }
 0x5d9   : > { %v3705_v30 = vsel %vm3257_vm4, %v7624_v4, %v3673_v36  ;;  %v8784_v34 = vunpack.c.l.bf16 %v8783_v23  ;;  %v8785_v57 = vunpack.c.l.bf16 %v8781_v28  ;;  %v3535_v43 = vsel %vm7850_vm5, %v3532_v53, %v3529_v59 }
 0x5da   : > { %v4913_v47 = vpop.eup %4912  ;;  %v3729_v49 = vpack.c.bf16 %v3705_v30, %v3697_v2  ;;  %v3604_v50 = vmul.f32 %v7789_v56, %v3603_v21  ;;  %vm3606_vm6 = vcmp.lt.f32.partialorder %v3605_v54, 0.0004427343  ;;  %vm3264_vm7 = vcmp.gt.f32.partialorder %v7664_v32, 20.0 }
 0x5db   : > { %v3610_v12 = vmul.f32 0.6931472, %v4913_v47  ;;  %v4457_v33 = vpack.i.bf16 %v8784_v34, %v8782_v42  ;;  %3747 = vperm.xlu1 %4455, %v8785_v57   ;;  %vm3272_vm8 = vcmp.gt.f32.partialorder %v7701_v19, 20.0  ;;  %v7875_v16 = vsel %vm3264_vm7, %v7657_v20, %v3680_v1 }
 0x5dc   : > { %v4915_v4 = vpop.eup %4914  ;;  %3831 = vmatprep.subr.bf16.mxu1 %v3729_v49  ;;  %v3679_v56 = vmul.f32 0.01, %v3535_v43  ;;  %v8786_v11 = vunpack.c.h.bf16 %v8783_v23  ;;  %vm3263_vm9 = vcmp.gt.f32.partialorder %v7618_v10, 20.0  ;;  %vm3271_vm10 = vcmp.gt.f32.partialorder %v7648_v24, 20.0 }
 0x5dd   : > { %v3616_v35 = vsel %vm7840_vm3, %v3613_v48, %v3610_v12  ;;  %4458 = vperm.xlu0 %4456, %v4457_v33   ;;  %3832 = vmatpush1.bf16.msra.mxu1 %v3728_v44  ;;  %v3601_v41 = vmul.f32 0.6931472, %v4915_v4  ;;  %v8787_v36 = vpack.c.bf16 %v7765_v0, %v7760_v27  ;;  %vm3265_vm13 = vcmp.gt.f32.partialorder %v7698_v25, 20.0  ;;  %v8810_v25 = vld [vmem:[#allocation18_spill] sm:$0xff] }
 0x5de   : > { %v3688_v52 = vmul.f32 0.01, %v3616_v35  ;;  %v7872_v40 = vpop.eup %4916  ;;  %v3711_v17 = vsel %vm3263_vm9, %v7601_v31, %v3679_v56  ;;  %vm3273_vm15 = vcmp.gt.f32.partialorder %v7732_v61, 20.0 }
 0x5df   : > { %3759 = vperm.xlu1 %4455, %v8786_v11   ;;  %v7882_v9 = vpop.eup %4918  ;;  %v3607_v19 = vsel %vm3606_vm6, %v3604_v50, %v3601_v41  ;;  %v3545_v37 = vadd.f32 1.0, %v7872_v40  ;;  %v3548_v3 = vmul.f32 -0.5, %v7872_v40  ;;  %v3551_v35 = vand.u32 2147483647, %v7872_v40 }
 0x5e0   : > { %v7878_v7 = vsel %vm3272_vm8, %v7682_v55, %v3688_v52  ;;  %v3142_v44 = vpop.f32.mrb[72].mxu0  ;;  %v3687_v46 = vmul.f32 0.01, %v3607_v19  ;;  %v3617_v18 = vadd.f32 1.0, %v7882_v9  ;;  %v3620_v27 = vmul.f32 -0.5, %v7882_v9 }
 0x5e1   : > { %v7889_v20 = vadd.f32 %v7550_v26, %v3142_v44  ;;  %v3144_v55 = vpop.f32.mrb[73].mxu0  ;;  %4920 = vlog2.f32 %v3545_v37  ;;  %v3549_v34 = vadd.f32 1.0, %v3548_v3  ;;  %v3623_v43 = vand.u32 2147483647, %v7882_v9 }
 0x5e2   : > { %v7893_v38 = vadd.f32 %v7550_v26, %v3144_v55  ;;  %v3146_v29 = vpop.f32.mrb[74].mxu0  ;;  %v3719_v5 = vsel %vm3271_vm10, %v7627_v45, %v3687_v46  ;;  %4922 = vlog2.f32 %v3617_v18  ;;  %v3621_v46 = vadd.f32 1.0, %v3620_v27  ;;  %v7970_v55 = vld [vmem:[%s8473_s1 + $0x68] sm:$0xff]  }
 0x5e3   : > { %v7899_v10 = vmul.f32 100.0, %v7889_v20  ;;  %v7902_v24 = vadd.f32 %v7552_v6, %v3146_v29  ;;  %v3148_v8 = vpop.f32.mrb[75].mxu0  ;;  %v3735_v63 = vpack.c.bf16 %v3719_v5, %v3711_v17  ;;  %vm7994_vm11 = vcmp.lt.f32.partialorder %v3551_v35, 0.0004427343 }
 0x5e4   : > { %v7905_v15 = vadd.f32 %v7552_v6, %v3148_v8  ;;  %v7909_v31 = vmul.f32 100.0, %v7893_v38  ;;  %vm7998_vm12 = vcmp.lt.f32.partialorder %v3623_v43, 0.0004427343 }
 0x5e5   : > { %v3282_v22 = vmin.f32 %v7899_v10, 20.0  ;;  %v3195_v48 = vpop.f32.mrb[72].mxu1  ;;  %v7912_v45 = vmul.f32 100.0, %v7902_v24  ;;  %3780 = vmatprep.subr.bf16.mxu0 %v3735_v63  ;;  %vm3250_vm1 = vcmp.gt.f32.partialorder %v7899_v10, 20.0 }
 0x5e6   : > { %v7920_v58 = vadd.f32 %v7550_v26, %v3195_v48  ;;  %v3197_v53 = vpop.f32.mrb[73].mxu1  ;;  %3781 = vmatpush1.bf16.msra.mxu0 %v8787_v36  ;;  %v7931_v54 = vmul.f32 100.0, %v7905_v15 }
 0x5e7   : > { %v3318_v59 = vmul.f32 1.442695, %v3282_v22  ;;  %v7927_v21 = vadd.f32 %v7550_v26, %v3197_v53  ;;  %v3290_v47 = vmin.f32 %v7912_v45, 20.0  ;;  %v3199_v51 = vpop.f32.mrb[74].mxu1  ;;  %v3283_v26 = vmin.f32 %v7909_v31, 20.0 }
 0x5e8   : > { %v7934_v12 = vmul.f32 100.0, %v7920_v58  ;;  %v7937_v2 = vadd.f32 %v7552_v6, %v3199_v51  ;;  %v3201_v30 = vpop.f32.mrb[75].mxu1  ;;  %v3152_v60 = vpop.f32.mrb[76].mxu0  ;;  %v3291_v33 = vmin.f32 %v7931_v54, 20.0  ;;  %v3550_v22 = vmul.f32 %v7872_v40, %v3549_v34 }
 0x5e9   : > { %8788 = vst [vmem:[#allocation14_spill] sm:$0xff] %v7927_v21  ;;  %4924 = vpow2.f32 %v3318_v59  ;;  %v7942_v0 = vmul.f32 100.0, %v7927_v21  ;;  %v3334_v1 = vmul.f32 1.442695, %v3290_v47  ;;  %v3154_v49 = vpop.f32.mrb[77].mxu0  ;;  %4305 = vmatmul.mubr.msk.bf16.vlgmr.msra.gmra.mrb[80].mxu0 %vm297_vm0, %v7917_v14  ;;  %v7959_v41 = vadd.f32 %v7552_v6, %v3201_v30 }
 0x5ea   : > { %v3284_v28 = vmin.f32 %v7934_v12, 20.0  ;;  %v7948_v42 = vmul.f32 100.0, %v7937_v2  ;;  %v3156_v23 = vpop.f32.mrb[78].mxu0  ;;  %3820 = vmatprep.mubr.bf16.mxu0 %v8594_v13  ;;  %v3320_v56 = vmul.f32 1.442695, %v3283_v26  ;;  %v7962_v11 = vadd.f32 %v7573_v39, %v3152_v60 }
 0x5eb   : > { %4926 = vpow2.f32 %v3334_v1  ;;  %v7952_v57 = vpop.f32.mrb[79].mxu0  ;;  %v3285_v4 = vmin.f32 %v7942_v0, 20.0  ;;  %8789 = vst [vmem:[#allocation10_spill] sm:$0xff] %v7959_v41  ;;  %v7965_v44 = vadd.f32 %v7573_v39, %v3154_v49  ;;  %v7973_v29 = vmul.f32 100.0, %v7959_v41  ;;  %v4921_v5 = vpop.eup %4920 }
 0x5ec   : > { %v3322_v50 = vmul.f32 1.442695, %v3284_v28  ;;  %v3292_v52 = vmin.f32 %v7948_v42, 20.0  ;;  %v3336_v18 = vmul.f32 1.442695, %v3291_v33  ;;  %v7979_v8 = vmul.f32 100.0, %v7962_v11  ;;  %v4923_v48 = vpop.eup %4922 }
 0x5ed   : > { %v3205_v19 = vpop.f32.mrb[76].mxu1  ;;  %8790 = vst [vmem:[#allocation11_spill] sm:$0xff] %v7965_v44  ;;  %v3324_v53 = vmul.f32 1.442695, %v3285_v4  ;;  %v7986_v36 = vmul.f32 100.0, %v7965_v44  ;;  %v3293_v60 = vmin.f32 %v7973_v29, 20.0  ;;  %v3622_v26 = vmul.f32 %v7882_v9, %v3621_v46 }
 0x5ee   : > { %4928 = vpow2.f32 %v3322_v50  ;;  %v3338_v37 = vmul.f32 1.442695, %v3292_v52  ;;  %v7976_v6 = vadd.f32 %v7573_v39, %v3205_v19  ;;  %v3207_v17 = vpop.f32.mrb[77].mxu1  ;;  %v3298_v47 = vmin.f32 %v7979_v8, 20.0 }
 0x5ef   : > { %v3209_v63 = vpop.f32.mrb[78].mxu1  ;;  %8791 = vst [vmem:[#allocation27_spill] sm:$0xff] %v7986_v36  ;;  %v7992_v51 = vadd.f32 %v7573_v39, %v3207_v17  ;;  %v3547_v49 = vmul.f32 0.6931472, %v4921_v5  ;;  %v3619_v28 = vmul.f32 0.6931472, %v4923_v48  ;;  %v8010_v35 = vadd.f32 %v7577_v62, %v3156_v23 }
 0x5f0   : > { %4930 = vpow2.f32 %v3338_v37  ;;  %v7983_v3 = vmul.f32 100.0, %v7976_v6  ;;  %v7988_v59 = vpop.f32.mrb[79].mxu1  ;;  %v3350_v1 = vmul.f32 1.442695, %v3298_v47  ;;  %v3299_v33 = vmin.f32 %v7986_v36, 20.0 }
 0x5f1   : > { %8792 = vst [vmem:[#allocation22_spill] sm:$0xff] %v7992_v51  ;;  %4306 = vmatmul.mubr.msk.bf16.gmra.mrb[84].mxu0 %vm297_vm0, %v7970_v55  ;;  %4932 = vpow2.f32 %v3320_v56  ;;  %v8015_v9 = vmul.f32 100.0, %v7992_v51  ;;  %v8018_v4 = vadd.f32 %v7577_v62, %v3209_v63  ;;  %v3340_v19 = vmul.f32 1.442695, %v3293_v60 }
 0x5f2   : > { %v3300_v27 = vmin.f32 %v7983_v3, 20.0  ;;  %3916 = vmatprep.mubr.bf16.mxu0 %v8594_v13  ;;  %4934 = vpow2.f32 %v3336_v18  ;;  %v3553_v23 = vsel %vm7994_vm11, %v3550_v22, %v3547_v49  ;;  %v8026_v17 = vmul.f32 100.0, %v8010_v35 }
 0x5f3   : > { %v4925_v39 = vpop.eup %4924  ;;  %4936 = vpow2.f32 %v3324_v53  ;;  %8797 = vst [vmem:[#allocation24_spill] sm:$0xff] %v8015_v9  ;;  %v3625_v5 = vsel %vm7998_vm12, %v3622_v26, %v3619_v28  ;;  %v3352_v63 = vmul.f32 1.442695, %v3299_v33  ;;  %v3301_v48 = vmin.f32 %v8015_v9, 20.0 }
 0x5f4   : > { %v3410_v34 = vadd.f32 1.0, %v4925_v39  ;;  %4938 = vpow2.f32 %v3350_v1  ;;  %v3354_v50 = vmul.f32 1.442695, %v3300_v27  ;;  %v3413_v52 = vmul.f32 -0.5, %v4925_v39 }
 0x5f5   : > { %v8012_v43 = vpop.eup %4926  ;;  %v3416_v37 = vand.u32 2147483647, %v4925_v39  ;;  %v8033_v53 = vmul.f32 100.0, %v8018_v4  ;;  %v3306_v30 = vmin.f32 %v8026_v17, 20.0  ;;  %v3681_v60 = vmul.f32 0.01, %v3553_v23 }
 0x5f6   : > { %4940 = vlog2.f32 %v3410_v34  ;;  %v3482_v56 = vadd.f32 1.0, %v8012_v43  ;;  %v3414_v22 = vadd.f32 1.0, %v3413_v52  ;;  %v3485_v27 = vmul.f32 -0.5, %v8012_v43 }
 0x5f7   : > { %4942 = vpow2.f32 %v3354_v50  ;;  %v3488_v40 = vand.u32 2147483647, %v8012_v43  ;;  %v8040_v26 = vmul.f32 0.01, %v3625_v5  ;;  %vm8045_vm14 = vcmp.lt.f32.partialorder %v3416_v37, 0.0004427343 }
 0x5f8   : > { %v8023_v46 = vpop.eup %4928  ;;  %4944 = vlog2.f32 %v3482_v56  ;;  %v8054_v52 = vmul.f32 1.442695, %v3301_v48  ;;  %v3366_v56 = vmul.f32 1.442695, %v3306_v30  ;;  %v3415_v37 = vmul.f32 %v4925_v39, %v3414_v22 }
 0x5f9   : > { %v3428_v18 = vadd.f32 1.0, %v8023_v46  ;;  %4946 = vpow2.f32 %v3340_v19  ;;  %v3431_v28 = vmul.f32 -0.5, %v8023_v46  ;;  %v3434_v34 = vand.u32 2147483647, %v8023_v46 }
 0x5fa   : > { %v8035_v47 = vpop.eup %4930  ;;  %v3308_v19 = vmin.f32 %v8033_v53, 20.0  ;;  %vm3258_vm2 = vcmp.gt.f32.partialorder %v7912_v45, 20.0  ;;  %v3486_v48 = vadd.f32 1.0, %v3485_v27  ;;  %vm8069_vm3 = vcmp.lt.f32.partialorder %v3488_v40, 0.0004427343 }
 0x5fb   : > { %4948 = vlog2.f32 %v3428_v18  ;;  %v8042_v1 = vpop.eup %4932  ;;  %v3500_v33 = vadd.f32 1.0, %v8035_v47  ;;  %v3503_v5 = vmul.f32 -0.5, %v8035_v47  ;;  %v8064_v18 = vadd.f32 %v7577_v62, %v7952_v57 }
 0x5fc   : > { %v8052_v50 = vpop.eup %4934  ;;  %4950 = vpow2.f32 %v3352_v63  ;;  %v3370_v32 = vmul.f32 1.442695, %v3308_v19  ;;  %v3432_v39 = vadd.f32 1.0, %v3431_v28  ;;  %vm8073_vm4 = vcmp.lt.f32.partialorder %v3434_v34, 0.0004427343 }
 0x5fd   : > { %v8057_v23 = vpop.eup %4936  ;;  %4952 = vlog2.f32 %v3500_v33  ;;  %8800 = vst [vmem:[#allocation21_spill] sm:$0xff] %v8064_v18  ;;  %v3506_v57 = vand.u32 2147483647, %v8035_v47  ;;  %v8082_v27 = vmul.f32 100.0, %v8064_v18  ;;  %v8086_v40 = vadd.f32 %v7577_v62, %v7988_v59 }
 0x5fe   : > { %v8066_v63 = vpop.eup %4938  ;;  %4954 = vpow2.f32 %v3366_v56  ;;  %v3504_v34 = vadd.f32 1.0, %v3503_v5  ;;  %v3433_v62 = vmul.f32 %v8023_v46, %v3432_v39  ;;  %vm3252_vm6 = vcmp.gt.f32.partialorder %v7934_v12, 20.0 }
 0x5ff   : > { %v3554_v33 = vadd.f32 1.0, %v8066_v63  ;;  %4956 = vpow2.f32 %v3370_v32  ;;  %v3557_v56 = vmul.f32 -0.5, %v8066_v63  ;;  %v3487_v32 = vmul.f32 %v8012_v43, %v3486_v48 }
 0x600   : > { %v4941_v51 = vpop.eup %4940  ;;  %vm8097_vm5 = vcmp.lt.f32.partialorder %v3506_v57, 0.0004427343  ;;  %vm3260_vm7 = vcmp.gt.f32.partialorder %v7948_v42, 20.0  ;;  %v3307_v43 = vmin.f32 %v8082_v27, 20.0  ;;  %v8107_v49 = vmul.f32 100.0, %v8086_v40 }
 0x601   : > { %v8079_v9 = vpop.eup %4942  ;;  %v3412_v44 = vmul.f32 0.6931472, %v4941_v51  ;;  %4958 = vlog2.f32 %v3554_v33  ;;  %v3560_v51 = vand.u32 2147483647, %v8066_v63  ;;  %v3505_v39 = vmul.f32 %v8035_v47, %v3504_v34 }
 0x602   : > { %v4945_v28 = vpop.eup %4944  ;;  %v3572_v19 = vadd.f32 1.0, %v8079_v9  ;;  %v3558_v57 = vadd.f32 1.0, %v3557_v56  ;;  %v3309_v61 = vmin.f32 %v8107_v49, 20.0  ;;  %v3578_v22 = vand.u32 2147483647, %v8079_v9 }
 0x603   : > { %v3418_v36 = vsel %vm8045_vm14, %v3415_v37, %v3412_v44  ;;  %v3484_v41 = vmul.f32 0.6931472, %v4945_v28  ;;  %v8094_v18 = vpop.eup %4946  ;;  %vm8120_vm8 = vcmp.lt.f32.partialorder %v3560_v51, 0.0004427343  ;;  %v3575_v28 = vmul.f32 -0.5, %v8079_v9 }
 0x604   : > { %v3666_v21 = vmul.f32 0.01, %v3418_v36  ;;  %4960 = vlog2.f32 %v3572_v19  ;;  %v8807_v36 = vld [vmem:[#allocation25_spill] sm:$0xff]  ;;  %v3368_v51 = vmul.f32 1.442695, %v3307_v43  ;;  %vm3266_vm9 = vcmp.gt.f32.partialorder %v7979_v8, 20.0 }
 0x605   : > { %v4949_v5 = vpop.eup %4948  ;;  %v3490_v44 = vsel %vm8069_vm3, %v3487_v32, %v3484_v41  ;;  %v3713_v46 = vsel %vm3265_vm13, %v8807_v36, %v3681_v60  ;;  %v3721_v60 = vsel %vm3273_vm15, %v8810_v25, %v8040_v26  ;;  %v3576_v36 = vadd.f32 1.0, %v3575_v28 }
 0x606   : > { %v3430_v37 = vmul.f32 0.6931472, %v4949_v5  ;;  %v3674_v48 = vmul.f32 0.01, %v3490_v44  ;;  %v8113_v33 = vpop.eup %4950  ;;  %v8118_v41 = vsel %vm3250_vm1, %v7889_v20, %v3666_v21  ;;  %v3737_v10 = vpack.c.bf16 %v3721_v60, %v3713_v46 }
 0x607   : > { %v4953_v47 = vpop.eup %4952  ;;  %v3419_v21 = vadd.f32 1.0, %v8042_v1  ;;  %v3559_v44 = vmul.f32 %v8066_v63, %v3558_v57  ;;  %v8811_v46 = vpack.c.bf16 %v7878_v7, %v7875_v16  ;;  %v3422_v25 = vmul.f32 -0.5, %v8042_v1 }
 0x608   : > { %v3436_v34 = vsel %vm8073_vm4, %v3433_v62, %v3430_v37  ;;  %v8134_v20 = vsel %vm3258_vm2, %v7902_v24, %v3674_v48  ;;  %v4955_v56 = vpop.eup %4954  ;;  %v3502_v32 = vmul.f32 0.6931472, %v4953_v47  ;;  %3833 = vmatprep.subr.bf16.mxu1 %v3737_v10  ;;  %vm3268_vm10 = vcmp.gt.f32.partialorder %v7983_v3, 20.0  ;;  %v8828_v3 = vld [vmem:[#allocation14_spill] sm:$0xff] }
 0x609   : > { %v3730_v19 = vpack.c.bf16 %v8134_v20, %v8118_v41  ;;  %v3668_v26 = vmul.f32 0.01, %v3436_v34  ;;  %v3626_v62 = vadd.f32 1.0, %v4955_v56  ;;  %v3629_v5 = vmul.f32 -0.5, %v4955_v56  ;;  %v8141_v45 = vpop.eup %4956  ;;  %3834 = vmatpush1.bf16.msra.mxu1 %v8811_v46 }
 0x60a   : > { %v3508_v24 = vsel %vm8097_vm5, %v3505_v39, %v3502_v32  ;;  %4962 = vlog2.f32 %v3419_v21  ;;  %v3632_v48 = vand.u32 2147483647, %v4955_v56  ;;  %v3644_v59 = vadd.f32 1.0, %v8141_v45 }
 0x60b   : > { %v4959_v43 = vpop.eup %4958  ;;  %v3676_v37 = vmul.f32 0.01, %v3508_v24  ;;  %4964 = vlog2.f32 %v3626_v62  ;;  %v3372_v39 = vmul.f32 1.442695, %v3309_v61  ;;  %v8155_v16 = vsel %vm3252_vm6, %v7920_v58, %v3668_v26 }
 0x60c   : > { %v3556_v60 = vmul.f32 0.6931472, %v4959_v43  ;;  %4966 = vpow2.f32 %v3368_v51  ;;  %v3630_v57 = vadd.f32 1.0, %v3629_v5  ;;  %v3647_v28 = vmul.f32 -0.5, %v8141_v45  ;;  %4307 = vmatmul.mubr.msk.bf16.vlgmr.msra.gmra.mrb[80].mxu1 %vm297_vm0, %v7917_v14 }
 0x60d   : > { %v8160_v7 = vsel %vm3260_vm7, %v7937_v2, %v3676_v37  ;;  %4968 = vlog2.f32 %v3644_v59  ;;  %3873 = vmatprep.mubr.bf16.mxu1 %v8594_v13  ;;  %v3577_v58 = vmul.f32 %v8079_v9, %v3576_v36  ;;  %v3650_v2 = vand.u32 2147483647, %v8141_v45 }
 0x60e   : > { %v4961_v63 = vpop.eup %4960  ;;  %v3732_v47 = vpack.c.bf16 %v8160_v7, %v8155_v16  ;;  %v3562_v34 = vsel %vm8120_vm8, %v3559_v44, %v3556_v60  ;;  %v3423_v42 = vadd.f32 1.0, %v3422_v25  ;;  %vm8173_vm11 = vcmp.lt.f32.partialorder %v3578_v22, 0.0004427343  ;;  %v8833_v16 = vld [vmem:[#allocation24_spill] sm:$0xff]  ;;  %v8834_v7 = vld [vmem:[#allocation22_spill] sm:$0xff] }
 0x60f   : > { %v3574_v12 = vmul.f32 0.6931472, %v4961_v63  ;;  %4970 = vpow2.f32 %v8054_v52  ;;  %vm8178_vm12 = vcmp.lt.f32.partialorder %v3632_v48, 0.0004427343  ;;  %v3491_v21 = vadd.f32 1.0, %v8052_v50 }
 0x610   : > { %v3682_v32 = vmul.f32 0.01, %v3562_v34  ;;  %v3631_v9 = vmul.f32 %v4955_v56, %v3630_v57  ;;  %4972 = vpow2.f32 %v3372_v39  ;;  %vm3274_vm13 = vcmp.gt.f32.partialorder %v8026_v17, 20.0 }
 0x611   : > { %v3580_v51 = vsel %vm8173_vm11, %v3577_v58, %v3574_v12  ;;  %v3648_v61 = vadd.f32 1.0, %v3647_v28  ;;  %4974 = vlog2.f32 %v3491_v21  ;;  %v3494_v26 = vmul.f32 -0.5, %v8052_v50 }
 0x612   : > { %v3437_v52 = vadd.f32 1.0, %v8057_v23  ;;  %vm8188_vm14 = vcmp.lt.f32.partialorder %v3650_v2, 0.0004427343  ;;  %v3424_v62 = vmul.f32 %v8042_v1, %v3423_v42  ;;  %v3425_v5 = vand.u32 2147483647, %v8042_v1 }
 0x613   : > { %v3440_v24 = vmul.f32 -0.5, %v8057_v23  ;;  %v3684_v44 = vmul.f32 0.01, %v3580_v51  ;;  %v3509_v36 = vadd.f32 1.0, %v8094_v18  ;;  %v3512_v46 = vmul.f32 -0.5, %v8094_v18 }
 0x614   : > { %v4963_v56 = vpop.eup %4962  ;;  %4976 = vlog2.f32 %v3437_v52  ;;  %v8200_v37 = vsel %vm3266_vm9, %v7962_v11, %v3682_v32  ;;  %vm3276_vm15 = vcmp.gt.f32.partialorder %v8033_v53, 20.0  ;;  %v3497_v1 = vand.u32 2147483647, %v8052_v50  ;;  %4308 = vmatmul.mubr.msk.bf16.gmra.mrb[84].mxu1 %vm297_vm0, %v7970_v55 }
 0x615   : > { %v4965_v43 = vpop.eup %4964  ;;  %v3421_v48 = vmul.f32 0.6931472, %v4963_v56  ;;  %v3563_v25 = vadd.f32 1.0, %v8113_v33  ;;  %v3495_v39 = vadd.f32 1.0, %v3494_v26  ;;  %v3443_v63 = vand.u32 2147483647, %v8057_v23  ;;  %3969 = vmatprep.mubr.bf16.mxu1 %v8594_v13 }
 0x616   : > { %v8207_v60 = vpop.eup %4966  ;;  %v3628_v59 = vmul.f32 0.6931472, %v4965_v43  ;;  %4978 = vlog2.f32 %v3509_v36  ;;  %vm3251_vm1 = vcmp.gt.f32.partialorder %v7909_v31, 20.0  ;;  %v3649_v11 = vmul.f32 %v8141_v45, %v3648_v61 }
 0x617   : > { %vm8213_vm2 = vcmp.lt.f32.partialorder %v3425_v5, 0.0004427343  ;;  %v3441_v57 = vadd.f32 1.0, %v3440_v24  ;;  %4980 = vlog2.f32 %v3563_v25  ;;  %v4969_v28 = vpop.eup %4968  ;;  %v8220_v34 = vsel %vm3268_vm10, %v7976_v6, %v3684_v44 }
 0x618   : > { %v3634_v12 = vsel %vm8178_vm12, %v3631_v9, %v3628_v59  ;;  %v3427_v58 = vsel %vm8213_vm2, %v3424_v62, %v3421_v48  ;;  %v3513_v2 = vadd.f32 1.0, %v3512_v46  ;;  %vm3259_vm3 = vcmp.gt.f32.partialorder %v7931_v54, 20.0 }
 0x619   : > { %v3690_v45 = vmul.f32 0.01, %v3634_v12  ;;  %v3646_v42 = vmul.f32 0.6931472, %v4969_v28  ;;  %v3566_v10 = vmul.f32 -0.5, %v8113_v33  ;;  %v3635_v21 = vadd.f32 1.0, %v8207_v60  ;;  %v8229_v32 = vpop.eup %4970 }
 0x61a   : > { %v3496_v6 = vmul.f32 %v8052_v50, %v3495_v39  ;;  %vm8232_vm4 = vcmp.lt.f32.partialorder %v3497_v1, 0.0004427343  ;;  %vm8236_vm5 = vcmp.lt.f32.partialorder %v3443_v63, 0.0004427343  ;;  %v3515_v51 = vand.u32 2147483647, %v8094_v18  ;;  %v8241_v9 = vpop.eup %4972 }
 0x61b   : > { %v8246_v61 = vsel %vm3274_vm13, %v8010_v35, %v3690_v45  ;;  %v3652_v50 = vsel %vm8188_vm14, %v3649_v11, %v3646_v42  ;;  %v3442_v26 = vmul.f32 %v8057_v23, %v3441_v57  ;;  %4982 = vlog2.f32 %v3635_v21  ;;  %v4975_v52 = vpop.eup %4974 }
 0x61c   : > { %v3738_v62 = vpack.c.bf16 %v8246_v61, %v8200_v37  ;;  %v3692_v5 = vmul.f32 0.01, %v3652_v50  ;;  %v3667_v24 = vmul.f32 0.01, %v3427_v58  ;;  %v3514_v56 = vmul.f32 %v8094_v18, %v3513_v2 }
 0x61d   : > { %v3493_v44 = vmul.f32 0.6931472, %v4975_v52  ;;  %v3567_v36 = vadd.f32 1.0, %v3566_v10  ;;  %v3638_v17 = vmul.f32 -0.5, %v8207_v60  ;;  %v3581_v35 = vadd.f32 1.0, %v8229_v32 }
 0x61e   : > { %v4977_v46 = vpop.eup %4976  ;;  %v8259_v23 = vsel %vm3276_vm15, %v8018_v4, %v3692_v5  ;;  %vm8261_vm6 = vcmp.lt.f32.partialorder %v3515_v51, 0.0004427343  ;;  %v3569_v43 = vand.u32 2147483647, %v8113_v33  ;;  %v3653_v18 = vadd.f32 1.0, %v8241_v9  ;;  %v8829_v51 = vld [vmem:[#allocation10_spill] sm:$0xff] }
 0x61f   : > { %v3740_v48 = vpack.c.bf16 %v8259_v23, %v8220_v34  ;;  %v3499_v1 = vsel %vm8232_vm4, %v3496_v6, %v3493_v44  ;;  %v3439_v25 = vmul.f32 0.6931472, %v4977_v46  ;;  %4984 = vlog2.f32 %v3581_v35  ;;  %v8830_v44 = vld [vmem:[#allocation27_spill] sm:$0xff]  ;;  %v8832_v46 = vld [vmem:[#allocation21_spill] sm:$0xff] }
 0x620   : > { %v4979_v59 = vpop.eup %4978  ;;  %v3675_v53 = vmul.f32 0.01, %v3499_v1  ;;  %v3699_v4 = vsel %vm3251_vm1, %v7893_v38, %v3667_v24  ;;  %v3641_v39 = vand.u32 2147483647, %v8207_v60  ;;  %4986 = vlog2.f32 %v3653_v18 }
 0x621   : > { %v4981_v63 = vpop.eup %4980  ;;  %v3445_v11 = vsel %vm8236_vm5, %v3442_v26, %v3439_v25  ;;  %v3511_v8 = vmul.f32 0.6931472, %v4979_v59  ;;  %v3568_v57 = vmul.f32 %v8113_v33, %v3567_v36  ;;  %v3639_v28 = vadd.f32 1.0, %v3638_v17 }
 0x622   : > { %v3707_v12 = vsel %vm3259_vm3, %v7905_v15, %v3675_v53  ;;  %v3669_v58 = vmul.f32 0.01, %v3445_v11  ;;  %v3565_v2 = vmul.f32 0.6931472, %v4981_v63  ;;  %v3584_v31 = vmul.f32 -0.5, %v8229_v32 }
 0x623   : > { %v3731_v38 = vpack.c.bf16 %v3707_v12, %v3699_v4  ;;  %v3517_v45 = vsel %vm8261_vm6, %v3514_v56, %v3511_v8  ;;  %vm8284_vm7 = vcmp.lt.f32.partialorder %v3569_v43, 0.0004427343  ;;  %v3656_v10 = vmul.f32 -0.5, %v8241_v9 }
 0x624   : > { %v3677_v33 = vmul.f32 0.01, %v3517_v45  ;;  %v3571_v21 = vsel %vm8284_vm7, %v3568_v57, %v3565_v2  ;;  %vm3253_vm8 = vcmp.gt.f32.partialorder %v7942_v0, 20.0  ;;  %vm3261_vm9 = vcmp.gt.f32.partialorder %v7973_v29, 20.0 }
 0x625   : > { %v4983_v54 = vpop.eup %4982  ;;  %3884 = vmatprep.subr.bf16.mxu0 %v3731_v38  ;;  %v3640_v15 = vmul.f32 %v8207_v60, %v3639_v28  ;;  %v3587_v6 = vand.u32 2147483647, %v8229_v32  ;;  %v3701_v30 = vsel %vm3253_vm8, %v8828_v3, %v3669_v58  ;;  %v3585_v52 = vadd.f32 1.0, %v3584_v31 }
 0x626   : > { %v3709_v50 = vsel %vm3261_vm9, %v8829_v51, %v3677_v33  ;;  %3885 = vmatpush1.bf16.msra.mxu0 %v3730_v19  ;;  %v3637_v26 = vmul.f32 0.6931472, %v4983_v54  ;;  %vm3642_vm10 = vcmp.lt.f32.partialorder %v3641_v39, 0.0004427343  ;;  %v3683_v0 = vmul.f32 0.01, %v3571_v21 }
 0x627   : > { %v3733_v5 = vpack.c.bf16 %v3709_v50, %v3701_v30  ;;  %v3657_v24 = vadd.f32 1.0, %v3656_v10  ;;  %v3659_v56 = vand.u32 2147483647, %v8241_v9  ;;  %vm3267_vm11 = vcmp.gt.f32.partialorder %v8830_v44, 20.0  ;;  %v8831_v19 = vld [vmem:[#allocation11_spill] sm:$0xff] }
 0x628   : > { %v3643_v29 = vsel %vm3642_vm10, %v3640_v15, %v3637_v26  ;;  %vm3275_vm12 = vcmp.gt.f32.partialorder %v8082_v27, 20.0  ;;  %v3586_v20 = vmul.f32 %v8229_v32, %v3585_v52  ;;  %vm3588_vm13 = vcmp.lt.f32.partialorder %v3587_v6, 0.0004427343 }
 0x629   : > { %v4985_v60 = vpop.eup %4984  ;;  %3937 = vmatprep.subr.bf16.mxu1 %v3733_v5  ;;  %v3691_v36 = vmul.f32 0.01, %v3643_v29  ;;  %v3715_v35 = vsel %vm3267_vm11, %v8831_v19, %v3683_v0  ;;  %v3658_v18 = vmul.f32 %v8241_v9, %v3657_v24  ;;  %vm3660_vm14 = vcmp.lt.f32.partialorder %v3659_v56, 0.0004427343 }
 0x62a   : > { %v4987_v17 = vpop.eup %4986  ;;  %3938 = vmatpush1.bf16.msra.mxu1 %v3732_v47  ;;  %v3583_v41 = vmul.f32 0.6931472, %v4985_v60  ;;  %vm3269_vm15 = vcmp.gt.f32.partialorder %v8833_v16, 20.0  ;;  %vm3277_vm1 = vcmp.gt.f32.partialorder %v8107_v49, 20.0  ;;  %v5110_v50 = vmov 1966171168  }
 0x62b   : > { %v3723_v22 = vsel %vm3275_vm12, %v8832_v46, %v3691_v36  ;;  %v3655_v43 = vmul.f32 0.6931472, %v4987_v17  ;;  %v4083_v26 = vunpack.c.l.s4 %v5110_v50  ;;  %v4085_v52 = vlaneseq }
 0x62c   : > { %v3739_v1 = vpack.c.bf16 %v3723_v22, %v3715_v35  ;;  %v3589_v25 = vsel %vm3588_vm13, %v3586_v20, %v3583_v41 }
 0x62d   : > { %v3661_v59 = vsel %vm3660_vm14, %v3658_v18, %v3655_v43  ;;  %v3685_v27 = vmul.f32 0.01, %v3589_v25  ;;  %v4084_v29 = vunpack.c.0.s8 %v4083_v26  ;;  %v4086_v56 = vshrl.u32 %v4085_v52, 7 }
 0x62e   : > { %3886 = vmatprep.subr.bf16.mxu0 %v3739_v1  ;;  %v3693_v53 = vmul.f32 0.01, %v3661_v59 }
 0x62f   : > { %3887 = vmatpush1.bf16.msra.mxu0 %v3738_v62  ;;  %v3717_v47 = vsel %vm3269_vm15, %v8834_v7, %v3685_v27  ;;  %v8369_v19 = vsub.s32 %v4084_v29, %v4086_v56 }
 0x630   : > { %v3725_v32 = vsel %vm3277_vm1, %v8086_v40, %v3693_v53 }
 0x631   : > { %v3741_v9 = vpack.c.bf16 %v3725_v32, %v3717_v47 }
 0x632   : > { %4309 = vmatmul.mubr.msk.bf16.vlgmr.msra.gmra.mrb[88].mxu0 %vm297_vm0, %v7917_v14 }
 0x633   : > { %3939 = vmatprep.subr.bf16.mxu1 %v3741_v9  ;;  %3926 = vmatprep.mubr.bf16.mxu0 %v8594_v13 }
 0x634   : > { %3940 = vmatpush1.bf16.msra.mxu1 %v3740_v48 }
 0x637   : > { %4311 = vmatmul.mubr.msk.bf16.vlgmr.msra.gmra.mrb[88].mxu1 %vm297_vm0, %v7917_v14 }
 0x638   : > { %3979 = vmatprep.mubr.bf16.mxu1 %v8594_v13 }
 0x63a   : > { %4310 = vmatmul.mubr.msk.bf16.gmra.mrb[92].mxu0 %vm297_vm0, %v7970_v55 }
 0x63f   : > { %4312 = vmatmul.mubr.msk.bf16.gmra.mrb[92].mxu1 %vm297_vm0, %v7970_v55 }
 0x65a   : > { %v8330_v49 = vpop.permute.xlu1 %3747 }
 0x65c   : > { %v4459_v40 = vpop.permute.xlu0 %4458 }
 0x65d   : > { %v8332_v37 = vunpack.i.l.bf16 %v4459_v40  ;;  %v8340_v4 = vunpack.i.h.bf16 %v4459_v40 }
 0x65e   : > { %v8344_v63 = vpop.permute.xlu1 %3759 }
 0x6bc   : > { %v3812_v34 = vpop.f32.mrb[80].mxu0 }
 0x6bd   : > { %v3814_v61 = vpop.f32.mrb[81].mxu0  ;;  %v3813_v14 = vadd.f32 %v3812_v34, %v8330_v49 }
 0x6be   : > { %v3816_v62 = vpop.f32.mrb[82].mxu0  ;;  %v3815_v13 = vadd.f32 %v3814_v61, %v8330_v49 }
 0x6bf   : > { %v3817_v23 = vadd.f32 %v8332_v37, %v3816_v62  ;;  %4022 = vst [vmem:[%s6813_s3 + $0x100] sm:$0xff] %v3813_v14  ;;  %4988 = vtanh.f32 %v3813_v14  ;;  %v3818_v55 = vpop.f32.mrb[83].mxu0 }
 0x6c0   : > { %4023 = vst [vmem:[%s6813_s3 + $0x108] sm:$0xff] %v3815_v13  ;;  %4990 = vtanh.f32 %v3815_v13  ;;  %v3819_v48 = vadd.f32 %v8332_v37, %v3818_v55 }
 0x6c1   : > { %4030 = vst [vmem:[%s6813_s3 + $0x140] sm:$0xff] %v3817_v23 }
 0x6c2   : > { %4031 = vst [vmem:[%s6813_s3 + $0x148] sm:$0xff] %v3819_v48 }
 0x6c4   : > { %v3822_v39 = vpop.f32.mrb[84].mxu0 }
 0x6c5   : > { %v3823_v11 = vadd.f32 %v8340_v4, %v3822_v39  ;;  %v3824_v8 = vpop.f32.mrb[85].mxu0 }
 0x6c6   : > { %v3825_v57 = vadd.f32 %v8340_v4, %v3824_v8  ;;  %v3826_v28 = vpop.f32.mrb[86].mxu0 }
 0x6c7   : > { %4038 = vst [vmem:[%s6813_s3 + $0x180] sm:$0xff] %v3823_v11  ;;  %v3827_v12 = vadd.f32 %v3826_v28, %v8344_v63  ;;  %v3828_v58 = vpop.f32.mrb[87].mxu0 }
 0x6c8   : > { %4039 = vst [vmem:[%s6813_s3 + $0x188] sm:$0xff] %v3825_v57  ;;  %v3829_v2 = vadd.f32 %v3828_v58, %v8344_v63 }
 0x6c9   : > { %v4989_v31 = vpop.eup %4988  ;;  %4046 = vst [vmem:[%s6813_s3 + $0x1c0] sm:$0xff] %v3827_v12 }
 0x6ca   : > { %v4991_v38 = vpop.eup %4990  ;;  %v4062_v45 = vmul.f32 0.05, %v4989_v31  ;;  %4047 = vst [vmem:[%s6813_s3 + $0x1c8] sm:$0xff] %v3829_v2 }
 0x6cb   : > { %v4063_v42 = vmul.f32 0.05, %v4991_v38 }
 0x6cd   : > { %v4078_v10 = vcombine.low %v4062_v45, %v4063_v42 }
 0x6cf   : > { %v8373_v18 = vrot.slane %v4078_v10, %v8369_v19 }
 0x6df   : > { %v3865_v33 = vpop.f32.mrb[80].mxu1 }
 0x6e0   : > { %v3867_v21 = vpop.f32.mrb[81].mxu1  ;;  %v3866_v54 = vadd.f32 %v3865_v33, %v8330_v49 }
 0x6e1   : > { %v3869_v15 = vpop.f32.mrb[82].mxu1  ;;  %v3868_v6 = vadd.f32 %v3867_v21, %v8330_v49 }
 0x6e2   : > { %v3870_v3 = vadd.f32 %v8332_v37, %v3869_v15  ;;  %4024 = vst [vmem:[%s6813_s3 + $0x110] sm:$0xff] %v3866_v54  ;;  %4992 = vtanh.f32 %v3866_v54  ;;  %v3871_v30 = vpop.f32.mrb[83].mxu1 }
 0x6e3   : > { %4025 = vst [vmem:[%s6813_s3 + $0x118] sm:$0xff] %v3868_v6  ;;  %4994 = vtanh.f32 %v3868_v6  ;;  %v3872_v51 = vadd.f32 %v8332_v37, %v3871_v30 }
 0x6e4   : > { %4032 = vst [vmem:[%s6813_s3 + $0x150] sm:$0xff] %v3870_v3 }
 0x6e5   : > { %4033 = vst [vmem:[%s6813_s3 + $0x158] sm:$0xff] %v3872_v51 }
 0x6e7   : > { %v3875_v5 = vpop.f32.mrb[84].mxu1 }
 0x6e8   : > { %v3876_v0 = vadd.f32 %v8340_v4, %v3875_v5  ;;  %v3877_v24 = vpop.f32.mrb[85].mxu1 }
 0x6e9   : > { %v3878_v60 = vadd.f32 %v8340_v4, %v3877_v24  ;;  %v3879_v44 = vpop.f32.mrb[86].mxu1 }
 0x6ea   : > { %4040 = vst [vmem:[%s6813_s3 + $0x190] sm:$0xff] %v3876_v0  ;;  %v3880_v36 = vadd.f32 %v3879_v44, %v8344_v63  ;;  %v3881_v17 = vpop.f32.mrb[87].mxu1 }
 0x6eb   : > { %4041 = vst [vmem:[%s6813_s3 + $0x198] sm:$0xff] %v3878_v60  ;;  %v3882_v41 = vadd.f32 %v3881_v17, %v8344_v63 }
 0x6ec   : > { %v4993_v20 = vpop.eup %4992  ;;  %4048 = vst [vmem:[%s6813_s3 + $0x1d0] sm:$0xff] %v3880_v36 }
 0x6ed   : > { %v4995_v35 = vpop.eup %4994  ;;  %v4064_v46 = vmul.f32 0.05, %v4993_v20  ;;  %4049 = vst [vmem:[%s6813_s3 + $0x1d8] sm:$0xff] %v3882_v41 }
 0x6ee   : > { %v4065_v22 = vmul.f32 0.05, %v4995_v35 }
 0x6f0   : > { %v4079_v43 = vcombine.low %v4064_v46, %v4065_v22 }
 0x6f2   : > { %v8376_v1 = vrot.slane %v4079_v43, %v8369_v19 }
 0x6f4   : > { %v4110_v25 = vcombine.low %v8373_v18, %v8376_v1 }
 0x705   : > { %v3918_v59 = vpop.f32.mrb[88].mxu0 }
 0x706   : > { %v3919_v27 = vadd.f32 %v3918_v59, %v8330_v49  ;;  %v3920_v53 = vpop.f32.mrb[89].mxu0 }
 0x707   : > { %v3921_v16 = vadd.f32 %v3920_v53, %v8330_v49  ;;  %v3922_v7 = vpop.f32.mrb[90].mxu0 }
 0x708   : > { %4026 = vst [vmem:[%s6813_s3 + $0x120] sm:$0xff] %v3919_v27  ;;  %4996 = vtanh.f32 %v3919_v27  ;;  %v3923_v47 = vadd.f32 %v8332_v37, %v3922_v7  ;;  %v3924_v32 = vpop.f32.mrb[91].mxu0 }
 0x709   : > { %4027 = vst [vmem:[%s6813_s3 + $0x128] sm:$0xff] %v3921_v16  ;;  %4998 = vtanh.f32 %v3921_v16  ;;  %v3925_v9 = vadd.f32 %v8332_v37, %v3924_v32 }
 0x70a   : > { %v3971_v40 = vpop.f32.mrb[88].mxu1  ;;  %4034 = vst [vmem:[%s6813_s3 + $0x160] sm:$0xff] %v3923_v47 }
 0x70b   : > { %v3972_v34 = vadd.f32 %v3971_v40, %v8330_v49  ;;  %v3973_v61 = vpop.f32.mrb[89].mxu1  ;;  %4035 = vst [vmem:[%s6813_s3 + $0x168] sm:$0xff] %v3925_v9 }
 0x70c   : > { %v3974_v14 = vadd.f32 %v3973_v61, %v8330_v49  ;;  %v3975_v62 = vpop.f32.mrb[90].mxu1 }
 0x70d   : > { %4028 = vst [vmem:[%s6813_s3 + $0x130] sm:$0xff] %v3972_v34  ;;  %5000 = vtanh.f32 %v3972_v34  ;;  %v3976_v13 = vadd.f32 %v8332_v37, %v3975_v62  ;;  %v3977_v23 = vpop.f32.mrb[91].mxu1  ;;  %v3928_v55 = vpop.f32.mrb[92].mxu0 }
 0x70e   : > { %4029 = vst [vmem:[%s6813_s3 + $0x138] sm:$0xff] %v3974_v14  ;;  %5002 = vtanh.f32 %v3974_v14  ;;  %v3978_v48 = vadd.f32 %v8332_v37, %v3977_v23  ;;  %v3929_v39 = vadd.f32 %v8340_v4, %v3928_v55  ;;  %v3930_v11 = vpop.f32.mrb[93].mxu0 }
 0x70f   : > { %4036 = vst [vmem:[%s6813_s3 + $0x170] sm:$0xff] %v3976_v13  ;;  %v3931_v49 = vadd.f32 %v8340_v4, %v3930_v11  ;;  %v3932_v8 = vpop.f32.mrb[94].mxu0 }
 0x710   : > { %4037 = vst [vmem:[%s6813_s3 + $0x178] sm:$0xff] %v3978_v48  ;;  %4042 = vst [vmem:[%s6813_s3 + $0x1a0] sm:$0xff] %v3929_v39  ;;  %v3933_v57 = vadd.f32 %v3932_v8, %v8344_v63  ;;  %v3934_v28 = vpop.f32.mrb[95].mxu0 }
 0x711   : > { %4043 = vst [vmem:[%s6813_s3 + $0x1a8] sm:$0xff] %v3931_v49  ;;  %v3935_v12 = vadd.f32 %v3934_v28, %v8344_v63 }
 0x712   : > { %v4997_v58 = vpop.eup %4996  ;;  %v3981_v37 = vpop.f32.mrb[92].mxu1  ;;  %4050 = vst [vmem:[%s6813_s3 + $0x1e0] sm:$0xff] %v3933_v57 }
 0x713   : > { %v4999_v2 = vpop.eup %4998  ;;  %v4066_v31 = vmul.f32 0.05, %v4997_v58  ;;  %v3982_v38 = vadd.f32 %v8340_v4, %v3981_v37  ;;  %v3983_v45 = vpop.f32.mrb[93].mxu1  ;;  %4051 = vst [vmem:[%s6813_s3 + $0x1e8] sm:$0xff] %v3935_v12 }
 0x714   : > { %v4067_v42 = vmul.f32 0.05, %v4999_v2  ;;  %v3984_v10 = vadd.f32 %v8340_v4, %v3983_v45  ;;  %v3985_v33 = vpop.f32.mrb[94].mxu1 }
 0x715   : > { %4044 = vst [vmem:[%s6813_s3 + $0x1b0] sm:$0xff] %v3982_v38  ;;  %v3986_v21 = vadd.f32 %v3985_v33, %v8344_v63  ;;  %v3987_v54 = vpop.f32.mrb[95].mxu1 }
 0x716   : > { %v4080_v15 = vcombine.low %v4066_v31, %v4067_v42  ;;  %4045 = vst [vmem:[%s6813_s3 + $0x1b8] sm:$0xff] %v3984_v10  ;;  %v3988_v6 = vadd.f32 %v3987_v54, %v8344_v63  ;;  %v4118_v63 = vrot.slane %v4110_v25, %v8369_v19 }
 0x717   : > { %v5001_v3 = vpop.eup %5000  ;;  %4052 = vst [vmem:[%s6813_s3 + $0x1f0] sm:$0xff] %v3986_v21 }
 0x718   : > { %v5003_v30 = vpop.eup %5002  ;;  %v4068_v51 = vmul.f32 0.05, %v5001_v3  ;;  %4053 = vst [vmem:[%s6813_s3 + $0x1f8] sm:$0xff] %v3988_v6  ;;  %v4102_v50 = vrot.slane %v4080_v15, %v8369_v19 }
 0x719   : > { %v4069_v4 = vmul.f32 0.05, %v5003_v30 }
 0x71b   : > { %v4081_v26 = vcombine.low %v4068_v51, %v4069_v4 }
 0x71d   : > { %v4109_v52 = vrot.slane %v4081_v26, %v8369_v19 }
 0x71f   : > { %v4111_v5 = vcombine.low %v4102_v50, %v4109_v52 }
 0x721   : > { %v4125_v0 = vrot.slane %v4111_v5, %v8369_v19 }
 0x723   : > { %v4126_v24 = vcombine.low %v4118_v63, %v4125_v0 }
 0x725   : > { %4313 = vst [vmem:[%s6813_s3 + $0x100] ss:$8 sm:$0xf] %v4126_v24  ;;  %4314 = vst [vmem:[%s6813_s3 + $0x100] ss:$8 sm:$0xf0] %v4126_v24 }
 0x726   : > { %5047 = shalt.err (!%p5044_p3)
}
 0x727   : > { %s5048_s3 = scalar_lea.hbm %s8424_s30, 8192  ;;  %s5052_s23 = scalar_lea.hbm %s8474_s2, 16384 }
 0x728   : > { %p5049_p5 = scmp.ne.s32.totalorder %s8424_s30, %s5048_s3  ;;  %p5053_p9 = scmp.lt.u32.totalorder %s8424_s30, %s8474_s2 }
 0x729   : > { %p5054_p0 = scmp.lt.u32.totalorder %s5052_s23, %s5048_s3  ;;  %p5056_p6 = scmp.lt.u32.totalorder %s5048_s3, %s8424_s30 }
 0x72a   : > { %p5050_p7 = pnand %p5049_p5, %p8835_p11 }
 0x72b   : > { %p5055_p2 = por %p5054_p0, %p5053_p9 }
 0x72c   : > { %p5051_p8 = pneg %p5050_p7 }
 0x72d   : > { %p5057_p12 = por %p5056_p6, %p5055_p2 }
 0x72f   : > { %p5058_p13 = pnand %p5057_p12, %p5051_p8 }
 0x731   : > { %5061 = shalt.err (!%p5058_p13)
}
 0x732   : > { %s5112_s26 = smov 1024   ;;  %s5113_s27 = smov 2048  }
 0x733   : > { %s5114_s5 = smov 64  }
 0x734   : > { %4366 = dma.vmem_to_hbm [thread:$0]  (%p8835_p11), %s8426_s7, 8192, %s8424_s30, %s4132_s13, %s5112_s26, %s5113_s27, %s5114_s5  }
 0x735 PF: > { %s4160_s6 = sand.u32 1, %s5088_s9   ;;  %p8836_p4 = scmp.ne.s32.totalorder %s8540_s22, 0 }
 0x736   : > { %p8837_p10 = scmp.ge.s32.totalorder %s5100_s12, 2  ;;  %s4161_s20 = scalar_lea.sflag [#allocation4], %s4160_s6 }
 0x738   : > { %p4373_p1 = pnand %p8837_p10, %p8836_p4 }
 0x73a   : > { %5083 = dma.done.wait (!%p4373_p1), %s4161_s20, 8192  }
 0x73b   : > { %5085 = vsyncadd (!%p4373_p1), %s4161_s20, 4294959104  ;;  %p15_p3 = scmp.ge.s32.totalorder %s5155_s15, 4   ;;  %s8838_s9 = smov %s5092_s10 }
 0x73c   : > { %s8839_s10 = smov %s5096_s11  ;;  %s8840_s11 = smov %s5167_s18 }
 0x73d   : > { %s8841_s12 = smov %s5155_s15  ;;  %17 = sbr.rel (!%p15_p3) target bundleno = 5 (0x5), region = 74 }
 0x744   :  { %4166 = vsyncpa [#allocation3], 1 }
 0x745   :  { %4168 = vsyncpa [#allocation3 + $0x1], 1 }
 0x746   :  { %4169 = vsyncpa [#allocation4], 1 }
 0x747   :  { %4171 = vsyncpa [#allocation4 + $0x1], 1 }

</bundles_post_ra>
